<compile_context>
chip_gen: v5e
topology: v5e:2x2
jax: 0.10.0
libtpu: 0.0.40
codegen_flags: <defaults>
</compile_context>

<pallas_src>
import functools

import jax
import jax.numpy as jnp
from jax.experimental import pallas as pl
from jax.experimental.pallas import tpu as pltpu


def _avgpool3d_sep_kernel(x_ref, o_ref, *, kt, kh, kw, t_out, h_out, w_out):
    """Separable sliding-window average pool on a channels-last block.

    x_ref: (T, H, W, BC)            -- BC channels dense on lanes
    o_ref: (t_out, h_out, w_out, BC)
    """
    x = x_ref[...]  # (T, H, W, BC), input dtype

    # W pass: (T, H, W, BC) -> (T, H, w_out, BC).
    # Per-slice cast keeps the resident f32 footprint small for bf16 inputs
    # (no whole-block upcast); for f32 the astype is a no-op.
    acc = x[:, :, 0:w_out, :].astype(jnp.float32)
    for dw in range(1, kw):
        acc = acc + x[:, :, dw:dw + w_out, :].astype(jnp.float32)

    # H pass: -> (T, h_out, w_out, BC)
    acc_h = acc[:, 0:h_out, :, :]
    for dh in range(1, kh):
        acc_h = acc_h + acc[:, dh:dh + h_out, :, :]

    # T pass: -> (t_out, h_out, w_out, BC)
    acc_t = acc_h[0:t_out]
    for dt in range(1, kt):
        acc_t = acc_t + acc_h[dt:dt + t_out]

    scale = 1.0 / float(kt * kh * kw)
    o_ref[...] = (acc_t * scale).astype(o_ref.dtype)


def _round_up(x, m):
    return (x + m - 1) // m * m


def _choose_block_channels(nc, t, h, w):
    """Lane-dim block size (multiple of 128) for channel blocking."""
    nc128 = _round_up(nc, 128)
    # f32 working bytes per 128 lanes of one input block (dominant VMEM term).
    per_128 = t * h * w * 128 * 4
    # Target ~2 MiB input working set per block; stays well under the v7x
    # scoped-VMEM default (32 MiB) even with double buffers + f32 temps.
    target = 2 << 20
    bc = max(128, (target // max(per_128, 1)) * 128)
    bc = min(bc, nc128)
    # Prefer >= 2 grid steps when enough channels exist (v7x has 2 TensorCores).
    if nc128 >= 256:
        bc = min(bc, max(128, (nc128 // 2) // 128 * 128))
    return bc


def simple_spatial_temporal_module(x, spatial_size=7, temporal_size=1):
    """Equivalent of SimpleSpatialTemporalModule(spatial_type='avg').forward.

    x: (N, C, T, H, W) array (NCDHW, like PyTorch AvgPool3d input).
    Returns: (N, C, T - kt + 1, H - kh + 1, W - kw + 1)
    """
    if isinstance(spatial_size, int):
        spatial_size = (spatial_size, spatial_size)
    kt = temporal_size
    kh, kw = spatial_size

    N, C, T, H, W = x.shape
    t_out = T - kt + 1
    h_out = H - kh + 1
    w_out = W - kw + 1
    assert t_out >= 1 and h_out >= 1 and w_out >= 1, "pool window larger than input"

    # Fast path: the module's typical use (7x7x1 pool of a 7x7 map) is a
    # global average -> plain reduction, no windowed kernel needed.
    if (T, H, W) == (kt, kh, kw):
        return jnp.mean(x.astype(jnp.float32), axis=(2, 3, 4),
                        keepdims=True).astype(x.dtype)

    NC = N * C
    # Channels-last: (T, H, W, NC), NC padded to a multiple of the block size.
    x_cl = jnp.transpose(x, (2, 3, 4, 0, 1)).reshape(T, H, W, NC)

    bc = _choose_block_channels(NC, T, H, W)
    nc_pad = _round_up(NC, bc)
    if nc_pad != NC:
        x_cl = jnp.pad(x_cl, ((0, 0), (0, 0), (0, 0), (0, nc_pad - NC)))
    num_blocks = nc_pad // bc

    kernel = functools.partial(
        _avgpool3d_sep_kernel,
        kt=kt, kh=kh, kw=kw, t_out=t_out, h_out=h_out, w_out=w_out,
    )

    # Advisory cost estimate: the op is memory-bound.
    flops = nc_pad * (T * H * w_out * max(kw - 1, 0)
                      + T * h_out * w_out * max(kh - 1, 0)
                      + t_out * h_out * w_out * max(kt - 1, 0)
                      + t_out * h_out * w_out)
    bytes_accessed = (x_cl.size * x_cl.dtype.itemsize
                      + nc_pad * t_out * h_out * w_out * x.dtype.itemsize)
    cost = pl.CostEstimate(flops=flops, transcendentals=0,
                           bytes_accessed=bytes_accessed)

    out_cl = pl.pallas_call(
        kernel,
        out_shape=jax.ShapeDtypeStruct((t_out, h_out, w_out, nc_pad), x.dtype),
        grid_spec=pltpu.PrefetchScalarGridSpec(
            num_scalar_prefetch=0,
            grid=(num_blocks,),
            in_specs=[
                pl.BlockSpec((T, H, W, bc), lambda i: (0, 0, 0, i)),
            ],
            out_specs=pl.BlockSpec((t_out, h_out, w_out, bc),
                                   lambda i: (0, 0, 0, i)),
        ),
        compiler_params=pltpu.CompilerParams(
            dimension_semantics=("parallel",),
        ),
        cost_estimate=cost,
    )(x_cl)

    out = out_cl[..., :NC].reshape(t_out, h_out, w_out, N, C)
    return jnp.transpose(out, (3, 4, 0, 1, 2))


def _reference_avgpool3d(x, spatial_size=7, temporal_size=1):
    """Plain-JAX reference (matches nn.AvgPool3d(kernel, stride=1, padding=0))."""
    if isinstance(spatial_size, int):
        spatial_size = (spatial_size, spatial_size)
    kt, (kh, kw) = temporal_size, spatial_size
    N, C, T, H, W = x.shape
    t_out, h_out, w_out = T - kt + 1, H - kh + 1, W - kw + 1
    acc = jnp.zeros((N, C, t_out, h_out, w_out), jnp.float32)
    for dt in range(kt):
        for dh in range(kh):
            for dw in range(kw):
                acc = acc + x[:, :, dt:dt + t_out, dh:dh + h_out,
                              dw:dw + w_out].astype(jnp.float32)
    return (acc / float(kt * kh * kw)).astype(x.dtype)


if __name__ == "__main__":
    k0, k1 = jax.random.split(jax.random.PRNGKey(0))

    # Config A: module defaults (spatial_size=7, temporal_size=1), windowed kernel path.
    N, C, T, H, W = 2, 4, 4, 16, 16
    x = jax.random.normal(k0, (N, C, T, H, W), dtype=jnp.float32)
    out_a = jax.block_until_ready(
        simple_spatial_temporal_module(x, spatial_size=7, temporal_size=1))
    ref_a = _reference_avgpool3d(x, spatial_size=7, temporal_size=1)
    assert out_a.shape == (N, C, T, H - 7 + 1, W - 7 + 1), out_a.shape
    assert jnp.allclose(out_a, ref_a, atol=1e-5, rtol=1e-5), "mismatch (kt=1 path)"

    # Config B: temporal window > 1 exercises all three separable passes.
    out_b = jax.block_until_ready(
        simple_spatial_temporal_module(x, spatial_size=7, temporal_size=2))
    ref_b = _reference_avgpool3d(x, spatial_size=7, temporal_size=2)
    assert out_b.shape == (N, C, T - 2 + 1, H - 7 + 1, W - 7 + 1), out_b.shape
    assert jnp.allclose(out_b, ref_b, atol=1e-5, rtol=1e-5), "mismatch (kt=2 path)"

    # Config C: the module's typical 7x7x1 feature map -> global-average fast path.
    x2 = jax.random.normal(k1, (2, 8, 1, 7, 7), dtype=jnp.float32)
    out_c = jax.block_until_ready(
        simple_spatial_temporal_module(x2, spatial_size=7, temporal_size=1))
    ref_c = _reference_avgpool3d(x2, spatial_size=7, temporal_size=1)
    assert out_c.shape == (2, 8, 1, 1, 1), out_c.shape
    assert jnp.allclose(out_c, ref_c, atol=1e-5, rtol=1e-5), "mismatch (fast path)"

    print("KERNEL_OK")
</pallas_src>

<mosaic_0001>
module attributes {stable_mosaic.version = 11 : i64} {
  func.func @_avgpool3d_sep_kernel(%arg0: i32, %arg1: memref<4x16x16x128xf32, #tpu.memory_space<vmem>>, %arg2: memref<4x10x10x128xf32, #tpu.memory_space<vmem>>) attributes {dimension_semantics = [#tpu.dimension_semantics<parallel>], iteration_bounds = array<i64: 1>, scalar_prefetch = 0 : i64, scratch_operands = 0 : i64, tpu.core_type = #tpu.core_type<tc>, window_params = [{transform_indices = @transform_0, window_bounds = array<i64: 4, 16, 16, 128>}, {transform_indices = @transform_1, window_bounds = array<i64: 4, 10, 10, 128>}]} {
    %c0 = arith.constant 0 : index
    %c0_0 = arith.constant 0 : index
    %c0_1 = arith.constant 0 : index
    %c0_2 = arith.constant 0 : index
    %0 = vector.load %arg1[%c0, %c0_0, %c0_1, %c0_2] : memref<4x16x16x128xf32, #tpu.memory_space<vmem>>, vector<4x16x16x128xf32>
    %1 = vector.extract_strided_slice %0 {offsets = [0, 0, 0, 0], sizes = [4, 16, 10, 128], strides = [1, 1, 1, 1]} : vector<4x16x16x128xf32> to vector<4x16x10x128xf32>
    %2 = vector.extract_strided_slice %0 {offsets = [0, 0, 1, 0], sizes = [4, 16, 10, 128], strides = [1, 1, 1, 1]} : vector<4x16x16x128xf32> to vector<4x16x10x128xf32>
    %3 = arith.addf %1, %2 : vector<4x16x10x128xf32>
    %4 = vector.extract_strided_slice %0 {offsets = [0, 0, 2, 0], sizes = [4, 16, 10, 128], strides = [1, 1, 1, 1]} : vector<4x16x16x128xf32> to vector<4x16x10x128xf32>
    %5 = arith.addf %3, %4 : vector<4x16x10x128xf32>
    %6 = vector.extract_strided_slice %0 {offsets = [0, 0, 3, 0], sizes = [4, 16, 10, 128], strides = [1, 1, 1, 1]} : vector<4x16x16x128xf32> to vector<4x16x10x128xf32>
    %7 = arith.addf %5, %6 : vector<4x16x10x128xf32>
    %8 = vector.extract_strided_slice %0 {offsets = [0, 0, 4, 0], sizes = [4, 16, 10, 128], strides = [1, 1, 1, 1]} : vector<4x16x16x128xf32> to vector<4x16x10x128xf32>
    %9 = arith.addf %7, %8 : vector<4x16x10x128xf32>
    %10 = vector.extract_strided_slice %0 {offsets = [0, 0, 5, 0], sizes = [4, 16, 10, 128], strides = [1, 1, 1, 1]} : vector<4x16x16x128xf32> to vector<4x16x10x128xf32>
    %11 = arith.addf %9, %10 : vector<4x16x10x128xf32>
    %12 = vector.extract_strided_slice %0 {offsets = [0, 0, 6, 0], sizes = [4, 16, 10, 128], strides = [1, 1, 1, 1]} : vector<4x16x16x128xf32> to vector<4x16x10x128xf32>
    %13 = arith.addf %11, %12 : vector<4x16x10x128xf32>
    %14 = vector.extract_strided_slice %13 {offsets = [0, 0, 0, 0], sizes = [4, 10, 10, 128], strides = [1, 1, 1, 1]} : vector<4x16x10x128xf32> to vector<4x10x10x128xf32>
    %15 = vector.extract_strided_slice %13 {offsets = [0, 1, 0, 0], sizes = [4, 10, 10, 128], strides = [1, 1, 1, 1]} : vector<4x16x10x128xf32> to vector<4x10x10x128xf32>
    %16 = arith.addf %14, %15 : vector<4x10x10x128xf32>
    %17 = vector.extract_strided_slice %13 {offsets = [0, 2, 0, 0], sizes = [4, 10, 10, 128], strides = [1, 1, 1, 1]} : vector<4x16x10x128xf32> to vector<4x10x10x128xf32>
    %18 = arith.addf %16, %17 : vector<4x10x10x128xf32>
    %19 = vector.extract_strided_slice %13 {offsets = [0, 3, 0, 0], sizes = [4, 10, 10, 128], strides = [1, 1, 1, 1]} : vector<4x16x10x128xf32> to vector<4x10x10x128xf32>
    %20 = arith.addf %18, %19 : vector<4x10x10x128xf32>
    %21 = vector.extract_strided_slice %13 {offsets = [0, 4, 0, 0], sizes = [4, 10, 10, 128], strides = [1, 1, 1, 1]} : vector<4x16x10x128xf32> to vector<4x10x10x128xf32>
    %22 = arith.addf %20, %21 : vector<4x10x10x128xf32>
    %23 = vector.extract_strided_slice %13 {offsets = [0, 5, 0, 0], sizes = [4, 10, 10, 128], strides = [1, 1, 1, 1]} : vector<4x16x10x128xf32> to vector<4x10x10x128xf32>
    %24 = arith.addf %22, %23 : vector<4x10x10x128xf32>
    %25 = vector.extract_strided_slice %13 {offsets = [0, 6, 0, 0], sizes = [4, 10, 10, 128], strides = [1, 1, 1, 1]} : vector<4x16x10x128xf32> to vector<4x10x10x128xf32>
    %26 = arith.addf %24, %25 : vector<4x10x10x128xf32>
    %cst = arith.constant 0.0204081628 : f32
    %27 = vector.broadcast %cst : f32 to vector<4x10x10x128xf32>
    %28 = arith.mulf %26, %27 : vector<4x10x10x128xf32>
    %c0_3 = arith.constant 0 : index
    %c0_4 = arith.constant 0 : index
    %c0_5 = arith.constant 0 : index
    %c0_6 = arith.constant 0 : index
    %29 = vector.load %arg2[%c0_3, %c0_4, %c0_5, %c0_6] : memref<4x10x10x128xf32, #tpu.memory_space<vmem>>, vector<4x10x10x128xf32>
    tpu.vector_store %arg2[%c0_3, %c0_4, %c0_5, %c0_6], %28 {strides = array<i32>} : memref<4x10x10x128xf32, #tpu.memory_space<vmem>>, vector<4x10x10x128xf32>,
    return
  }
  func.func @transform_0(%arg0: i32) -> (i32, i32, i32, i32) {
    %c0_i32 = arith.constant 0 : i32
    %c0_i32_0 = arith.constant 0 : i32
    %c0_i32_1 = arith.constant 0 : i32
    %c0_i32_2 = arith.constant 0 : i32
    return %c0_i32, %c0_i32_0, %c0_i32_1, %arg0 : i32, i32, i32, i32
  }
  func.func @transform_1(%arg0: i32) -> (i32, i32, i32, i32) {
    %c0_i32 = arith.constant 0 : i32
    %c0_i32_0 = arith.constant 0 : i32
    %c0_i32_1 = arith.constant 0 : i32
    %c0_i32_2 = arith.constant 0 : i32
    return %c0_i32, %c0_i32_0, %c0_i32_1, %arg0 : i32, i32, i32, i32
  }
}

</mosaic_0001>

<bundles_post_ra>
// kernel: tpu_custom_call.1
= control target key start
LH: loop header
LB: loop body
LE: loop exit
PB: predicated region body
PF: predicated region fallthrough
CT: control target
= control target key end

     0   :  { %6 = vsyncpa [#allocation3], 0  ;;  %s3648_s9 = smov [#allocation2]   ;;  %s3649_s11 = smov 128   ;;  %s6560_s0 = inlined_call_operand.hbm [shape: f32[4,16,16,128], index: 0, kind: input, shape index: {}]   ;;  %s6561_s1 = inlined_call_operand.vmem [shape: f32[4,10,10,128], index: 1, kind: output, shape index: {}]  }
   0x1   :  { %s11_s8 = sshll.u32 %s6560_s0, 4  ;;  %s13_s10 = sshll.u32 %s3648_s9, 4  ;;  %s12_s8 = int_to_ptr.hbm [resolvable:$true] %s11_s8  ;;  %s14_s10 = int_to_ptr.vmem [resolvable:$true] %s13_s10 }
   0x2   :  { %s3650_s12 = smov 8  }
   0x3   :  { %19 = dma.hbm_to_vmem [thread:$0]  %s12_s8, 16384, %s14_s10, [#allocation3], %s3649_s11, %s3649_s11, %s3650_s12  }
   0x4   :  { %3646 = dma.done.wait [#allocation3], 16384  }
   0x5   :  { %3647 = vsyncadd [#allocation3], 4294950912  ;;  %v3664_v0 = vld [vmem:[#allocation2] sm:$0xff]  ;;  %v3666_v1 = vld [vmem:[#allocation2 + $0x8] sm:$0xff]  ;;  %vm280_vm0 = vcmask 1046528   ;;  %vm729_vm1 = vcmask 1045504  }
   0x6   :  { %v3668_v2 = vld [vmem:[#allocation2 + $0x10] sm:$0xff]  ;;  %v3670_v3 = vld [vmem:[#allocation2 + $0x18] sm:$0xff]  ;;  %v3672_v4 = vld [vmem:[#allocation2 + $0x20] sm:$0xff]  ;;  %v281_v6 = vrot.slane %v3664_v0, 1  ;;  %v282_v7 = vrot.slane %v3666_v1, 1  ;;  %vm1178_vm2 = vcmask 1044480  }
   0x7   :  { %v3674_v5 = vld [vmem:[#allocation2 + $0x28] sm:$0xff]  ;;  %v284_v8 = vrot.slane %v3668_v2, 1  ;;  %v3679_v9 = vld [vmem:[#allocation2 + $0x30] sm:$0xff]  ;;  %v3681_v10 = vld [vmem:[#allocation2 + $0x38] sm:$0xff]  ;;  %v285_v12 = vrot.slane %v3670_v3, 1  ;;  %v287_v13 = vrot.slane %v3672_v4, 1 }
   0x8   :  { %v3683_v11 = vld [vmem:[#allocation2 + $0x40] sm:$0xff]  ;;  %v288_v14 = vrot.slane %v3674_v5, 1  ;;  %v3688_v15 = vld [vmem:[#allocation2 + $0x48] sm:$0xff]  ;;  %v3690_v16 = vld [vmem:[#allocation2 + $0x50] sm:$0xff]  ;;  %v283_v18 = vsel %vm280_vm0, %v281_v6, %v282_v7  ;;  %v290_v19 = vrot.slane %v3679_v9, 1  ;;  %v291_v20 = vrot.slane %v3681_v10, 1 }
   0x9   :  { %v3692_v17 = vld [vmem:[#allocation2 + $0x58] sm:$0xff]  ;;  %v293_v21 = vrot.slane %v3683_v11, 1  ;;  %v3700_v22 = vld [vmem:[#allocation2 + $0x60] sm:$0xff]  ;;  %v3702_v23 = vld [vmem:[#allocation2 + $0x68] sm:$0xff]  ;;  %v286_v24 = vsel %vm280_vm0, %v284_v8, %v285_v12  ;;  %v294_v26 = vrot.slane %v3688_v15, 1  ;;  %v296_v27 = vrot.slane %v3690_v16, 1 }
   0xa   :  { %v289_v25 = vsel %vm280_vm0, %v287_v13, %v288_v14  ;;  %v292_v28 = vsel %vm280_vm0, %v290_v19, %v291_v20  ;;  %v297_v29 = vrot.slane %v3692_v17, 1  ;;  %v299_v30 = vrot.slane %v3700_v22, 1 }
   0xb   :  { %v300_v31 = vrot.slane %v3702_v23, 1  ;;  %v295_v32 = vsel %vm280_vm0, %v293_v21, %v294_v26  ;;  %v601_v33 = vadd.f32 %v283_v18, %v3664_v0  ;;  %v603_v34 = vadd.f32 %v286_v24, %v3668_v2 }
   0xc   :  { %v605_v35 = vadd.f32 %v289_v25, %v3672_v4  ;;  %v298_v36 = vsel %vm280_vm0, %v296_v27, %v297_v29  ;;  %v607_v38 = vadd.f32 %v292_v28, %v3679_v9  ;;  %v609_v39 = vadd.f32 %v295_v32, %v3683_v11 }
   0xd   :  { %v301_v37 = vsel %vm280_vm0, %v299_v30, %v300_v31  ;;  %v611_v40 = vadd.f32 %v298_v36, %v3690_v16  ;;  %v730_v42 = vrot.slane %v3664_v0, 2  ;;  %v731_v43 = vrot.slane %v3666_v1, 2 }
   0xe   :  { %v613_v41 = vadd.f32 %v301_v37, %v3700_v22  ;;  %v733_v44 = vrot.slane %v3668_v2, 2  ;;  %v734_v45 = vrot.slane %v3670_v3, 2  ;;  %v736_v46 = vrot.slane %v3672_v4, 2 }
   0xf   :  { %v737_v47 = vrot.slane %v3674_v5, 2  ;;  %v732_v48 = vsel %vm729_vm1, %v730_v42, %v731_v43  ;;  %v739_v49 = vrot.slane %v3679_v9, 2  ;;  %v740_v50 = vrot.slane %v3681_v10, 2 }
  0x10   :  { %v742_v51 = vrot.slane %v3683_v11, 2  ;;  %v735_v52 = vsel %vm729_vm1, %v733_v44, %v734_v45  ;;  %v743_v54 = vrot.slane %v3688_v15, 2  ;;  %v745_v55 = vrot.slane %v3690_v16, 2 }
  0x11   :  { %v738_v53 = vsel %vm729_vm1, %v736_v46, %v737_v47  ;;  %v741_v56 = vsel %vm729_vm1, %v739_v49, %v740_v50  ;;  %v746_v57 = vrot.slane %v3692_v17, 2  ;;  %v748_v58 = vrot.slane %v3700_v22, 2 }
  0x12   :  { %v749_v59 = vrot.slane %v3702_v23, 2  ;;  %v744_v60 = vsel %vm729_vm1, %v742_v51, %v743_v54  ;;  %v1050_v61 = vadd.f32 %v732_v48, %v601_v33  ;;  %v1052_v62 = vadd.f32 %v735_v52, %v603_v34 }
  0x13   :  { %v1054_v63 = vadd.f32 %v738_v53, %v605_v35  ;;  %vm1627_vm3 = vcmask 1043456   ;;  %v747_v6 = vsel %vm729_vm1, %v745_v55, %v746_v57  ;;  %v1056_v13 = vadd.f32 %v741_v56, %v607_v38 }
  0x14   :  { %v750_v8 = vsel %vm729_vm1, %v748_v58, %v749_v59  ;;  %v1058_v18 = vadd.f32 %v744_v60, %v609_v39  ;;  %v1060_v19 = vadd.f32 %v747_v6, %v611_v40  ;;  %v1179_v24 = vrot.slane %v3664_v0, 3 }
  0x15   :  { %v1062_v21 = vadd.f32 %v750_v8, %v613_v41  ;;  %v1180_v25 = vrot.slane %v3666_v1, 3  ;;  %v1182_v27 = vrot.slane %v3668_v2, 3  ;;  %v1183_v28 = vrot.slane %v3670_v3, 3 }
  0x16   :  { %v1185_v30 = vrot.slane %v3672_v4, 3  ;;  %v1186_v32 = vrot.slane %v3674_v5, 3  ;;  %v1188_v34 = vrot.slane %v3679_v9, 3  ;;  %v1189_v35 = vrot.slane %v3681_v10, 3 }
  0x17   :  { %v1181_v33 = vsel %vm1178_vm2, %v1179_v24, %v1180_v25  ;;  %v1191_v36 = vrot.slane %v3683_v11, 3  ;;  %v1184_v37 = vsel %vm1178_vm2, %v1182_v27, %v1183_v28  ;;  %v1192_v39 = vrot.slane %v3688_v15, 3 }
  0x18   :  { %v1187_v38 = vsel %vm1178_vm2, %v1185_v30, %v1186_v32  ;;  %v1194_v40 = vrot.slane %v3690_v16, 3  ;;  %v1190_v41 = vsel %vm1178_vm2, %v1188_v34, %v1189_v35  ;;  %v1195_v42 = vrot.slane %v3692_v17, 3 }
  0x19   :  { %v1197_v44 = vrot.slane %v3700_v22, 3  ;;  %v1198_v46 = vrot.slane %v3702_v23, 3  ;;  %v1193_v48 = vsel %vm1178_vm2, %v1191_v36, %v1192_v39  ;;  %v1499_v49 = vadd.f32 %v1181_v33, %v1050_v61 }
  0x1a   :  { %v1501_v51 = vadd.f32 %v1184_v37, %v1052_v62  ;;  %v1503_v52 = vadd.f32 %v1187_v38, %v1054_v63  ;;  %vm2076_vm4 = vcmask 1042432   ;;  %v1196_v53 = vsel %vm1178_vm2, %v1194_v40, %v1195_v42 }
  0x1b   :  { %v1199_v55 = vsel %vm1178_vm2, %v1197_v44, %v1198_v46  ;;  %v1505_v56 = vadd.f32 %v1190_v41, %v1056_v13  ;;  %v1507_v58 = vadd.f32 %v1193_v48, %v1058_v18  ;;  %v1509_v60 = vadd.f32 %v1196_v53, %v1060_v19 }
  0x1c   :  { %v1511_v6 = vadd.f32 %v1199_v55, %v1062_v21  ;;  %v1628_v8 = vrot.slane %v3664_v0, 4  ;;  %v6565_v24 = vrot.slane %v3666_v1, 4  ;;  %v1631_v61 = vrot.slane %v3668_v2, 4 }
  0x1d   :  { %v6564_v62 = vrot.slane %v3670_v3, 4  ;;  %v1634_v63 = vrot.slane %v3672_v4, 4  ;;  %v6563_v27 = vrot.slane %v3674_v5, 4  ;;  %v1637_v13 = vrot.slane %v3679_v9, 4 }
  0x1e   :  { %v1630_v30 = vsel %vm1627_vm3, %v1628_v8, %v6565_v24  ;;  %v6562_v18 = vrot.slane %v3681_v10, 4  ;;  %v1640_v19 = vrot.slane %v3683_v11, 4  ;;  %v1641_v34 = vrot.slane %v3688_v15, 4 }
  0x1f   :  { %v1633_v21 = vsel %vm1627_vm3, %v1631_v61, %v6564_v62  ;;  %v1636_v33 = vsel %vm1627_vm3, %v1634_v63, %v6563_v27  ;;  %v1643_v36 = vrot.slane %v3690_v16, 4  ;;  %v6571_v38 = vrot.slane %v3692_v17, 4 }
  0x20   :  { %v1639_v37 = vsel %vm1627_vm3, %v1637_v13, %v6562_v18  ;;  %v1646_v40 = vrot.slane %v3700_v22, 4  ;;  %v6570_v41 = vrot.slane %v3702_v23, 4  ;;  %v1642_v44 = vsel %vm1627_vm3, %v1640_v19, %v1641_v34 }
  0x21   :  { %v1948_v48 = vadd.f32 %v1630_v30, %v1499_v49  ;;  %v1950_v53 = vadd.f32 %v1633_v21, %v1501_v51  ;;  %v1952_v55 = vadd.f32 %v1636_v33, %v1503_v52  ;;  %v1645_v8 = vsel %vm1627_vm3, %v1643_v36, %v6571_v38 }
  0x22   :  { %v1648_v61 = vsel %vm1627_vm3, %v1646_v40, %v6570_v41  ;;  %v1954_v63 = vadd.f32 %v1639_v37, %v1505_v56  ;;  %v1956_v13 = vadd.f32 %v1642_v44, %v1507_v58  ;;  %v1958_v18 = vadd.f32 %v1645_v8, %v1509_v60 }
  0x23   :  { %v1960_v27 = vadd.f32 %v1648_v61, %v1511_v6  ;;  %v2077_v62 = vrot.slane %v3664_v0, 5  ;;  %v6569_v24 = vrot.slane %v3666_v1, 5  ;;  %v2080_v49 = vrot.slane %v3668_v2, 5 }
  0x24   :  { %v6568_v51 = vrot.slane %v3670_v3, 5  ;;  %v2083_v52 = vrot.slane %v3672_v4, 5  ;;  %v6566_v30 = vrot.slane %v3674_v5, 5  ;;  %v2086_v56 = vrot.slane %v3679_v9, 5 }
  0x25   :  { %v2079_v19 = vsel %vm2076_vm4, %v2077_v62, %v6569_v24  ;;  %v6567_v58 = vrot.slane %v3681_v10, 5  ;;  %v2089_v60 = vrot.slane %v3683_v11, 5  ;;  %v2090_v33 = vrot.slane %v3688_v15, 5 }
  0x26   :  { %v2082_v6 = vsel %vm2076_vm4, %v2080_v49, %v6568_v51  ;;  %v2085_v21 = vsel %vm2076_vm4, %v2083_v52, %v6566_v30  ;;  %v2092_v36 = vrot.slane %v3690_v16, 5  ;;  %v2093_v37 = vrot.slane %v3692_v17, 5 }
  0x27   :  { %v2088_v62 = vsel %vm2076_vm4, %v2086_v56, %v6567_v58  ;;  %v2095_v40 = vrot.slane %v3700_v22, 5  ;;  %v2096_v44 = vrot.slane %v3702_v23, 5  ;;  %v2091_v8 = vsel %vm2076_vm4, %v2089_v60, %v2090_v33 }
  0x28   :  { %v2397_v61 = vadd.f32 %v2079_v19, %v1948_v48  ;;  %v2399_v49 = vadd.f32 %v2082_v6, %v1950_v53  ;;  %v2401_v52 = vadd.f32 %v2085_v21, %v1952_v55  ;;  %v2094_v30 = vsel %vm2076_vm4, %v2092_v36, %v2093_v37 }
  0x29   :  { %v2097_v56 = vsel %vm2076_vm4, %v2095_v40, %v2096_v44  ;;  %v2403_v58 = vadd.f32 %v2088_v62, %v1954_v63  ;;  %v2405_v51 = vadd.f32 %v2091_v8, %v1956_v13  ;;  %v2407_v24 = vadd.f32 %v2094_v30, %v1958_v18 }
  0x2a   :  { %v2409_v41 = vadd.f32 %v2097_v56, %v1960_v27  ;;  %vm2525_vm5 = vcmask 1041408   ;;  %v2526_v38 = vrot.slane %v3664_v0, 6  ;;  %v2527_v60 = vrot.slane %v3666_v1, 6 }
  0x2b   :  { %v2529_v48 = vrot.slane %v3668_v2, 6  ;;  %v2530_v53 = vrot.slane %v3670_v3, 6  ;;  %v2532_v55 = vrot.slane %v3672_v4, 6  ;;  %v2533_v19 = vrot.slane %v3674_v5, 6 }
  0x2c   :  { %v2535_v6 = vrot.slane %v3679_v9, 6  ;;  %v2536_v63 = vrot.slane %v3681_v10, 6  ;;  %v2538_v18 = vrot.slane %v3683_v11, 6  ;;  %v2528_v0 = vsel %vm2525_vm5, %v2526_v38, %v2527_v60 }
  0x2d   :  { %v2531_v2 = vsel %vm2525_vm5, %v2529_v48, %v2530_v53  ;;  %v2539_v27 = vrot.slane %v3688_v15, 6  ;;  %v2541_v4 = vrot.slane %v3690_v16, 6  ;;  %v2534_v9 = vsel %vm2525_vm5, %v2532_v55, %v2533_v19 }
  0x2e   :  { %v2537_v11 = vsel %vm2525_vm5, %v2535_v6, %v2536_v63  ;;  %v2542_v13 = vrot.slane %v3692_v17, 6  ;;  %v2544_v38 = vrot.slane %v3700_v22, 6  ;;  %v2545_v21 = vrot.slane %v3702_v23, 6 }
  0x2f   :  { %v2540_v30 = vsel %vm2525_vm5, %v2538_v18, %v2539_v27  ;;  %v2846_v36 = vadd.f32 %v2528_v0, %v2397_v61  ;;  %v3903_v16 = vadd.f32 %v2531_v2, %v2399_v49  ;;  %v3906_v40 = vadd.f32 %v2534_v9, %v2401_v52 }
  0x30   :  { %v2543_v62 = vsel %vm2525_vm5, %v2541_v4, %v2542_v13  ;;  %v3908_v8 = vadd.f32 %v2537_v11, %v2403_v58  ;;  %v3910_v56 = vadd.f32 %v2540_v30, %v2405_v51  ;;  %v2546_v48 = vsel %vm2525_vm5, %v2544_v38, %v2545_v21 }
  0x31   :  { %v3913_v22 = vadd.f32 %v2543_v62, %v2407_v24  ;;  %v2974_v55 = vadd.f32 %v3903_v16, %v2846_v36  ;;  %v602_v61 = vadd.f32 %v282_v7, %v3666_v1  ;;  %v3919_v49 = vadd.f32 %v2546_v48, %v2409_v41 }
  0x32   :  { %v604_v52 = vadd.f32 %v285_v12, %v3670_v3  ;;  %v606_v51 = vadd.f32 %v288_v14, %v3674_v5  ;;  %v608_v24 = vadd.f32 %v291_v20, %v3681_v10  ;;  %v610_v7 = vadd.f32 %v294_v26, %v3688_v15 }
  0x33   :  { %v3054_v58 = vadd.f32 %v2974_v55, %v3906_v40  ;;  %v612_v41 = vadd.f32 %v297_v29, %v3692_v17  ;;  %v614_v12 = vadd.f32 %v300_v31, %v3702_v23  ;;  %v1051_v14 = vadd.f32 %v731_v43, %v602_v61 }
  0x34   :  { %v1053_v20 = vadd.f32 %v734_v45, %v604_v52  ;;  %v1055_v6 = vadd.f32 %v737_v47, %v606_v51  ;;  %v1057_v26 = vadd.f32 %v740_v50, %v608_v24  ;;  %v1059_v29 = vadd.f32 %v743_v54, %v610_v7 }
  0x35   :  { %v3134_v18 = vadd.f32 %v3054_v58, %v3908_v8  ;;  %v1061_v31 = vadd.f32 %v746_v57, %v612_v41  ;;  %v1063_v43 = vadd.f32 %v749_v59, %v614_v12  ;;  %v1500_v45 = vadd.f32 %v1180_v25, %v1051_v14 }
  0x36   :  { %v1502_v47 = vadd.f32 %v1183_v28, %v1053_v20  ;;  %v1504_v50 = vadd.f32 %v1186_v32, %v1055_v6  ;;  %v1506_v0 = vadd.f32 %v1189_v35, %v1057_v26  ;;  %v1508_v57 = vadd.f32 %v1192_v39, %v1059_v29  ;;  %v38_v20 = vld [vmem:[#allocation2 + $0x70] sm:$0xff]  ;;  %v4000_v6 = vld [vmem:[#allocation2 + $0x78] sm:$0xff] }
  0x37   :  { %v3214_v54 = vadd.f32 %v3134_v18, %v3910_v56  ;;  %v1510_v59 = vadd.f32 %v1195_v42, %v1061_v31  ;;  %v1512_v25 = vadd.f32 %v1198_v46, %v1063_v43  ;;  %v6602_v2 = vrot.slane %v3666_v1, 4 }
  0x38   :  { %v6603_v4 = vrot.slane %v3670_v3, 4  ;;  %v6604_v9 = vrot.slane %v3674_v5, 4  ;;  %v6605_v11 = vrot.slane %v3681_v10, 4  ;;  %v1957_v42 = vadd.f32 %v1641_v34, %v1508_v57 }
  0x39   :  { %v1949_v28 = vadd.f32 %v6602_v2, %v1500_v45  ;;  %v3294_v39 = vadd.f32 %v3214_v54, %v3913_v22  ;;  %v6606_v30 = vrot.slane %v3692_v17, 4  ;;  %v6607_v36 = vrot.slane %v3702_v23, 4 }
  0x3a   :  { %v1951_v32 = vadd.f32 %v6603_v4, %v1502_v47  ;;  %v1953_v35 = vadd.f32 %v6604_v9, %v1504_v50  ;;  %v1955_v38 = vadd.f32 %v6605_v11, %v1506_v0  ;;  %v6608_v48 = vrot.slane %v3666_v1, 5  ;;  %v4034_v50 = vld [vmem:[#allocation2 + $0x80] sm:$0xff] }
  0x3b   :  { %v1959_v46 = vadd.f32 %v6606_v30, %v1510_v59  ;;  %v1961_v62 = vadd.f32 %v6607_v36, %v1512_v25  ;;  %v6609_v61 = vrot.slane %v3670_v3, 5  ;;  %v6610_v51 = vrot.slane %v3674_v5, 5  ;;  %v4039_v25 = vld [vmem:[#allocation2 + $0x88] sm:$0xff] }
  0x3c   :  { %v2398_v55 = vadd.f32 %v6608_v48, %v1949_v28  ;;  %v6611_v58 = vrot.slane %v3681_v10, 5  ;;  %v3374_v34 = vadd.f32 %v3294_v39, %v3919_v49  ;;  %v2406_v41 = vadd.f32 %v2090_v33, %v1957_v42 }
  0x3d   :  { %v2400_v52 = vadd.f32 %v6609_v61, %v1951_v32  ;;  %v2402_v24 = vadd.f32 %v6610_v51, %v1953_v35  ;;  %v2408_v12 = vadd.f32 %v2093_v37, %v1959_v46  ;;  %v2410_v14 = vadd.f32 %v2096_v44, %v1961_v62 }
  0x3e   :  { %v2404_v7 = vadd.f32 %v6611_v58, %v1955_v38  ;;  %v2847_v26 = vadd.f32 %v2527_v60, %v2398_v55  ;;  %v3454_v33 = vmul.f32 0.020408163, %v3374_v34  ;;  %v4016_v23 = vadd.f32 %v2539_v27, %v2406_v41 }
  0x3f   :  { %v2849_v18 = vadd.f32 %v2530_v53, %v2400_v52  ;;  %v4008_v29 = vadd.f32 %v2533_v19, %v2402_v24  ;;  %v4018_v37 = vadd.f32 %v2542_v13, %v2408_v12  ;;  %v4020_v1 = vadd.f32 %v2545_v21, %v2410_v14 }
  0x40   :  { %v4012_v17 = vadd.f32 %v2536_v63, %v2404_v7  ;;  %v302_v3 = vrot.slane %v38_v20, 1  ;;  %v303_v60 = vrot.slane %v4000_v6, 1  ;;  %v751_v5 = vrot.slane %v38_v20, 2  ;;  %3534 = vst [vmem:[%s6561_s1] sm:$0xff] %v3454_v33 }
  0x41   :  { %v2975_v44 = vadd.f32 %v2849_v18, %v2847_v26  ;;  %v752_v10 = vrot.slane %v4000_v6, 2  ;;  %v1200_v53 = vrot.slane %v38_v20, 3  ;;  %v1201_v15 = vrot.slane %v4000_v6, 3 }
  0x42   :  { %v1649_v19 = vrot.slane %v38_v20, 4  ;;  %v304_v27 = vsel %vm280_vm0, %v302_v3, %v303_v60  ;;  %v1650_v13 = vrot.slane %v4000_v6, 4  ;;  %v2098_v21 = vrot.slane %v38_v20, 5 }
  0x43   :  { %v3055_v63 = vadd.f32 %v2975_v44, %v4008_v29  ;;  %v615_v31 = vadd.f32 %v304_v27, %v38_v20  ;;  %v753_v43 = vsel %vm729_vm1, %v751_v5, %v752_v10  ;;  %v1202_v45 = vsel %vm1178_vm2, %v1200_v53, %v1201_v15 }
  0x44   :  { %v2099_v47 = vrot.slane %v4000_v6, 5  ;;  %v1651_v54 = vsel %vm1627_vm3, %v1649_v19, %v1650_v13  ;;  %v2547_v57 = vrot.slane %v38_v20, 6  ;;  %v2548_v59 = vrot.slane %v4000_v6, 6 }
  0x45   :  { %v3135_v0 = vadd.f32 %v3055_v63, %v4012_v17  ;;  %v1064_v2 = vadd.f32 %v753_v43, %v615_v31  ;;  %v2976_v4 = vadd.f32 %v3906_v40, %v3903_v16  ;;  %v616_v32 = vadd.f32 %v303_v60, %v4000_v6 }
  0x46   :  { %v2100_v28 = vsel %vm2076_vm4, %v2098_v21, %v2099_v47  ;;  %v2549_v35 = vsel %vm2525_vm5, %v2547_v57, %v2548_v59  ;;  %v2977_v11 = vadd.f32 %v4008_v29, %v2849_v18  ;;  %v305_v38 = vrot.slane %v4034_v50, 1 }
  0x47   :  { %v3215_v9 = vadd.f32 %v3135_v0, %v4016_v23  ;;  %v1513_v39 = vadd.f32 %v1202_v45, %v1064_v2  ;;  %v3056_v42 = vadd.f32 %v2976_v4, %v3908_v8  ;;  %v1065_v30 = vadd.f32 %v752_v10, %v616_v32  ;;  %v42_v0 = vld [vmem:[#allocation2 + $0x90] sm:$0xff] }
  0x48   :  { %v306_v46 = vrot.slane %v4039_v25, 1  ;;  %v3057_v16 = vadd.f32 %v2977_v11, %v4012_v17  ;;  %v754_v62 = vrot.slane %v4034_v50, 2  ;;  %v755_v48 = vrot.slane %v4039_v25, 2 }
  0x49   :  { %v3295_v36 = vadd.f32 %v3215_v9, %v4018_v37  ;;  %v1962_v55 = vadd.f32 %v1651_v54, %v1513_v39  ;;  %v3136_v61 = vadd.f32 %v3056_v42, %v3910_v56  ;;  %v1514_v52 = vadd.f32 %v1201_v15, %v1065_v30  ;;  %v4085_v54 = vld [vmem:[#allocation2 + $0x98] sm:$0xff] }
  0x4a   :  { %v307_v51 = vsel %vm280_vm0, %v305_v38, %v306_v46  ;;  %v3137_v58 = vadd.f32 %v3057_v16, %v4016_v23  ;;  %v756_v34 = vsel %vm729_vm1, %v754_v62, %v755_v48  ;;  %v1203_v20 = vrot.slane %v4034_v50, 3 }
  0x4b   :  { %v3375_v24 = vadd.f32 %v3295_v36, %v4020_v1  ;;  %v617_v7 = vadd.f32 %v307_v51, %v4034_v50  ;;  %v2411_v41 = vadd.f32 %v2100_v28, %v1962_v55  ;;  %v3216_v12 = vadd.f32 %v3136_v61, %v3913_v22 }
  0x4c   :  { %v1963_v14 = vadd.f32 %v1650_v13, %v1514_v52  ;;  %v3217_v26 = vadd.f32 %v3137_v58, %v4018_v37  ;;  %v1204_v33 = vrot.slane %v4039_v25, 3  ;;  %v1652_v5 = vrot.slane %v4034_v50, 4 }
  0x4d   :  { %v3455_v6 = vmul.f32 0.020408163, %v3375_v24  ;;  %v1066_v18 = vadd.f32 %v756_v34, %v617_v7  ;;  %v4065_v44 = vadd.f32 %v2549_v35, %v2411_v41  ;;  %v3296_v3 = vadd.f32 %v3216_v12, %v3919_v49 }
  0x4e   :  { %v2412_v60 = vadd.f32 %v2099_v47, %v1963_v14  ;;  %v3297_v10 = vadd.f32 %v3217_v26, %v4020_v1  ;;  %v1205_v53 = vsel %vm1178_vm2, %v1203_v20, %v1204_v33  ;;  %v1653_v15 = vrot.slane %v4039_v25, 4 }
  0x4f   :  { %3535 = vst [vmem:[%s6561_s1 + $0x8] sm:$0x3] %v3455_v6  ;;  %v2101_v19 = vrot.slane %v4034_v50, 5  ;;  %v3376_v63 = vadd.f32 %v3296_v3, %v4065_v44  ;;  %v1515_v13 = vadd.f32 %v1205_v53, %v1066_v18  ;;  %v2102_v21 = vrot.slane %v4039_v25, 5 }
  0x50   :  { %v4077_v27 = vadd.f32 %v2548_v59, %v2412_v60  ;;  %v1654_v31 = vsel %vm1627_vm3, %v1652_v5, %v1653_v15  ;;  %v2550_v43 = vrot.slane %v4034_v50, 6  ;;  %v2551_v45 = vrot.slane %v4039_v25, 6  ;;  %v44_v5 = vld [vmem:[#allocation2 + $0xa0] sm:$0xff] }
  0x51   :  { %v2978_v47 = vadd.f32 %v3908_v8, %v3906_v40  ;;  %v3456_v57 = vmul.f32 0.020408163, %v3376_v63  ;;  %v1964_v59 = vadd.f32 %v1654_v31, %v1515_v13  ;;  %v2103_v28 = vsel %vm2076_vm4, %v2101_v19, %v2102_v21  ;;  %v4123_v63 = vld [vmem:[#allocation2 + $0xa8] sm:$0xff] }
  0x52   :  { %v3377_v2 = vadd.f32 %v3297_v10, %v4077_v27  ;;  %v2552_v4 = vsel %vm2525_vm5, %v2550_v43, %v2551_v45  ;;  %v618_v50 = vadd.f32 %v306_v46, %v4039_v25  ;;  %v2979_v9 = vadd.f32 %v4012_v17, %v4008_v29 }
  0x53   :  { %v3058_v32 = vadd.f32 %v2978_v47, %v3910_v56  ;;  %3536 = vst [vmem:[%s6561_s1 + $0x10] sm:$0xff] %v3456_v57  ;;  %v2413_v35 = vadd.f32 %v2103_v28, %v1964_v59  ;;  %v308_v11 = vrot.slane %v42_v0, 1  ;;  %v309_v38 = vrot.slane %v4085_v54, 1 }
  0x54   :  { %v3457_v40 = vmul.f32 0.020408163, %v3377_v2  ;;  %v1067_v42 = vadd.f32 %v755_v48, %v618_v50  ;;  %v3059_v30 = vadd.f32 %v2979_v9, %v4016_v23  ;;  %v757_v36 = vrot.slane %v42_v0, 2 }
  0x55   :  { %v3138_v39 = vadd.f32 %v3058_v32, %v3913_v22  ;;  %v4103_v29 = vadd.f32 %v2552_v4, %v2413_v35  ;;  %v310_v25 = vsel %vm280_vm0, %v308_v11, %v309_v38  ;;  %v758_v46 = vrot.slane %v4085_v54, 2 }
  0x56   :  { %3537 = vst [vmem:[%s6561_s1 + $0x18] sm:$0x3] %v3457_v40  ;;  %v1206_v16 = vrot.slane %v42_v0, 3  ;;  %v1516_v55 = vadd.f32 %v1204_v33, %v1067_v42  ;;  %v3139_v61 = vadd.f32 %v3059_v30, %v4018_v37  ;;  %v619_v48 = vadd.f32 %v310_v25, %v42_v0 }
  0x57   :  { %v3218_v62 = vadd.f32 %v3138_v39, %v3919_v49  ;;  %v759_v52 = vsel %vm729_vm1, %v757_v36, %v758_v46  ;;  %v1207_v51 = vrot.slane %v4085_v54, 3  ;;  %v1655_v24 = vrot.slane %v42_v0, 4 }
  0x58   :  { %v1656_v58 = vrot.slane %v4085_v54, 4  ;;  %v1965_v34 = vadd.f32 %v1653_v15, %v1516_v55  ;;  %v3219_v41 = vadd.f32 %v3139_v61, %v4020_v1  ;;  %v1068_v12 = vadd.f32 %v759_v52, %v619_v48 }
  0x59   :  { %v3298_v7 = vadd.f32 %v3218_v62, %v4065_v44  ;;  %v1208_v14 = vsel %vm1178_vm2, %v1206_v16, %v1207_v51  ;;  %v2104_v6 = vrot.slane %v42_v0, 5  ;;  %v2105_v26 = vrot.slane %v4085_v54, 5 }
  0x5a   :  { %v1657_v20 = vsel %vm1627_vm3, %v1655_v24, %v1656_v58  ;;  %v2414_v33 = vadd.f32 %v2102_v21, %v1965_v34  ;;  %v3299_v3 = vadd.f32 %v3219_v41, %v4077_v27  ;;  %v1517_v60 = vadd.f32 %v1208_v14, %v1068_v12  ;;  %v46_v12 = vld [vmem:[#allocation2 + $0xb0] sm:$0xff] }
  0x5b   :  { %v3378_v18 = vadd.f32 %v3298_v7, %v4103_v29  ;;  %v2106_v10 = vsel %vm2076_vm4, %v2104_v6, %v2105_v26  ;;  %v2553_v53 = vrot.slane %v42_v0, 6  ;;  %v2554_v15 = vrot.slane %v4085_v54, 6 }
  0x5c   :  { %v2980_v19 = vadd.f32 %v3910_v56, %v3908_v8  ;;  %v4125_v31 = vadd.f32 %v2551_v45, %v2414_v33  ;;  %v1966_v43 = vadd.f32 %v1657_v20, %v1517_v60  ;;  %v620_v21 = vadd.f32 %v309_v38, %v4085_v54 }
  0x5d   :  { %v3458_v13 = vmul.f32 0.020408163, %v3378_v18  ;;  %v2555_v47 = vsel %vm2525_vm5, %v2553_v53, %v2554_v15  ;;  %v2981_v0 = vadd.f32 %v4016_v23, %v4012_v17  ;;  %v311_v2 = vrot.slane %v44_v5, 1  ;;  %v4162_v18 = vld [vmem:[#allocation2 + $0xb8] sm:$0xff] }
  0x5e   :  { %v3060_v57 = vadd.f32 %v2980_v19, %v3913_v22  ;;  %v3379_v8 = vadd.f32 %v3299_v3, %v4125_v31  ;;  %v2415_v59 = vadd.f32 %v2106_v10, %v1966_v43  ;;  %v1069_v45 = vadd.f32 %v758_v46, %v620_v21 }
  0x5f   :  { %3538 = vst [vmem:[%s6561_s1 + $0x20] sm:$0xff] %v3458_v13  ;;  %v312_v28 = vrot.slane %v4123_v63, 1  ;;  %v3061_v4 = vadd.f32 %v2981_v0, %v4018_v37  ;;  %v760_v32 = vrot.slane %v44_v5, 2  ;;  %v761_v50 = vrot.slane %v4123_v63, 2 }
  0x60   :  { %v3140_v54 = vadd.f32 %v3060_v57, %v3919_v49  ;;  %v3459_v9 = vmul.f32 0.020408163, %v3379_v8  ;;  %v4140_v17 = vadd.f32 %v2555_v47, %v2415_v59  ;;  %v1518_v40 = vadd.f32 %v1207_v51, %v1069_v45 }
  0x61   :  { %v313_v35 = vsel %vm280_vm0, %v311_v2, %v312_v28  ;;  %v3141_v38 = vadd.f32 %v3061_v4, %v4020_v1  ;;  %v762_v42 = vsel %vm729_vm1, %v760_v32, %v761_v50  ;;  %v1209_v36 = vrot.slane %v44_v5, 3 }
  0x62   :  { %v3220_v11 = vadd.f32 %v3140_v54, %v4065_v44  ;;  %v621_v39 = vadd.f32 %v313_v35, %v44_v5  ;;  %3539 = vst [vmem:[%s6561_s1 + $0x28] sm:$0x3] %v3459_v9  ;;  %v1967_v30 = vadd.f32 %v1656_v58, %v1518_v40  ;;  %v1210_v25 = vrot.slane %v4123_v63, 3 }
  0x63   :  { %v1658_v46 = vrot.slane %v44_v5, 4  ;;  %v3221_v62 = vadd.f32 %v3141_v38, %v4077_v27  ;;  %v1659_v61 = vrot.slane %v4123_v63, 4  ;;  %v2107_v51 = vrot.slane %v44_v5, 5 }
  0x64   :  { %v3300_v16 = vadd.f32 %v3220_v11, %v4103_v29  ;;  %v1070_v55 = vadd.f32 %v762_v42, %v621_v39  ;;  %v2416_v48 = vadd.f32 %v2105_v26, %v1967_v30  ;;  %v1211_v52 = vsel %vm1178_vm2, %v1209_v36, %v1210_v25 }
  0x65   :  { %v2108_v24 = vrot.slane %v4123_v63, 5  ;;  %v3301_v58 = vadd.f32 %v3221_v62, %v4125_v31  ;;  %v1660_v41 = vsel %vm1627_vm3, %v1658_v46, %v1659_v61  ;;  %v2556_v6 = vrot.slane %v44_v5, 6 }
  0x66   :  { %v3380_v7 = vadd.f32 %v3300_v16, %v4140_v17  ;;  %v1519_v34 = vadd.f32 %v1211_v52, %v1070_v55  ;;  %v4158_v14 = vadd.f32 %v2554_v15, %v2416_v48  ;;  %v2557_v26 = vrot.slane %v4123_v63, 6 }
  0x67   :  { %v2109_v20 = vsel %vm2076_vm4, %v2107_v51, %v2108_v24  ;;  %v2982_v60 = vadd.f32 %v3913_v22, %v3910_v56  ;;  %v622_v10 = vadd.f32 %v312_v28, %v4123_v63  ;;  %v2983_v15 = vadd.f32 %v4018_v37, %v4016_v23 }
  0x68   :  { %v3460_v33 = vmul.f32 0.020408163, %v3380_v7  ;;  %v1968_v3 = vadd.f32 %v1660_v41, %v1519_v34  ;;  %v3381_v53 = vadd.f32 %v3301_v58, %v4158_v14  ;;  %v2558_v19 = vsel %vm2525_vm5, %v2556_v6, %v2557_v26 }
  0x69   :  { %v314_v13 = vrot.slane %v46_v12, 1  ;;  %v3062_v43 = vadd.f32 %v2982_v60, %v3919_v49  ;;  %v1071_v21 = vadd.f32 %v761_v50, %v622_v10  ;;  %v315_v56 = vrot.slane %v4162_v18, 1 }
  0x6a   :  { %3540 = vst [vmem:[%s6561_s1 + $0x30] sm:$0xff] %v3460_v33  ;;  %v2417_v5 = vadd.f32 %v2109_v20, %v1968_v3  ;;  %v3461_v47 = vmul.f32 0.020408163, %v3381_v53  ;;  %v3063_v63 = vadd.f32 %v2983_v15, %v4020_v1  ;;  %v763_v57 = vrot.slane %v46_v12, 2  ;;  %v4206_v20 = vld [vmem:[#allocation2 + $0xc8] sm:$0xff] }
  0x6b   :  { %v764_v0 = vrot.slane %v4162_v18, 2  ;;  %v3142_v23 = vadd.f32 %v3062_v43, %v4065_v44  ;;  %v1520_v8 = vadd.f32 %v1210_v25, %v1071_v21  ;;  %v316_v59 = vsel %vm280_vm0, %v314_v13, %v315_v56 }
  0x6c   :  { %v4178_v2 = vadd.f32 %v2558_v19, %v2417_v5  ;;  %3541 = vst [vmem:[%s6561_s1 + $0x38] sm:$0x3] %v3461_v47  ;;  %v3143_v45 = vadd.f32 %v3063_v63, %v4077_v27  ;;  %v623_v28 = vadd.f32 %v316_v59, %v46_v12  ;;  %v1212_v4 = vrot.slane %v46_v12, 3 }
  0x6d   :  { %v765_v54 = vsel %vm729_vm1, %v763_v57, %v764_v0  ;;  %v3222_v32 = vadd.f32 %v3142_v23, %v4103_v29  ;;  %v1969_v50 = vadd.f32 %v1659_v61, %v1520_v8  ;;  %v1213_v9 = vrot.slane %v4162_v18, 3  ;;  %v48_v61 = vld [vmem:[#allocation2 + $0xc0] sm:$0xff] }
  0x6e   :  { %v1661_v40 = vrot.slane %v46_v12, 4  ;;  %v3223_v35 = vadd.f32 %v3143_v45, %v4125_v31  ;;  %v1072_v11 = vadd.f32 %v765_v54, %v623_v28  ;;  %v1662_v38 = vrot.slane %v4162_v18, 4 }
  0x6f   :  { %v2110_v39 = vrot.slane %v46_v12, 5  ;;  %v3302_v42 = vadd.f32 %v3222_v32, %v4140_v17  ;;  %v2418_v30 = vadd.f32 %v2108_v24, %v1969_v50  ;;  %v1214_v36 = vsel %vm1178_vm2, %v1212_v4, %v1213_v9 }
  0x70   :  { %v2111_v25 = vrot.slane %v4162_v18, 5  ;;  %v3303_v46 = vadd.f32 %v3223_v35, %v4158_v14  ;;  %v1521_v16 = vadd.f32 %v1214_v36, %v1072_v11  ;;  %v1663_v62 = vsel %vm1627_vm3, %v1661_v40, %v1662_v38 }
  0x71   :  { %v2559_v55 = vrot.slane %v46_v12, 6  ;;  %v3382_v48 = vadd.f32 %v3302_v42, %v4178_v2  ;;  %v4197_v52 = vadd.f32 %v2557_v26, %v2418_v30  ;;  %v2560_v7 = vrot.slane %v4162_v18, 6 }
  0x72   :  { %v2112_v51 = vsel %vm2076_vm4, %v2110_v39, %v2111_v25  ;;  %v1970_v24 = vadd.f32 %v1663_v62, %v1521_v16  ;;  %v2984_v58 = vadd.f32 %v3919_v49, %v3913_v22  ;;  %v624_v34 = vadd.f32 %v315_v56, %v4162_v18 }
  0x73   :  { %v2985_v41 = vadd.f32 %v4020_v1, %v4018_v37  ;;  %v3462_v12 = vmul.f32 0.020408163, %v3382_v48  ;;  %v3383_v6 = vadd.f32 %v3303_v46, %v4197_v52  ;;  %v2561_v26 = vsel %vm2525_vm5, %v2559_v55, %v2560_v7  ;;  %v50_v46 = vld [vmem:[#allocation2 + $0xd0] sm:$0xff] }
  0x74   :  { %v317_v33 = vrot.slane %v48_v61, 1  ;;  %v2419_v3 = vadd.f32 %v2112_v51, %v1970_v24  ;;  %v3064_v60 = vadd.f32 %v2984_v58, %v4065_v44  ;;  %v1073_v10 = vadd.f32 %v764_v0, %v624_v34 }
  0x75   :  { %v3065_v53 = vadd.f32 %v2985_v41, %v4077_v27  ;;  %3542 = vst [vmem:[%s6561_s1 + $0x40] sm:$0xff] %v3462_v12  ;;  %v3463_v22 = vmul.f32 0.020408163, %v3383_v6  ;;  %v318_v37 = vrot.slane %v4206_v20, 1  ;;  %v766_v18 = vrot.slane %v48_v61, 2 }
  0x76   :  { %v767_v19 = vrot.slane %v4206_v20, 2  ;;  %v4217_v15 = vadd.f32 %v2561_v26, %v2419_v3  ;;  %v3144_v13 = vadd.f32 %v3064_v60, %v4103_v29  ;;  %v1522_v5 = vadd.f32 %v1213_v9, %v1073_v10 }
  0x77   :  { %v3145_v43 = vadd.f32 %v3065_v53, %v4125_v31  ;;  %3543 = vst [vmem:[%s6561_s1 + $0x48] sm:$0x3] %v3463_v22  ;;  %v319_v21 = vsel %vm280_vm0, %v317_v33, %v318_v37  ;;  %v1215_v47 = vrot.slane %v48_v61, 3  ;;  %v1216_v63 = vrot.slane %v4206_v20, 3 }
  0x78   :  { %v768_v56 = vsel %vm729_vm1, %v766_v18, %v767_v19  ;;  %v3224_v57 = vadd.f32 %v3144_v13, %v4140_v17  ;;  %v1971_v0 = vadd.f32 %v1662_v38, %v1522_v5  ;;  %v625_v8 = vadd.f32 %v319_v21, %v48_v61 }
  0x79   :  { %v3225_v23 = vadd.f32 %v3145_v43, %v4158_v14  ;;  %v1217_v59 = vsel %vm1178_vm2, %v1215_v47, %v1216_v63  ;;  %v1664_v45 = vrot.slane %v48_v61, 4  ;;  %v1665_v28 = vrot.slane %v4206_v20, 4 }
  0x7a   :  { %v2113_v54 = vrot.slane %v48_v61, 5  ;;  %v3304_v4 = vadd.f32 %v3224_v57, %v4178_v2  ;;  %v2420_v32 = vadd.f32 %v2111_v25, %v1971_v0  ;;  %v1074_v9 = vadd.f32 %v768_v56, %v625_v8  ;;  %v4241_v25 = vld [vmem:[#allocation2 + $0xd8] sm:$0xff] }
  0x7b   :  { %v3305_v50 = vadd.f32 %v3225_v23, %v4197_v52  ;;  %v1666_v40 = vsel %vm1627_vm3, %v1664_v45, %v1665_v28  ;;  %v2114_v35 = vrot.slane %v4206_v20, 5  ;;  %v2562_v11 = vrot.slane %v48_v61, 6 }
  0x7c   :  { %v2563_v38 = vrot.slane %v4206_v20, 6  ;;  %v3384_v39 = vadd.f32 %v3304_v4, %v4217_v15  ;;  %v4237_v42 = vadd.f32 %v2560_v7, %v2420_v32  ;;  %v1523_v30 = vadd.f32 %v1217_v59, %v1074_v9  ;;  %v52_v9 = vld [vmem:[#allocation2 + $0xe0] sm:$0xff] }
  0x7d   :  { %v2986_v36 = vadd.f32 %v4065_v44, %v3919_v49  ;;  %v2115_v16 = vsel %vm2076_vm4, %v2113_v54, %v2114_v35  ;;  %v626_v55 = vadd.f32 %v318_v37, %v4206_v20  ;;  %v2987_v61 = vadd.f32 %v4077_v27, %v4020_v1 }
  0x7e   :  { %v2564_v62 = vsel %vm2525_vm5, %v2562_v11, %v2563_v38  ;;  %v3464_v48 = vmul.f32 0.020408163, %v3384_v39  ;;  %v3385_v51 = vadd.f32 %v3305_v50, %v4237_v42  ;;  %v1972_v7 = vadd.f32 %v1666_v40, %v1523_v30  ;;  %v4280_v40 = vld [vmem:[#allocation2 + $0xe8] sm:$0xff] }
  0x7f   :  { %v3066_v24 = vadd.f32 %v2986_v36, %v4103_v29  ;;  %v1075_v58 = vadd.f32 %v767_v19, %v626_v55  ;;  %v3067_v49 = vadd.f32 %v2987_v61, %v4125_v31  ;;  %v320_v34 = vrot.slane %v50_v46, 1 }
  0x80   :  { %v321_v41 = vrot.slane %v4241_v25, 1  ;;  %3544 = vst [vmem:[%s6561_s1 + $0x50] sm:$0xff] %v3464_v48  ;;  %v3465_v20 = vmul.f32 0.020408163, %v3385_v51  ;;  %v2421_v12 = vadd.f32 %v2115_v16, %v1972_v7  ;;  %v769_v6 = vrot.slane %v50_v46, 2 }
  0x81   :  { %v3146_v1 = vadd.f32 %v3066_v24, %v4140_v17  ;;  %v1524_v26 = vadd.f32 %v1216_v63, %v1075_v58  ;;  %v3147_v33 = vadd.f32 %v3067_v49, %v4158_v14  ;;  %v770_v60 = vrot.slane %v4241_v25, 2 }
  0x82   :  { %v322_v3 = vsel %vm280_vm0, %v320_v34, %v321_v41  ;;  %3545 = vst [vmem:[%s6561_s1 + $0x58] sm:$0x3] %v3465_v20  ;;  %v4262_v10 = vadd.f32 %v2564_v62, %v2421_v12  ;;  %v1218_v37 = vrot.slane %v50_v46, 3  ;;  %v1219_v5 = vrot.slane %v4241_v25, 3 }
  0x83   :  { %v3226_v53 = vadd.f32 %v3146_v1, %v4178_v2  ;;  %v627_v22 = vadd.f32 %v322_v3, %v50_v46  ;;  %v1973_v18 = vadd.f32 %v1665_v28, %v1524_v26  ;;  %v3227_v19 = vadd.f32 %v3147_v33, %v4197_v52 }
  0x84   :  { %v771_v13 = vsel %vm729_vm1, %v769_v6, %v770_v60  ;;  %v1667_v56 = vrot.slane %v50_v46, 4  ;;  %v1668_v47 = vrot.slane %v4241_v25, 4  ;;  %v1220_v0 = vsel %vm1178_vm2, %v1218_v37, %v1219_v5 }
  0x85   :  { %v3306_v43 = vadd.f32 %v3226_v53, %v4217_v15  ;;  %v1076_v21 = vadd.f32 %v771_v13, %v627_v22  ;;  %v2422_v63 = vadd.f32 %v2114_v35, %v1973_v18  ;;  %v3307_v57 = vadd.f32 %v3227_v19, %v4237_v42 }
  0x86   :  { %v2116_v23 = vrot.slane %v50_v46, 5  ;;  %v1669_v45 = vsel %vm1627_vm3, %v1667_v56, %v1668_v47  ;;  %v2117_v28 = vrot.slane %v4241_v25, 5  ;;  %v2565_v4 = vrot.slane %v50_v46, 6 }
  0x87   :  { %v3386_v8 = vadd.f32 %v3306_v43, %v4262_v10  ;;  %v1525_v59 = vadd.f32 %v1220_v0, %v1076_v21  ;;  %v4275_v54 = vadd.f32 %v2563_v38, %v2422_v63  ;;  %v2566_v32 = vrot.slane %v4241_v25, 6 }
  0x88   :  { %v2988_v50 = vadd.f32 %v4103_v29, %v4065_v44  ;;  %v2118_v39 = vsel %vm2076_vm4, %v2116_v23, %v2117_v28  ;;  %v628_v30 = vadd.f32 %v321_v41, %v4241_v25  ;;  %v2989_v16 = vadd.f32 %v4125_v31, %v4077_v27 }
  0x89   :  { %v3466_v35 = vmul.f32 0.020408163, %v3386_v8  ;;  %v1974_v11 = vadd.f32 %v1669_v45, %v1525_v59  ;;  %v3387_v36 = vadd.f32 %v3307_v57, %v4275_v54  ;;  %v2567_v38 = vsel %vm2525_vm5, %v2565_v4, %v2566_v32  ;;  %v4320_v8 = vld [vmem:[#allocation2 + $0xf8] sm:$0xff] }
  0x8a   :  { %v3068_v46 = vadd.f32 %v2988_v50, %v4140_v17  ;;  %v1077_v62 = vadd.f32 %v770_v60, %v628_v30  ;;  %v323_v55 = vrot.slane %v52_v9, 1  ;;  %v324_v61 = vrot.slane %v4280_v40, 1 }
  0x8b   :  { %3546 = vst [vmem:[%s6561_s1 + $0x60] sm:$0xff] %v3466_v35  ;;  %v2423_v44 = vadd.f32 %v2118_v39, %v1974_v11  ;;  %v3467_v48 = vmul.f32 0.020408163, %v3387_v36  ;;  %v3069_v51 = vadd.f32 %v2989_v16, %v4158_v14  ;;  %v772_v7 = vrot.slane %v52_v9, 2 }
  0x8c   :  { %v3148_v25 = vadd.f32 %v3068_v46, %v4178_v2  ;;  %v1526_v58 = vadd.f32 %v1219_v5, %v1077_v62  ;;  %v325_v27 = vsel %vm280_vm0, %v323_v55, %v324_v61  ;;  %v773_v49 = vrot.slane %v4280_v40, 2 }
  0x8d   :  { %v4295_v24 = vadd.f32 %v2567_v38, %v2423_v44  ;;  %3547 = vst [vmem:[%s6561_s1 + $0x68] sm:$0x3] %v3467_v48  ;;  %v3149_v41 = vadd.f32 %v3069_v51, %v4197_v52  ;;  %v629_v20 = vadd.f32 %v325_v27, %v52_v9  ;;  %v1221_v12 = vrot.slane %v52_v9, 3 }
  0x8e   :  { %v3228_v34 = vadd.f32 %v3148_v25, %v4217_v15  ;;  %v1975_v1 = vadd.f32 %v1668_v47, %v1526_v58  ;;  %v774_v6 = vsel %vm729_vm1, %v772_v7, %v773_v49  ;;  %v1222_v26 = vrot.slane %v4280_v40, 3  ;;  %v4314_v47 = vld [vmem:[#allocation2 + $0xf0] sm:$0xff] }
  0x8f   :  { %v1670_v33 = vrot.slane %v52_v9, 4  ;;  %v3229_v60 = vadd.f32 %v3149_v41, %v4237_v42  ;;  %v1078_v53 = vadd.f32 %v774_v6, %v629_v20  ;;  %v1671_v22 = vrot.slane %v4280_v40, 4 }
  0x90   :  { %v3308_v3 = vadd.f32 %v3228_v34, %v4262_v10  ;;  %v2424_v37 = vadd.f32 %v2117_v28, %v1975_v1  ;;  %v1223_v18 = vsel %vm1178_vm2, %v1221_v12, %v1222_v26  ;;  %v2119_v19 = vrot.slane %v52_v9, 5 }
  0x91   :  { %v2120_v13 = vrot.slane %v4280_v40, 5  ;;  %v3309_v43 = vadd.f32 %v3229_v60, %v4275_v54  ;;  %v1527_v21 = vadd.f32 %v1223_v18, %v1078_v53  ;;  %v1672_v56 = vsel %vm1627_vm3, %v1670_v33, %v1671_v22 }
  0x92   :  { %v3388_v5 = vadd.f32 %v3308_v3, %v4295_v24  ;;  %v4316_v63 = vadd.f32 %v2566_v32, %v2424_v37  ;;  %v2568_v0 = vrot.slane %v52_v9, 6  ;;  %v2569_v23 = vrot.slane %v4280_v40, 6 }
  0x93   :  { %v2121_v57 = vsel %vm2076_vm4, %v2119_v19, %v2120_v13  ;;  %v1976_v45 = vadd.f32 %v1672_v56, %v1527_v21  ;;  %v2990_v28 = vadd.f32 %v4140_v17, %v4103_v29  ;;  %v630_v4 = vadd.f32 %v324_v61, %v4280_v40 }
  0x94   :  { %v3468_v59 = vmul.f32 0.020408163, %v3388_v5  ;;  %v3389_v50 = vadd.f32 %v3309_v43, %v4316_v63  ;;  %v2570_v35 = vsel %vm2525_vm5, %v2568_v0, %v2569_v23  ;;  %v2991_v32 = vadd.f32 %v4158_v14, %v4125_v31  ;;  %v4375_v0 = vld [vmem:[#allocation2 + $0x118] sm:$0xff] }
  0x95   :  { %v326_v9 = vrot.slane %v4314_v47, 1  ;;  %v2425_v11 = vadd.f32 %v2121_v57, %v1976_v45  ;;  %v3070_v39 = vadd.f32 %v2990_v28, %v4178_v2  ;;  %v1079_v30 = vadd.f32 %v773_v49, %v630_v4  ;;  %v4371_v57 = vld [vmem:[#allocation2 + $0x108] sm:$0xff] }
  0x96   :  { %3548 = vst [vmem:[%s6561_s1 + $0x70] sm:$0xff] %v3468_v59  ;;  %v327_v29 = vrot.slane %v4320_v8, 1  ;;  %v3469_v40 = vmul.f32 0.020408163, %v3389_v50  ;;  %v3071_v36 = vadd.f32 %v2991_v32, %v4197_v52  ;;  %v775_v38 = vrot.slane %v4314_v47, 2  ;;  %v4381_v50 = vld [vmem:[#allocation2 + $0x120] sm:$0xff] }
  0x97   :  { %v776_v46 = vrot.slane %v4320_v8, 2  ;;  %v4338_v31 = vadd.f32 %v2570_v35, %v2425_v11  ;;  %v3150_v16 = vadd.f32 %v3070_v39, %v4217_v15  ;;  %v1528_v44 = vadd.f32 %v1222_v26, %v1079_v30 }
  0x98   :  { %v328_v62 = vsel %vm280_vm0, %v326_v9, %v327_v29  ;;  %3549 = vst [vmem:[%s6561_s1 + $0x78] sm:$0x3] %v3469_v40  ;;  %v3151_v55 = vadd.f32 %v3071_v36, %v4237_v42  ;;  %v1224_v25 = vrot.slane %v4314_v47, 3  ;;  %v1225_v58 = vrot.slane %v4320_v8, 3  ;;  %v4397_v40 = vld [vmem:[#allocation2 + $0x140] sm:$0xff]  ;;  %v4399_v36 = vld [vmem:[#allocation2 + $0x148] sm:$0xff] }
  0x99   :  { %v631_v61 = vadd.f32 %v328_v62, %v4314_v47  ;;  %v777_v48 = vsel %vm729_vm1, %v775_v38, %v776_v46  ;;  %v3230_v51 = vadd.f32 %v3150_v16, %v4262_v10  ;;  %v1977_v7 = vadd.f32 %v1671_v22, %v1528_v44  ;;  %v4361_v22 = vld [vmem:[#allocation2 + $0x100] sm:$0xff]  ;;  %v4404_v38 = vld [vmem:[#allocation2 + $0x150] sm:$0xff] }
  0x9a   :  { %v1673_v27 = vrot.slane %v4314_v47, 4  ;;  %v3231_v49 = vadd.f32 %v3151_v55, %v4275_v54  ;;  %v1674_v41 = vrot.slane %v4320_v8, 4  ;;  %v2122_v20 = vrot.slane %v4314_v47, 5 }
  0x9b   :  { %v1080_v34 = vadd.f32 %v777_v48, %v631_v61  ;;  %v3310_v12 = vadd.f32 %v3230_v51, %v4295_v24  ;;  %v2426_v1 = vadd.f32 %v2120_v13, %v1977_v7  ;;  %v1226_v6 = vsel %vm1178_vm2, %v1224_v25, %v1225_v58  ;;  %v4416_v61 = vld [vmem:[#allocation2 + $0x158] sm:$0xff]  ;;  %v4418_v48 = vld [vmem:[#allocation2 + $0x160] sm:$0xff]  ;;  %v4421_v51 = vld [vmem:[#allocation2 + $0x168] sm:$0xff] }
  0x9c   :  { %v2123_v26 = vrot.slane %v4320_v8, 5  ;;  %v3311_v33 = vadd.f32 %v3231_v49, %v4316_v63  ;;  %v1675_v60 = vsel %vm1627_vm3, %v1673_v27, %v1674_v41  ;;  %v2571_v53 = vrot.slane %v4314_v47, 6  ;;  %v4373_v47 = vld [vmem:[#allocation2 + $0x110] sm:$0xff] }
  0x9d   :  { %v1529_v3 = vadd.f32 %v1226_v6, %v1080_v34  ;;  %v3390_v37 = vadd.f32 %v3310_v12, %v4338_v31  ;;  %v2875_v18 = vadd.f32 %v2569_v23, %v2426_v1  ;;  %v2572_v13 = vrot.slane %v4320_v8, 6 }
  0x9e   :  { %v2124_v19 = vsel %vm2076_vm4, %v2122_v20, %v2123_v26  ;;  %v2992_v43 = vadd.f32 %v4178_v2, %v4140_v17  ;;  %v632_v21 = vadd.f32 %v327_v29, %v4320_v8  ;;  %v2993_v56 = vadd.f32 %v4197_v52, %v4158_v14  ;;  %v4383_v14 = vld [vmem:[#allocation2 + $0x128] sm:$0xff]  ;;  %v4385_v52 = vld [vmem:[#allocation2 + $0x130] sm:$0xff]  ;;  %v4395_v29 = vld [vmem:[#allocation2 + $0x138] sm:$0xff] }
  0x9f   :  { %v1978_v5 = vadd.f32 %v1675_v60, %v1529_v3  ;;  %v3470_v23 = vmul.f32 0.020408163, %v3390_v37  ;;  %v3391_v59 = vadd.f32 %v3311_v33, %v2875_v18  ;;  %v2573_v45 = vsel %vm2525_vm5, %v2571_v53, %v2572_v13 }
  0xa0   :  { %v329_v28 = vrot.slane %v4361_v22, 1  ;;  %v3072_v17 = vadd.f32 %v2992_v43, %v4217_v15  ;;  %v1081_v2 = vadd.f32 %v776_v46, %v632_v21  ;;  %v3073_v8 = vadd.f32 %v2993_v56, %v4237_v42 }
  0xa1   :  { %v2427_v4 = vadd.f32 %v2124_v19, %v1978_v5  ;;  %3550 = vst [vmem:[%s6561_s1 + $0x80] sm:$0xff] %v3470_v23  ;;  %v3471_v35 = vmul.f32 0.020408163, %v3391_v59  ;;  %v330_v32 = vrot.slane %v4371_v57, 1  ;;  %v332_v9 = vrot.slane %v4373_v47, 1 }
  0xa2   :  { %v333_v15 = vrot.slane %v4375_v0, 1  ;;  %v3152_v42 = vadd.f32 %v3072_v17, %v4262_v10  ;;  %v1530_v39 = vadd.f32 %v1225_v58, %v1081_v2  ;;  %v3153_v30 = vadd.f32 %v3073_v8, %v4275_v54 }
  0xa3   :  { %v2876_v11 = vadd.f32 %v2573_v45, %v2427_v4  ;;  %3551 = vst [vmem:[%s6561_s1 + $0x88] sm:$0x3] %v3471_v35  ;;  %v331_v46 = vsel %vm280_vm0, %v329_v28, %v330_v32  ;;  %v335_v54 = vrot.slane %v4381_v50, 1  ;;  %v336_v16 = vrot.slane %v4383_v14, 1 }
  0xa4   :  { %v334_v10 = vsel %vm280_vm0, %v332_v9, %v333_v15  ;;  %v3232_v44 = vadd.f32 %v3152_v42, %v4295_v24  ;;  %v1979_v62 = vadd.f32 %v1674_v41, %v1530_v39  ;;  %v3233_v55 = vadd.f32 %v3153_v30, %v4316_v63 }
  0xa5   :  { %v338_v25 = vrot.slane %v4385_v52, 1  ;;  %v337_v7 = vsel %vm280_vm0, %v335_v54, %v336_v16  ;;  %v339_v58 = vrot.slane %v4395_v29, 1  ;;  %v341_v27 = vrot.slane %v4397_v40, 1 }
  0xa6   :  { %v342_v24 = vrot.slane %v4399_v36, 1  ;;  %v3312_v63 = vadd.f32 %v3232_v44, %v4338_v31  ;;  %v2428_v49 = vadd.f32 %v2123_v26, %v1979_v62  ;;  %v3313_v34 = vadd.f32 %v3233_v55, %v2875_v18 }
  0xa7   :  { %v344_v41 = vrot.slane %v4404_v38, 1  ;;  %v340_v20 = vsel %vm280_vm0, %v338_v25, %v339_v58  ;;  %v345_v1 = vrot.slane %v4416_v61, 1  ;;  %v347_v6 = vrot.slane %v4418_v48, 1 }
  0xa8   :  { %v343_v12 = vsel %vm280_vm0, %v341_v27, %v342_v24  ;;  %v3392_v33 = vadd.f32 %v3312_v63, %v2876_v11  ;;  %v2877_v3 = vadd.f32 %v2572_v13, %v2428_v49  ;;  %v348_v31 = vrot.slane %v4421_v51, 1 }
  0xa9   :  { %v633_v26 = vadd.f32 %v331_v46, %v4361_v22  ;;  %v346_v60 = vsel %vm280_vm0, %v344_v41, %v345_v1  ;;  %v635_v53 = vadd.f32 %v334_v10, %v4373_v47  ;;  %v637_v37 = vadd.f32 %v337_v7, %v4381_v50 }
  0xaa   :  { %v639_v18 = vadd.f32 %v340_v20, %v4385_v52  ;;  %v3472_v19 = vmul.f32 0.020408163, %v3392_v33  ;;  %v3393_v5 = vadd.f32 %v3313_v34, %v2877_v3  ;;  %v349_v13 = vsel %vm280_vm0, %v347_v6, %v348_v31 }
  0xab   :  { %v641_v43 = vadd.f32 %v343_v12, %v4397_v40  ;;  %v643_v21 = vadd.f32 %v346_v60, %v4404_v38  ;;  %v645_v56 = vadd.f32 %v349_v13, %v4418_v48  ;;  %v778_v23 = vrot.slane %v4361_v22, 2 }
  0xac   :  { %v779_v59 = vrot.slane %v4371_v57, 2  ;;  %3552 = vst [vmem:[%s6561_s1 + $0x90] sm:$0xff] %v3472_v19  ;;  %v3473_v45 = vmul.f32 0.020408163, %v3393_v5  ;;  %v781_v28 = vrot.slane %v4373_v47, 2  ;;  %v782_v4 = vrot.slane %v4375_v0, 2 }
  0xad   :  { %v784_v17 = vrot.slane %v4381_v50, 2  ;;  %v785_v8 = vrot.slane %v4383_v14, 2  ;;  %v787_v35 = vrot.slane %v4385_v52, 2  ;;  %v788_v9 = vrot.slane %v4395_v29, 2 }
  0xae   :  { %v780_v2 = vsel %vm729_vm1, %v778_v23, %v779_v59  ;;  %3553 = vst [vmem:[%s6561_s1 + $0x98] sm:$0x3] %v3473_v45  ;;  %v783_v11 = vsel %vm729_vm1, %v781_v28, %v782_v4  ;;  %v790_v42 = vrot.slane %v4397_v40, 2  ;;  %v791_v39 = vrot.slane %v4399_v36, 2 }
  0xaf   :  { %v793_v30 = vrot.slane %v4404_v38, 2  ;;  %v786_v46 = vsel %vm729_vm1, %v784_v17, %v785_v8  ;;  %v789_v10 = vsel %vm729_vm1, %v787_v35, %v788_v9  ;;  %v794_v54 = vrot.slane %v4416_v61, 2 }
  0xb0   :  { %v796_v44 = vrot.slane %v4418_v48, 2  ;;  %v792_v62 = vsel %vm729_vm1, %v790_v42, %v791_v39  ;;  %v797_v55 = vrot.slane %v4421_v51, 2  ;;  %v1082_v25 = vadd.f32 %v780_v2, %v633_v26 }
  0xb1   :  { %v1084_v7 = vadd.f32 %v783_v11, %v635_v53  ;;  %v795_v27 = vsel %vm729_vm1, %v793_v30, %v794_v54  ;;  %v1086_v63 = vadd.f32 %v786_v46, %v637_v37  ;;  %v1088_v49 = vadd.f32 %v789_v10, %v639_v18 }
  0xb2   :  { %v1090_v34 = vadd.f32 %v792_v62, %v641_v43  ;;  %v798_v41 = vsel %vm729_vm1, %v796_v44, %v797_v55  ;;  %v1092_v20 = vadd.f32 %v795_v27, %v643_v21  ;;  %v1227_v12 = vrot.slane %v4361_v22, 3 }
  0xb3   :  { %v1228_v6 = vrot.slane %v4371_v57, 3  ;;  %v1094_v33 = vadd.f32 %v798_v41, %v645_v56  ;;  %v1230_v3 = vrot.slane %v4373_v47, 3  ;;  %v1231_v26 = vrot.slane %v4375_v0, 3 }
  0xb4   :  { %v1233_v60 = vrot.slane %v4381_v50, 3  ;;  %v1234_v37 = vrot.slane %v4383_v14, 3  ;;  %v1236_v18 = vrot.slane %v4385_v52, 3  ;;  %v1237_v19 = vrot.slane %v4395_v29, 3 }
  0xb5   :  { %v1229_v53 = vsel %vm1178_vm2, %v1227_v12, %v1228_v6  ;;  %v1232_v5 = vsel %vm1178_vm2, %v1230_v3, %v1231_v26  ;;  %v1239_v13 = vrot.slane %v4397_v40, 3  ;;  %v1240_v43 = vrot.slane %v4399_v36, 3 }
  0xb6   :  { %v1242_v21 = vrot.slane %v4404_v38, 3  ;;  %v1235_v56 = vsel %vm1178_vm2, %v1233_v60, %v1234_v37  ;;  %v1238_v23 = vsel %vm1178_vm2, %v1236_v18, %v1237_v19  ;;  %v1243_v45 = vrot.slane %v4416_v61, 3 }
  0xb7   :  { %v1245_v28 = vrot.slane %v4418_v48, 3  ;;  %v1241_v17 = vsel %vm1178_vm2, %v1239_v13, %v1240_v43  ;;  %v1246_v2 = vrot.slane %v4421_v51, 3  ;;  %v1531_v35 = vadd.f32 %v1229_v53, %v1082_v25 }
  0xb8   :  { %v1533_v11 = vadd.f32 %v1232_v5, %v1084_v7  ;;  %v1244_v42 = vsel %vm1178_vm2, %v1242_v21, %v1243_v45  ;;  %v1535_v30 = vadd.f32 %v1235_v56, %v1086_v63  ;;  %v1537_v46 = vadd.f32 %v1238_v23, %v1088_v49 }
  0xb9   :  { %v1539_v10 = vadd.f32 %v1241_v17, %v1090_v34  ;;  %v1247_v44 = vsel %vm1178_vm2, %v1245_v28, %v1246_v2  ;;  %v1541_v62 = vadd.f32 %v1244_v42, %v1092_v20  ;;  %v1676_v27 = vrot.slane %v4361_v22, 4 }
  0xba   :  { %v1677_v41 = vrot.slane %v4371_v57, 4  ;;  %v1543_v12 = vadd.f32 %v1247_v44, %v1094_v33  ;;  %v1679_v25 = vrot.slane %v4373_v47, 4  ;;  %v1680_v7 = vrot.slane %v4375_v0, 4 }
  0xbb   :  { %v1682_v3 = vrot.slane %v4381_v50, 4  ;;  %v6573_v49 = vrot.slane %v4383_v14, 4  ;;  %v1685_v34 = vrot.slane %v4385_v52, 4  ;;  %v6572_v20 = vrot.slane %v4395_v29, 4 }
  0xbc   :  { %v1678_v63 = vsel %vm1627_vm3, %v1676_v27, %v1677_v41  ;;  %v1681_v33 = vsel %vm1627_vm3, %v1679_v25, %v1680_v7  ;;  %v1688_v60 = vrot.slane %v4397_v40, 4  ;;  %v6574_v53 = vrot.slane %v4399_v36, 4 }
  0xbd   :  { %v1691_v18 = vrot.slane %v4404_v38, 4  ;;  %v1684_v5 = vsel %vm1627_vm3, %v1682_v3, %v6573_v49  ;;  %v1687_v13 = vsel %vm1627_vm3, %v1685_v34, %v6572_v20  ;;  %v6580_v21 = vrot.slane %v4416_v61, 4 }
  0xbe   :  { %v1694_v56 = vrot.slane %v4418_v48, 4  ;;  %v1690_v23 = vsel %vm1627_vm3, %v1688_v60, %v6574_v53  ;;  %v6578_v28 = vrot.slane %v4421_v51, 4  ;;  %v1980_v17 = vadd.f32 %v1678_v63, %v1531_v35 }
  0xbf   :  { %v1982_v42 = vadd.f32 %v1681_v33, %v1533_v11  ;;  %v1693_v44 = vsel %vm1627_vm3, %v1691_v18, %v6580_v21  ;;  %v1984_v27 = vadd.f32 %v1684_v5, %v1535_v30  ;;  %v1986_v25 = vadd.f32 %v1687_v13, %v1537_v46 }
  0xc0   :  { %v1988_v3 = vadd.f32 %v1690_v23, %v1539_v10  ;;  %v1696_v34 = vsel %vm1627_vm3, %v1694_v56, %v6578_v28  ;;  %v1990_v20 = vadd.f32 %v1693_v44, %v1541_v62  ;;  %v2125_v49 = vrot.slane %v4361_v22, 5 }
  0xc1   :  { %v6577_v60 = vrot.slane %v4371_v57, 5  ;;  %v1992_v53 = vadd.f32 %v1696_v34, %v1543_v12  ;;  %v2128_v35 = vrot.slane %v4373_v47, 5  ;;  %v6575_v11 = vrot.slane %v4375_v0, 5 }
  0xc2   :  { %v2131_v63 = vrot.slane %v4381_v50, 5  ;;  %v6576_v46 = vrot.slane %v4383_v14, 5  ;;  %v2134_v10 = vrot.slane %v4385_v52, 5  ;;  %v6579_v62 = vrot.slane %v4395_v29, 5 }
  0xc3   :  { %v2127_v30 = vsel %vm2076_vm4, %v2125_v49, %v6577_v60  ;;  %v2130_v12 = vsel %vm2076_vm4, %v2128_v35, %v6575_v11  ;;  %v2137_v33 = vrot.slane %v4397_v40, 5  ;;  %v6581_v18 = vrot.slane %v4399_v36, 5 }
  0xc4   :  { %v2140_v5 = vrot.slane %v4404_v38, 5  ;;  %v2133_v49 = vsel %vm2076_vm4, %v2131_v63, %v6576_v46  ;;  %v2136_v13 = vsel %vm2076_vm4, %v2134_v10, %v6579_v62  ;;  %v2141_v56 = vrot.slane %v4416_v61, 5 }
  0xc5   :  { %v2143_v23 = vrot.slane %v4418_v48, 5  ;;  %v2139_v44 = vsel %vm2076_vm4, %v2137_v33, %v6581_v18  ;;  %v2144_v34 = vrot.slane %v4421_v51, 5  ;;  %v2429_v35 = vadd.f32 %v2127_v30, %v1980_v17 }
  0xc6   :  { %v2431_v11 = vadd.f32 %v2130_v12, %v1982_v42  ;;  %v2142_v63 = vsel %vm2076_vm4, %v2140_v5, %v2141_v56  ;;  %v2433_v46 = vadd.f32 %v2133_v49, %v1984_v27  ;;  %v2435_v60 = vadd.f32 %v2136_v13, %v1986_v25 }
  0xc7   :  { %v2437_v28 = vadd.f32 %v2139_v44, %v1988_v3  ;;  %v2145_v10 = vsel %vm2076_vm4, %v2143_v23, %v2144_v34  ;;  %v2439_v62 = vadd.f32 %v2142_v63, %v1990_v20  ;;  %v2574_v21 = vrot.slane %v4361_v22, 6 }
  0xc8   :  { %v2575_v33 = vrot.slane %v4371_v57, 6  ;;  %v2441_v18 = vadd.f32 %v2145_v10, %v1992_v53  ;;  %v2577_v17 = vrot.slane %v4373_v47, 6  ;;  %v2578_v42 = vrot.slane %v4375_v0, 6 }
  0xc9   :  { %v2580_v30 = vrot.slane %v4381_v50, 6  ;;  %v2581_v25 = vrot.slane %v4383_v14, 6  ;;  %v2583_v3 = vrot.slane %v4385_v52, 6  ;;  %v2584_v20 = vrot.slane %v4395_v29, 6 }
  0xca   :  { %v2576_v27 = vsel %vm2525_vm5, %v2574_v21, %v2575_v33  ;;  %v2579_v22 = vsel %vm2525_vm5, %v2577_v17, %v2578_v42  ;;  %v2586_v47 = vrot.slane %v4397_v40, 6  ;;  %v2587_v53 = vrot.slane %v4399_v36, 6 }
  0xcb   :  { %v2589_v50 = vrot.slane %v4404_v38, 6  ;;  %v2582_v21 = vsel %vm2525_vm5, %v2580_v30, %v2581_v25  ;;  %v2585_v52 = vsel %vm2525_vm5, %v2583_v3, %v2584_v20  ;;  %v2590_v12 = vrot.slane %v4416_v61, 6 }
  0xcc   :  { %v2592_v5 = vrot.slane %v4418_v48, 6  ;;  %v2588_v40 = vsel %vm2525_vm5, %v2586_v47, %v2587_v53  ;;  %v2593_v49 = vrot.slane %v4421_v51, 6  ;;  %v2878_v13 = vadd.f32 %v2576_v27, %v2429_v35 }
  0xcd   :  { %v4628_v38 = vadd.f32 %v2579_v22, %v2431_v11  ;;  %v2591_v23 = vsel %vm2525_vm5, %v2589_v50, %v2590_v12  ;;  %v4631_v44 = vadd.f32 %v2582_v21, %v2433_v46  ;;  %v4633_v63 = vadd.f32 %v2585_v52, %v2435_v60 }
  0xce   :  { %v4635_v10 = vadd.f32 %v2588_v40, %v2437_v28  ;;  %v2594_v17 = vsel %vm2525_vm5, %v2592_v5, %v2593_v49  ;;  %v4638_v48 = vadd.f32 %v2591_v23, %v2439_v62  ;;  %v634_v35 = vadd.f32 %v330_v32, %v4371_v57 }
  0xcf   :  { %v2994_v30 = vadd.f32 %v4628_v38, %v2878_v13  ;;  %v4644_v11 = vadd.f32 %v2594_v17, %v2441_v18  ;;  %v636_v46 = vadd.f32 %v333_v15, %v4375_v0  ;;  %v638_v28 = vadd.f32 %v336_v16, %v4383_v14 }
  0xd0   :  { %v640_v60 = vadd.f32 %v339_v58, %v4395_v29  ;;  %v642_v32 = vadd.f32 %v342_v24, %v4399_v36  ;;  %v644_v18 = vadd.f32 %v345_v1, %v4416_v61  ;;  %v646_v15 = vadd.f32 %v348_v31, %v4421_v51 }
  0xd1   :  { %v3074_v62 = vadd.f32 %v2994_v30, %v4631_v44  ;;  %v1083_v16 = vadd.f32 %v779_v59, %v634_v35  ;;  %v1085_v58 = vadd.f32 %v782_v4, %v636_v46  ;;  %v1087_v27 = vadd.f32 %v785_v8, %v638_v28 }
  0xd2   :  { %v1089_v24 = vadd.f32 %v788_v9, %v640_v60  ;;  %v1091_v1 = vadd.f32 %v791_v39, %v642_v32  ;;  %v1093_v31 = vadd.f32 %v794_v54, %v644_v18  ;;  %v1095_v59 = vadd.f32 %v797_v55, %v646_v15 }
  0xd3   :  { %v3154_v3 = vadd.f32 %v3074_v62, %v4633_v63  ;;  %v1532_v4 = vadd.f32 %v1228_v6, %v1083_v16  ;;  %v1534_v8 = vadd.f32 %v1231_v26, %v1085_v58  ;;  %v1536_v9 = vadd.f32 %v1234_v37, %v1087_v27  ;;  %v70_v16 = vld [vmem:[#allocation2 + $0x170] sm:$0xff]  ;;  %v4725_v58 = vld [vmem:[#allocation2 + $0x178] sm:$0xff] }
  0xd4   :  { %v1538_v22 = vadd.f32 %v1237_v19, %v1089_v24  ;;  %v1540_v54 = vadd.f32 %v1240_v43, %v1091_v1  ;;  %v1542_v55 = vadd.f32 %v1243_v45, %v1093_v31  ;;  %v1544_v6 = vadd.f32 %v1246_v2, %v1095_v59 }
  0xd5   :  { %v3234_v39 = vadd.f32 %v3154_v3, %v4635_v10  ;;  %v1981_v26 = vadd.f32 %v1677_v41, %v1532_v4  ;;  %v1983_v37 = vadd.f32 %v1680_v7, %v1534_v8  ;;  %v6612_v47 = vrot.slane %v4383_v14, 4 }
  0xd6   :  { %v6613_v50 = vrot.slane %v4395_v29, 4  ;;  %v6614_v52 = vrot.slane %v4399_v36, 4  ;;  %v6615_v5 = vrot.slane %v4416_v61, 4  ;;  %v6616_v40 = vrot.slane %v4421_v51, 4 }
  0xd7   :  { %v1985_v19 = vadd.f32 %v6612_v47, %v1536_v9  ;;  %v3314_v43 = vadd.f32 %v3234_v39, %v4638_v48  ;;  %v6617_v13 = vrot.slane %v4371_v57, 5  ;;  %v6618_v23 = vrot.slane %v4375_v0, 5  ;;  %v4759_v9 = vld [vmem:[#allocation2 + $0x180] sm:$0xff] }
  0xd8   :  { %v1987_v21 = vadd.f32 %v6613_v50, %v1538_v22  ;;  %v1989_v45 = vadd.f32 %v6614_v52, %v1540_v54  ;;  %v1991_v2 = vadd.f32 %v6615_v5, %v1542_v55  ;;  %v1993_v41 = vadd.f32 %v6616_v40, %v1544_v6  ;;  %v4764_v6 = vld [vmem:[#allocation2 + $0x188] sm:$0xff] }
  0xd9   :  { %v2430_v7 = vadd.f32 %v6617_v13, %v1981_v26  ;;  %v2432_v17 = vadd.f32 %v6618_v23, %v1983_v37  ;;  %v6619_v30 = vrot.slane %v4383_v14, 5  ;;  %v6620_v46 = vrot.slane %v4395_v29, 5 }
  0xda   :  { %v3394_v60 = vadd.f32 %v3314_v43, %v4644_v11  ;;  %v6621_v62 = vrot.slane %v4399_v36, 5  ;;  %v2440_v18 = vadd.f32 %v2141_v56, %v1991_v2  ;;  %v2442_v15 = vadd.f32 %v2144_v34, %v1993_v41 }
  0xdb   :  { %v2434_v35 = vadd.f32 %v6619_v30, %v1985_v19  ;;  %v2436_v28 = vadd.f32 %v6620_v46, %v1987_v21  ;;  %v2879_v27 = vadd.f32 %v2575_v33, %v2430_v7  ;;  %v2881_v24 = vadd.f32 %v2578_v42, %v2432_v17 }
  0xdc   :  { %v2438_v32 = vadd.f32 %v6621_v62, %v1989_v45  ;;  %v3474_v56 = vmul.f32 0.020408163, %v3394_v60  ;;  %v4743_v34 = vadd.f32 %v2590_v12, %v2440_v18  ;;  %v4745_v57 = vadd.f32 %v2593_v49, %v2442_v15 }
  0xdd   :  { %v4733_v3 = vadd.f32 %v2581_v25, %v2434_v35  ;;  %v4737_v61 = vadd.f32 %v2584_v20, %v2436_v28  ;;  %v2995_v33 = vadd.f32 %v2881_v24, %v2879_v27  ;;  %v350_v0 = vrot.slane %v70_v16, 1 }
  0xde   :  { %v4741_v51 = vadd.f32 %v2587_v53, %v2438_v32  ;;  %v351_v42 = vrot.slane %v4725_v58, 1  ;;  %v799_v14 = vrot.slane %v70_v16, 2  ;;  %3554 = vst [vmem:[%s6561_s1 + $0xa0] sm:$0xff] %v3474_v56  ;;  %v800_v29 = vrot.slane %v4725_v58, 2 }
  0xdf   :  { %v1248_v25 = vrot.slane %v70_v16, 3  ;;  %v1249_v36 = vrot.slane %v4725_v58, 3  ;;  %v1697_v20 = vrot.slane %v70_v16, 4  ;;  %v3075_v53 = vadd.f32 %v2995_v33, %v4733_v3 }
  0xe0   :  { %v352_v12 = vsel %vm280_vm0, %v350_v0, %v351_v42  ;;  %v1698_v49 = vrot.slane %v4725_v58, 4  ;;  %v2146_v1 = vrot.slane %v70_v16, 5  ;;  %v801_v59 = vsel %vm729_vm1, %v799_v14, %v800_v29 }
  0xe1   :  { %v647_v31 = vadd.f32 %v352_v12, %v70_v16  ;;  %v1250_v4 = vsel %vm1178_vm2, %v1248_v25, %v1249_v36  ;;  %v2147_v8 = vrot.slane %v4725_v58, 5  ;;  %v3155_v22 = vadd.f32 %v3075_v53, %v4737_v61 }
  0xe2   :  { %v1699_v39 = vsel %vm1627_vm3, %v1697_v20, %v1698_v49  ;;  %v2595_v54 = vrot.slane %v70_v16, 6  ;;  %v2596_v55 = vrot.slane %v4725_v58, 6  ;;  %v2996_v47 = vadd.f32 %v4631_v44, %v4628_v38 }
  0xe3   :  { %v1096_v26 = vadd.f32 %v801_v59, %v647_v31  ;;  %v2148_v37 = vsel %vm2076_vm4, %v2146_v1, %v2147_v8  ;;  %v648_v19 = vadd.f32 %v351_v42, %v4725_v58  ;;  %v3235_v50 = vadd.f32 %v3155_v22, %v4741_v51  ;;  %v74_v22 = vld [vmem:[#allocation2 + $0x190] sm:$0xff] }
  0xe4   :  { %v2597_v21 = vsel %vm2525_vm5, %v2595_v54, %v2596_v55  ;;  %v2997_v43 = vadd.f32 %v4733_v3, %v2881_v24  ;;  %v353_v52 = vrot.slane %v4759_v9, 1  ;;  %v3076_v5 = vadd.f32 %v2996_v47, %v4633_v63 }
  0xe5   :  { %v1545_v45 = vadd.f32 %v1250_v4, %v1096_v26  ;;  %v1097_v2 = vadd.f32 %v800_v29, %v648_v19  ;;  %v354_v40 = vrot.slane %v4764_v6, 1  ;;  %v3315_v41 = vadd.f32 %v3235_v50, %v4743_v34 }
  0xe6   :  { %v3077_v38 = vadd.f32 %v2997_v43, %v4737_v61  ;;  %v802_v13 = vrot.slane %v4759_v9, 2  ;;  %v803_v7 = vrot.slane %v4764_v6, 2  ;;  %v3156_v17 = vadd.f32 %v3076_v5, %v4635_v10 }
  0xe7   :  { %v1994_v23 = vadd.f32 %v1699_v39, %v1545_v45  ;;  %v1546_v30 = vadd.f32 %v1249_v36, %v1097_v2  ;;  %v355_v35 = vsel %vm280_vm0, %v353_v52, %v354_v40  ;;  %v3395_v46 = vadd.f32 %v3315_v41, %v4745_v57  ;;  %v4810_v39 = vld [vmem:[#allocation2 + $0x198] sm:$0xff] }
  0xe8   :  { %v3157_v28 = vadd.f32 %v3077_v38, %v4741_v51  ;;  %v649_v60 = vadd.f32 %v355_v35, %v4759_v9  ;;  %v804_v62 = vsel %vm729_vm1, %v802_v13, %v803_v7  ;;  %v3236_v18 = vadd.f32 %v3156_v17, %v4638_v48 }
  0xe9   :  { %v2443_v32 = vadd.f32 %v2148_v37, %v1994_v23  ;;  %v1995_v15 = vadd.f32 %v1698_v49, %v1546_v30  ;;  %v1251_v16 = vrot.slane %v4759_v9, 3  ;;  %v3475_v58 = vmul.f32 0.020408163, %v3395_v46 }
  0xea   :  { %v3237_v27 = vadd.f32 %v3157_v28, %v4743_v34  ;;  %v1098_v24 = vadd.f32 %v804_v62, %v649_v60  ;;  %v1252_v56 = vrot.slane %v4764_v6, 3  ;;  %v3316_v0 = vadd.f32 %v3236_v18, %v4644_v11 }
  0xeb   :  { %v4790_v33 = vadd.f32 %v2597_v21, %v2443_v32  ;;  %v2444_v42 = vadd.f32 %v2147_v8, %v1995_v15  ;;  %v1700_v14 = vrot.slane %v4759_v9, 4  ;;  %3555 = vst [vmem:[%s6561_s1 + $0xa8] sm:$0x3] %v3475_v58  ;;  %v1701_v36 = vrot.slane %v4764_v6, 4 }
  0xec   :  { %v3317_v29 = vadd.f32 %v3237_v27, %v4745_v57  ;;  %v1253_v25 = vsel %vm1178_vm2, %v1251_v16, %v1252_v56  ;;  %v2149_v20 = vrot.slane %v4759_v9, 5  ;;  %v2150_v1 = vrot.slane %v4764_v6, 5 }
  0xed   :  { %v3396_v53 = vadd.f32 %v3316_v0, %v4790_v33  ;;  %v4802_v12 = vadd.f32 %v2596_v55, %v2444_v42  ;;  %v1547_v49 = vadd.f32 %v1253_v25, %v1098_v24  ;;  %v1702_v31 = vsel %vm1627_vm3, %v1700_v14, %v1701_v36  ;;  %v76_v14 = vld [vmem:[#allocation2 + $0x1a0] sm:$0xff] }
  0xee   :  { %v2598_v59 = vrot.slane %v4759_v9, 6  ;;  %v2599_v4 = vrot.slane %v4764_v6, 6  ;;  %v2998_v8 = vadd.f32 %v4633_v63, %v4631_v44  ;;  %v2151_v37 = vsel %vm2076_vm4, %v2149_v20, %v2150_v1 }
  0xef   :  { %v3476_v54 = vmul.f32 0.020408163, %v3396_v53  ;;  %v3397_v26 = vadd.f32 %v3317_v29, %v4802_v12  ;;  %v1996_v55 = vadd.f32 %v1702_v31, %v1547_v49  ;;  %v650_v9 = vadd.f32 %v354_v40, %v4764_v6  ;;  %v4848_v53 = vld [vmem:[#allocation2 + $0x1a8] sm:$0xff] }
  0xf0   :  { %v2600_v47 = vsel %vm2525_vm5, %v2598_v59, %v2599_v4  ;;  %v3078_v19 = vadd.f32 %v2998_v8, %v4635_v10  ;;  %v2999_v50 = vadd.f32 %v4737_v61, %v4733_v3  ;;  %v356_v43 = vrot.slane %v74_v22, 1 }
  0xf1   :  { %3556 = vst [vmem:[%s6561_s1 + $0xb0] sm:$0xff] %v3476_v54  ;;  %v3477_v44 = vmul.f32 0.020408163, %v3397_v26  ;;  %v2445_v21 = vadd.f32 %v2151_v37, %v1996_v55  ;;  %v357_v52 = vrot.slane %v4810_v39, 1  ;;  %v1099_v5 = vadd.f32 %v803_v7, %v650_v9 }
  0xf2   :  { %v3158_v45 = vadd.f32 %v3078_v19, %v4638_v48  ;;  %v3079_v2 = vadd.f32 %v2999_v50, %v4741_v51  ;;  %v805_v41 = vrot.slane %v74_v22, 2  ;;  %v806_v40 = vrot.slane %v4810_v39, 2 }
  0xf3   :  { %3557 = vst [vmem:[%s6561_s1 + $0xb8] sm:$0x3] %v3477_v44  ;;  %v4828_v3 = vadd.f32 %v2600_v47, %v2445_v21  ;;  %v358_v6 = vsel %vm280_vm0, %v356_v43, %v357_v52  ;;  %v1254_v38 = vrot.slane %v74_v22, 3  ;;  %v1548_v23 = vadd.f32 %v1252_v56, %v1099_v5 }
  0xf4   :  { %v3238_v13 = vadd.f32 %v3158_v45, %v4644_v11  ;;  %v3159_v17 = vadd.f32 %v3079_v2, %v4743_v34  ;;  %v651_v7 = vadd.f32 %v358_v6, %v74_v22  ;;  %v807_v30 = vsel %vm729_vm1, %v805_v41, %v806_v40 }
  0xf5   :  { %v1255_v35 = vrot.slane %v4810_v39, 3  ;;  %v1703_v46 = vrot.slane %v74_v22, 4  ;;  %v1704_v28 = vrot.slane %v4810_v39, 4  ;;  %v1997_v62 = vadd.f32 %v1701_v36, %v1548_v23 }
  0xf6   :  { %v3318_v60 = vadd.f32 %v3238_v13, %v4790_v33  ;;  %v3239_v32 = vadd.f32 %v3159_v17, %v4745_v57  ;;  %v1100_v18 = vadd.f32 %v807_v30, %v651_v7  ;;  %v2152_v58 = vrot.slane %v74_v22, 5 }
  0xf7   :  { %v1256_v15 = vsel %vm1178_vm2, %v1254_v38, %v1255_v35  ;;  %v1705_v16 = vsel %vm1627_vm3, %v1703_v46, %v1704_v28  ;;  %v2153_v27 = vrot.slane %v4810_v39, 5  ;;  %v2446_v56 = vadd.f32 %v2150_v1, %v1997_v62 }
  0xf8   :  { %v3398_v24 = vadd.f32 %v3318_v60, %v4828_v3  ;;  %v3319_v0 = vadd.f32 %v3239_v32, %v4802_v12  ;;  %v1549_v42 = vadd.f32 %v1256_v15, %v1100_v18  ;;  %v2601_v25 = vrot.slane %v74_v22, 6  ;;  %v78_v18 = vld [vmem:[#allocation2 + $0x1b0] sm:$0xff] }
  0xf9   :  { %v2154_v29 = vsel %vm2076_vm4, %v2152_v58, %v2153_v27  ;;  %v2602_v36 = vrot.slane %v4810_v39, 6  ;;  %v3000_v20 = vadd.f32 %v4635_v10, %v4633_v63  ;;  %v4850_v31 = vadd.f32 %v2599_v4, %v2446_v56 }
  0xfa   :  { %v3478_v49 = vmul.f32 0.020408163, %v3398_v24  ;;  %v1998_v59 = vadd.f32 %v1705_v16, %v1549_v42  ;;  %v652_v1 = vadd.f32 %v357_v52, %v4810_v39  ;;  %v3001_v22 = vadd.f32 %v4741_v51, %v4737_v61  ;;  %v4887_v24 = vld [vmem:[#allocation2 + $0x1b8] sm:$0xff] }
  0xfb   :  { %v2603_v8 = vsel %vm2525_vm5, %v2601_v25, %v2602_v36  ;;  %v3080_v54 = vadd.f32 %v3000_v20, %v4638_v48  ;;  %v359_v26 = vrot.slane %v76_v14, 1  ;;  %v3399_v63 = vadd.f32 %v3319_v0, %v4850_v31 }
  0xfc   :  { %3558 = vst [vmem:[%s6561_s1 + $0xc0] sm:$0xff] %v3478_v49  ;;  %v2447_v55 = vadd.f32 %v2154_v29, %v1998_v59  ;;  %v1101_v4 = vadd.f32 %v806_v40, %v652_v1  ;;  %v360_v37 = vrot.slane %v4848_v53, 1  ;;  %v3081_v47 = vadd.f32 %v3001_v22, %v4743_v34 }
  0xfd   :  { %v3160_v39 = vadd.f32 %v3080_v54, %v4644_v11  ;;  %v808_v19 = vrot.slane %v76_v14, 2  ;;  %v809_v9 = vrot.slane %v4848_v53, 2  ;;  %v3479_v50 = vmul.f32 0.020408163, %v3399_v63 }
  0xfe   :  { %v4865_v61 = vadd.f32 %v2603_v8, %v2447_v55  ;;  %v1550_v44 = vadd.f32 %v1255_v35, %v1101_v4  ;;  %v361_v21 = vsel %vm280_vm0, %v359_v26, %v360_v37  ;;  %v3161_v52 = vadd.f32 %v3081_v47, %v4745_v57 }
  0xff   :  { %v3240_v43 = vadd.f32 %v3160_v39, %v4790_v33  ;;  %v653_v45 = vadd.f32 %v361_v21, %v76_v14  ;;  %v810_v5 = vsel %vm729_vm1, %v808_v19, %v809_v9  ;;  %3559 = vst [vmem:[%s6561_s1 + $0xc8] sm:$0x3] %v3479_v50  ;;  %v1257_v41 = vrot.slane %v76_v14, 3 }
 0x100   :  { %v1999_v2 = vadd.f32 %v1704_v28, %v1550_v44  ;;  %v1258_v6 = vrot.slane %v4848_v53, 3  ;;  %v1706_v40 = vrot.slane %v76_v14, 4  ;;  %v3241_v13 = vadd.f32 %v3161_v52, %v4802_v12 }
 0x101   :  { %v3320_v38 = vadd.f32 %v3240_v43, %v4828_v3  ;;  %v1102_v23 = vadd.f32 %v810_v5, %v653_v45  ;;  %v1707_v17 = vrot.slane %v4848_v53, 4  ;;  %v2155_v35 = vrot.slane %v76_v14, 5 }
 0x102   :  { %v2448_v7 = vadd.f32 %v2153_v27, %v1999_v2  ;;  %v1259_v30 = vsel %vm1178_vm2, %v1257_v41, %v1258_v6  ;;  %v2156_v46 = vrot.slane %v4848_v53, 5  ;;  %v3321_v28 = vadd.f32 %v3241_v13, %v4850_v31 }
 0x103   :  { %v3400_v60 = vadd.f32 %v3320_v38, %v4865_v61  ;;  %v1551_v62 = vadd.f32 %v1259_v30, %v1102_v23  ;;  %v1708_v32 = vsel %vm1627_vm3, %v1706_v40, %v1707_v17  ;;  %v2604_v58 = vrot.slane %v76_v14, 6 }
 0x104   :  { %v4883_v15 = vadd.f32 %v2602_v36, %v2448_v7  ;;  %v2157_v16 = vsel %vm2076_vm4, %v2155_v35, %v2156_v46  ;;  %v2605_v27 = vrot.slane %v4848_v53, 6  ;;  %v3002_v42 = vadd.f32 %v4638_v48, %v4635_v10 }
 0x105   :  { %v3480_v56 = vmul.f32 0.020408163, %v3400_v60  ;;  %v2000_v0 = vadd.f32 %v1708_v32, %v1551_v62  ;;  %v654_v29 = vadd.f32 %v360_v37, %v4848_v53  ;;  %v3003_v36 = vadd.f32 %v4743_v34, %v4741_v51 }
 0x106   :  { %v3401_v25 = vadd.f32 %v3321_v28, %v4883_v15  ;;  %v2606_v20 = vsel %vm2525_vm5, %v2604_v58, %v2605_v27  ;;  %v362_v49 = vrot.slane %v78_v18, 1  ;;  %v3082_v59 = vadd.f32 %v3002_v42, %v4644_v11 }
 0x107   :  { %3560 = vst [vmem:[%s6561_s1 + $0xd0] sm:$0xff] %v3480_v56  ;;  %v2449_v14 = vadd.f32 %v2157_v16, %v2000_v0  ;;  %v1103_v1 = vadd.f32 %v809_v9, %v654_v29  ;;  %v363_v10 = vrot.slane %v4887_v24, 1  ;;  %v3083_v53 = vadd.f32 %v3003_v36, %v4745_v57  ;;  %v4931_v16 = vld [vmem:[#allocation2 + $0x1c8] sm:$0xff] }
 0x108   :  { %v3481_v8 = vmul.f32 0.020408163, %v3401_v25  ;;  %v811_v54 = vrot.slane %v78_v18, 2  ;;  %v812_v22 = vrot.slane %v4887_v24, 2  ;;  %v3162_v51 = vadd.f32 %v3082_v59, %v4790_v33 }
 0x109   :  { %v4903_v26 = vadd.f32 %v2606_v20, %v2449_v14  ;;  %v1552_v63 = vadd.f32 %v1258_v6, %v1103_v1  ;;  %v364_v55 = vsel %vm280_vm0, %v362_v49, %v363_v10  ;;  %v3163_v4 = vadd.f32 %v3083_v53, %v4802_v12 }
 0x10a   :  { %3561 = vst [vmem:[%s6561_s1 + $0xd8] sm:$0x3] %v3481_v8  ;;  %v655_v37 = vadd.f32 %v364_v55, %v78_v18  ;;  %v813_v39 = vsel %vm729_vm1, %v811_v54, %v812_v22  ;;  %v1260_v47 = vrot.slane %v78_v18, 3  ;;  %v3242_v19 = vadd.f32 %v3162_v51, %v4828_v3 }
 0x10b   :  { %v2001_v9 = vadd.f32 %v1707_v17, %v1552_v63  ;;  %v1261_v50 = vrot.slane %v4887_v24, 3  ;;  %v1709_v44 = vrot.slane %v78_v18, 4  ;;  %v3243_v21 = vadd.f32 %v3163_v4, %v4850_v31  ;;  %v80_v17 = vld [vmem:[#allocation2 + $0x1c0] sm:$0xff] }
 0x10c   :  { %v1104_v43 = vadd.f32 %v813_v39, %v655_v37  ;;  %v1710_v52 = vrot.slane %v4887_v24, 4  ;;  %v2158_v45 = vrot.slane %v78_v18, 5  ;;  %v3322_v5 = vadd.f32 %v3242_v19, %v4865_v61 }
 0x10d   :  { %v2450_v2 = vadd.f32 %v2156_v46, %v2001_v9  ;;  %v1262_v41 = vsel %vm1178_vm2, %v1260_v47, %v1261_v50  ;;  %v2159_v6 = vrot.slane %v4887_v24, 5  ;;  %v3323_v40 = vadd.f32 %v3243_v21, %v4883_v15 }
 0x10e   :  { %v1553_v38 = vadd.f32 %v1262_v41, %v1104_v43  ;;  %v1711_v13 = vsel %vm1627_vm3, %v1709_v44, %v1710_v52  ;;  %v2607_v23 = vrot.slane %v78_v18, 6  ;;  %v3402_v7 = vadd.f32 %v3322_v5, %v4903_v26 }
 0x10f   :  { %v4922_v30 = vadd.f32 %v2605_v27, %v2450_v2  ;;  %v2160_v35 = vsel %vm2076_vm4, %v2158_v45, %v2159_v6  ;;  %v2608_v60 = vrot.slane %v4887_v24, 6  ;;  %v3004_v28 = vadd.f32 %v4644_v11, %v4638_v48 }
 0x110   :  { %v2002_v46 = vadd.f32 %v1711_v13, %v1553_v38  ;;  %v656_v62 = vadd.f32 %v363_v10, %v4887_v24  ;;  %v3005_v32 = vadd.f32 %v4745_v57, %v4743_v34  ;;  %v3482_v18 = vmul.f32 0.020408163, %v3402_v7 }
 0x111   :  { %v3403_v58 = vadd.f32 %v3323_v40, %v4922_v30  ;;  %v2609_v27 = vsel %vm2525_vm5, %v2607_v23, %v2608_v60  ;;  %v365_v56 = vrot.slane %v80_v17, 1  ;;  %v3084_v42 = vadd.f32 %v3004_v28, %v4790_v33  ;;  %v82_v40 = vld [vmem:[#allocation2 + $0x1d0] sm:$0xff] }
 0x112   :  { %v2451_v0 = vadd.f32 %v2160_v35, %v2002_v46  ;;  %v1105_v29 = vadd.f32 %v812_v22, %v656_v62  ;;  %v3085_v25 = vadd.f32 %v3005_v32, %v4802_v12  ;;  %3562 = vst [vmem:[%s6561_s1 + $0xe0] sm:$0xff] %v3482_v18  ;;  %v366_v34 = vrot.slane %v4931_v16, 1 }
 0x113   :  { %v3483_v48 = vmul.f32 0.020408163, %v3403_v58  ;;  %v814_v24 = vrot.slane %v80_v17, 2  ;;  %v815_v20 = vrot.slane %v4931_v16, 2  ;;  %v3164_v49 = vadd.f32 %v3084_v42, %v4828_v3 }
 0x114   :  { %v4942_v36 = vadd.f32 %v2609_v27, %v2451_v0  ;;  %v1554_v14 = vadd.f32 %v1261_v50, %v1105_v29  ;;  %v3165_v59 = vadd.f32 %v3085_v25, %v4850_v31  ;;  %v367_v1 = vsel %vm280_vm0, %v365_v56, %v366_v34 }
 0x115   :  { %3563 = vst [vmem:[%s6561_s1 + $0xe8] sm:$0x3] %v3483_v48  ;;  %v816_v10 = vsel %vm729_vm1, %v814_v24, %v815_v20  ;;  %v1263_v8 = vrot.slane %v80_v17, 3  ;;  %v1264_v53 = vrot.slane %v4931_v16, 3  ;;  %v3244_v54 = vadd.f32 %v3164_v49, %v4865_v61 }
 0x116   :  { %v2003_v22 = vadd.f32 %v1710_v52, %v1554_v14  ;;  %v3245_v51 = vadd.f32 %v3165_v59, %v4883_v15  ;;  %v657_v63 = vadd.f32 %v367_v1, %v80_v17  ;;  %v1712_v4 = vrot.slane %v80_v17, 4 }
 0x117   :  { %v1265_v55 = vsel %vm1178_vm2, %v1263_v8, %v1264_v53  ;;  %v1713_v37 = vrot.slane %v4931_v16, 4  ;;  %v2161_v39 = vrot.slane %v80_v17, 5  ;;  %v3324_v47 = vadd.f32 %v3244_v54, %v4903_v26 }
 0x118   :  { %v2452_v19 = vadd.f32 %v2159_v6, %v2003_v22  ;;  %v3325_v9 = vadd.f32 %v3245_v51, %v4922_v30  ;;  %v1106_v50 = vadd.f32 %v816_v10, %v657_v63  ;;  %v2162_v21 = vrot.slane %v4931_v16, 5  ;;  %v4966_v6 = vld [vmem:[#allocation2 + $0x1d8] sm:$0xff] }
 0x119   :  { %v1714_v44 = vsel %vm1627_vm3, %v1712_v4, %v1713_v37  ;;  %v2610_v43 = vrot.slane %v80_v17, 6  ;;  %v2611_v52 = vrot.slane %v4931_v16, 6  ;;  %v3404_v45 = vadd.f32 %v3324_v47, %v4942_v36 }
 0x11a   :  { %v4962_v5 = vadd.f32 %v2608_v60, %v2452_v19  ;;  %v1555_v2 = vadd.f32 %v1265_v55, %v1106_v50  ;;  %v3006_v41 = vadd.f32 %v4790_v33, %v4644_v11  ;;  %v2163_v38 = vsel %vm2076_vm4, %v2161_v39, %v2162_v21  ;;  %v84_v50 = vld [vmem:[#allocation2 + $0x1e0] sm:$0xff] }
 0x11b   :  { %v2612_v13 = vsel %vm2525_vm5, %v2610_v43, %v2611_v52  ;;  %v658_v23 = vadd.f32 %v366_v34, %v4931_v16  ;;  %v3007_v17 = vadd.f32 %v4802_v12, %v4745_v57  ;;  %v3484_v7 = vmul.f32 0.020408163, %v3404_v45 }
 0x11c   :  { %v3405_v35 = vadd.f32 %v3325_v9, %v4962_v5  ;;  %v2004_v60 = vadd.f32 %v1714_v44, %v1555_v2  ;;  %v3086_v46 = vadd.f32 %v3006_v41, %v4828_v3  ;;  %v368_v62 = vrot.slane %v82_v40, 1  ;;  %v5005_v44 = vld [vmem:[#allocation2 + $0x1e8] sm:$0xff] }
 0x11d   :  { %v1107_v28 = vadd.f32 %v815_v20, %v658_v23  ;;  %v3087_v11 = vadd.f32 %v3007_v17, %v4850_v31  ;;  %v369_v32 = vrot.slane %v4966_v6, 1  ;;  %3564 = vst [vmem:[%s6561_s1 + $0xf0] sm:$0xff] %v3484_v7  ;;  %v817_v58 = vrot.slane %v82_v40, 2 }
 0x11e   :  { %v3485_v16 = vmul.f32 0.020408163, %v3405_v35  ;;  %v2453_v18 = vadd.f32 %v2163_v38, %v2004_v60  ;;  %v3166_v57 = vadd.f32 %v3086_v46, %v4865_v61  ;;  %v818_v42 = vrot.slane %v4966_v6, 2 }
 0x11f   :  { %v1556_v27 = vadd.f32 %v1264_v53, %v1107_v28  ;;  %v3167_v56 = vadd.f32 %v3087_v11, %v4883_v15  ;;  %v370_v0 = vsel %vm280_vm0, %v368_v62, %v369_v32  ;;  %v1266_v34 = vrot.slane %v82_v40, 3 }
 0x120   :  { %3565 = vst [vmem:[%s6561_s1 + $0xf8] sm:$0x3] %v3485_v16  ;;  %v4987_v29 = vadd.f32 %v2612_v13, %v2453_v18  ;;  %v3246_v25 = vadd.f32 %v3166_v57, %v4903_v26  ;;  %v659_v48 = vadd.f32 %v370_v0, %v82_v40  ;;  %v819_v49 = vsel %vm729_vm1, %v817_v58, %v818_v42 }
 0x121   :  { %v2005_v24 = vadd.f32 %v1713_v37, %v1556_v27  ;;  %v3247_v20 = vadd.f32 %v3167_v56, %v4922_v30  ;;  %v1267_v14 = vrot.slane %v4966_v6, 3  ;;  %v1715_v10 = vrot.slane %v82_v40, 4 }
 0x122   :  { %v3326_v59 = vadd.f32 %v3246_v25, %v4942_v36  ;;  %v1108_v1 = vadd.f32 %v819_v49, %v659_v48  ;;  %v1716_v8 = vrot.slane %v4966_v6, 4  ;;  %v2164_v51 = vrot.slane %v82_v40, 5 }
 0x123   :  { %v2454_v53 = vadd.f32 %v2162_v21, %v2005_v24  ;;  %v3327_v54 = vadd.f32 %v3247_v20, %v4962_v5  ;;  %v1268_v22 = vsel %vm1178_vm2, %v1266_v34, %v1267_v14  ;;  %v2165_v37 = vrot.slane %v4966_v6, 5 }
 0x124   :  { %v3406_v63 = vadd.f32 %v3326_v59, %v4987_v29  ;;  %v1557_v55 = vadd.f32 %v1268_v22, %v1108_v1  ;;  %v1717_v4 = vsel %vm1627_vm3, %v1715_v10, %v1716_v8  ;;  %v2613_v47 = vrot.slane %v82_v40, 6 }
 0x125   :  { %v5000_v39 = vadd.f32 %v2611_v52, %v2454_v53  ;;  %v2614_v19 = vrot.slane %v4966_v6, 6  ;;  %v3008_v9 = vadd.f32 %v4828_v3, %v4790_v33  ;;  %v2166_v45 = vsel %vm2076_vm4, %v2164_v51, %v2165_v37 }
 0x126   :  { %v3486_v21 = vmul.f32 0.020408163, %v3406_v63  ;;  %v2006_v43 = vadd.f32 %v1717_v4, %v1557_v55  ;;  %v660_v2 = vadd.f32 %v369_v32, %v4966_v6  ;;  %v3009_v38 = vadd.f32 %v4850_v31, %v4802_v12  ;;  %v5045_v63 = vld [vmem:[#allocation2 + $0x1f8] sm:$0xff] }
 0x127   :  { %v3407_v41 = vadd.f32 %v3327_v54, %v5000_v39  ;;  %v2615_v52 = vsel %vm2525_vm5, %v2613_v47, %v2614_v19  ;;  %v3088_v40 = vadd.f32 %v3008_v9, %v4865_v61  ;;  %v371_v23 = vrot.slane %v84_v50, 1 }
 0x128   :  { %3566 = vst [vmem:[%s6561_s1 + $0x100] sm:$0xff] %v3486_v21  ;;  %v2455_v33 = vadd.f32 %v2166_v45, %v2006_v43  ;;  %v1109_v13 = vadd.f32 %v818_v42, %v660_v2  ;;  %v372_v17 = vrot.slane %v5005_v44, 1  ;;  %v3089_v35 = vadd.f32 %v3009_v38, %v4883_v15 }
 0x129   :  { %v3487_v7 = vmul.f32 0.020408163, %v3407_v41  ;;  %v3168_v6 = vadd.f32 %v3088_v40, %v4903_v26  ;;  %v820_v60 = vrot.slane %v84_v50, 2  ;;  %v821_v11 = vrot.slane %v5005_v44, 2 }
 0x12a   :  { %v5020_v46 = vadd.f32 %v2615_v52, %v2455_v33  ;;  %v1558_v28 = vadd.f32 %v1267_v14, %v1109_v13  ;;  %v373_v12 = vsel %vm280_vm0, %v371_v23, %v372_v17  ;;  %v3169_v32 = vadd.f32 %v3089_v35, %v4922_v30 }
 0x12b   :  { %3567 = vst [vmem:[%s6561_s1 + $0x108] sm:$0x3] %v3487_v7  ;;  %v3248_v62 = vadd.f32 %v3168_v6, %v4942_v36  ;;  %v661_v16 = vadd.f32 %v373_v12, %v84_v50  ;;  %v1269_v18 = vrot.slane %v84_v50, 3  ;;  %v822_v58 = vsel %vm729_vm1, %v820_v60, %v821_v11 }
 0x12c   :  { %v2007_v57 = vadd.f32 %v1716_v8, %v1558_v28  ;;  %v1270_v27 = vrot.slane %v5005_v44, 3  ;;  %v1718_v56 = vrot.slane %v84_v50, 4  ;;  %v3249_v42 = vadd.f32 %v3169_v32, %v4962_v5  ;;  %v5039_v8 = vld [vmem:[#allocation2 + $0x1f0] sm:$0xff] }
 0x12d   :  { %v3328_v0 = vadd.f32 %v3248_v62, %v4987_v29  ;;  %v1110_v25 = vadd.f32 %v822_v58, %v661_v16  ;;  %v1719_v48 = vrot.slane %v5005_v44, 4  ;;  %v2167_v20 = vrot.slane %v84_v50, 5 }
 0x12e   :  { %v2456_v34 = vadd.f32 %v2165_v37, %v2007_v57  ;;  %v1271_v24 = vsel %vm1178_vm2, %v1269_v18, %v1270_v27  ;;  %v2168_v49 = vrot.slane %v5005_v44, 5  ;;  %v3329_v59 = vadd.f32 %v3249_v42, %v5000_v39 }
 0x12f   :  { %v3408_v14 = vadd.f32 %v3328_v0, %v5020_v46  ;;  %v1559_v1 = vadd.f32 %v1271_v24, %v1110_v25  ;;  %v1720_v10 = vsel %vm1627_vm3, %v1718_v56, %v1719_v48  ;;  %v2616_v22 = vrot.slane %v84_v50, 6 }
 0x130   :  { %v5041_v53 = vadd.f32 %v2614_v19, %v2456_v34  ;;  %v2169_v54 = vsel %vm2076_vm4, %v2167_v20, %v2168_v49  ;;  %v2617_v51 = vrot.slane %v5005_v44, 6  ;;  %v3010_v37 = vadd.f32 %v4865_v61, %v4828_v3 }
 0x131   :  { %v3488_v55 = vmul.f32 0.020408163, %v3408_v14  ;;  %v2008_v4 = vadd.f32 %v1720_v10, %v1559_v1  ;;  %v662_v47 = vadd.f32 %v372_v17, %v5005_v44  ;;  %v3011_v19 = vadd.f32 %v4883_v15, %v4850_v31 }
 0x132   :  { %v3409_v9 = vadd.f32 %v3329_v59, %v5041_v53  ;;  %v2618_v21 = vsel %vm2525_vm5, %v2616_v22, %v2617_v51  ;;  %v374_v50 = vrot.slane %v5039_v8, 1  ;;  %v3090_v45 = vadd.f32 %v3010_v37, %v4903_v26  ;;  %v5100_v22 = vld [vmem:[#allocation2 + $0x218] sm:$0xff] }
 0x133   :  { %3568 = vst [vmem:[%s6561_s1 + $0x110] sm:$0xff] %v3488_v55  ;;  %v2457_v43 = vadd.f32 %v2169_v54, %v2008_v4  ;;  %v1111_v2 = vadd.f32 %v821_v11, %v662_v47  ;;  %v375_v3 = vrot.slane %v5045_v63, 1  ;;  %v3091_v41 = vadd.f32 %v3011_v19, %v4922_v30  ;;  %v5096_v54 = vld [vmem:[#allocation2 + $0x208] sm:$0xff] }
 0x134   :  { %v3489_v44 = vmul.f32 0.020408163, %v3409_v9  ;;  %v823_v52 = vrot.slane %v5039_v8, 2  ;;  %v824_v40 = vrot.slane %v5045_v63, 2  ;;  %v3170_v38 = vadd.f32 %v3090_v45, %v4942_v36  ;;  %v5106_v9 = vld [vmem:[#allocation2 + $0x220] sm:$0xff] }
 0x135   :  { %v5063_v31 = vadd.f32 %v2618_v21, %v2457_v43  ;;  %v1560_v33 = vadd.f32 %v1270_v27, %v1111_v2  ;;  %v376_v13 = vsel %vm280_vm0, %v374_v50, %v375_v3  ;;  %v3171_v23 = vadd.f32 %v3091_v41, %v4962_v5  ;;  %v5124_v41 = vld [vmem:[#allocation2 + $0x248] sm:$0xff] }
 0x136   :  { %3569 = vst [vmem:[%s6561_s1 + $0x118] sm:$0x3] %v3489_v44  ;;  %v663_v17 = vadd.f32 %v376_v13, %v5039_v8  ;;  %v825_v7 = vsel %vm729_vm1, %v823_v52, %v824_v40  ;;  %v1272_v6 = vrot.slane %v5039_v8, 3  ;;  %v3250_v35 = vadd.f32 %v3170_v38, %v4987_v29  ;;  %v5122_v44 = vld [vmem:[#allocation2 + $0x240] sm:$0xff]  ;;  %v5129_v52 = vld [vmem:[#allocation2 + $0x250] sm:$0xff] }
 0x137   :  { %v2009_v60 = vadd.f32 %v1719_v48, %v1560_v33  ;;  %v1273_v28 = vrot.slane %v5045_v63, 3  ;;  %v1721_v12 = vrot.slane %v5039_v8, 4  ;;  %v3251_v11 = vadd.f32 %v3171_v23, %v5000_v39  ;;  %v5086_v48 = vld [vmem:[#allocation2 + $0x200] sm:$0xff] }
 0x138   :  { %v1112_v62 = vadd.f32 %v825_v7, %v663_v17  ;;  %v1722_v32 = vrot.slane %v5045_v63, 4  ;;  %v2170_v16 = vrot.slane %v5039_v8, 5  ;;  %v3330_v18 = vadd.f32 %v3250_v35, %v5020_v46  ;;  %v5141_v17 = vld [vmem:[#allocation2 + $0x258] sm:$0xff]  ;;  %v5143_v7 = vld [vmem:[#allocation2 + $0x260] sm:$0xff]  ;;  %v5146_v35 = vld [vmem:[#allocation2 + $0x268] sm:$0xff] }
 0x139   :  { %v2458_v57 = vadd.f32 %v2168_v49, %v2009_v60  ;;  %v1274_v58 = vsel %vm1178_vm2, %v1272_v6, %v1273_v28  ;;  %v2171_v27 = vrot.slane %v5045_v63, 5  ;;  %v3331_v56 = vadd.f32 %v3251_v11, %v5041_v53 }
 0x13a   :  { %v1561_v0 = vadd.f32 %v1274_v58, %v1112_v62  ;;  %v1723_v42 = vsel %vm1627_vm3, %v1721_v12, %v1722_v32  ;;  %v2619_v25 = vrot.slane %v5039_v8, 6  ;;  %v3410_v34 = vadd.f32 %v3330_v18, %v5063_v31  ;;  %v5098_v8 = vld [vmem:[#allocation2 + $0x210] sm:$0xff] }
 0x13b   :  { %v2907_v24 = vadd.f32 %v2617_v51, %v2458_v57  ;;  %v2172_v20 = vsel %vm2076_vm4, %v2170_v16, %v2171_v27  ;;  %v2620_v49 = vrot.slane %v5045_v63, 6  ;;  %v3012_v59 = vadd.f32 %v4903_v26, %v4865_v61 }
 0x13c   :  { %v2010_v14 = vadd.f32 %v1723_v42, %v1561_v0  ;;  %v664_v1 = vadd.f32 %v375_v3, %v5045_v63  ;;  %v3013_v10 = vadd.f32 %v4922_v30, %v4883_v15  ;;  %v3490_v51 = vmul.f32 0.020408163, %v3410_v34  ;;  %v5108_v15 = vld [vmem:[#allocation2 + $0x228] sm:$0xff]  ;;  %v5110_v30 = vld [vmem:[#allocation2 + $0x230] sm:$0xff]  ;;  %v5120_v3 = vld [vmem:[#allocation2 + $0x238] sm:$0xff] }
 0x13d   :  { %v3411_v55 = vadd.f32 %v3331_v56, %v2907_v24  ;;  %v2621_v4 = vsel %vm2525_vm5, %v2619_v25, %v2620_v49  ;;  %v377_v37 = vrot.slane %v5086_v48, 1  ;;  %v3092_v61 = vadd.f32 %v3012_v59, %v4942_v36 }
 0x13e   :  { %v2459_v47 = vadd.f32 %v2172_v20, %v2010_v14  ;;  %v1113_v26 = vadd.f32 %v824_v40, %v664_v1  ;;  %v3093_v63 = vadd.f32 %v3013_v10, %v4962_v5  ;;  %3570 = vst [vmem:[%s6561_s1 + $0x120] sm:$0xff] %v3490_v51  ;;  %v378_v19 = vrot.slane %v5096_v54, 1 }
 0x13f   :  { %v3491_v21 = vmul.f32 0.020408163, %v3411_v55  ;;  %v380_v50 = vrot.slane %v5098_v8, 1  ;;  %v381_v36 = vrot.slane %v5100_v22, 1  ;;  %v3172_v5 = vadd.f32 %v3092_v61, %v4987_v29 }
 0x140   :  { %v2908_v43 = vadd.f32 %v2621_v4, %v2459_v47  ;;  %v1562_v45 = vadd.f32 %v1273_v28, %v1113_v26  ;;  %v3173_v2 = vadd.f32 %v3093_v63, %v5000_v39  ;;  %v379_v40 = vsel %vm280_vm0, %v377_v37, %v378_v19 }
 0x141   :  { %3571 = vst [vmem:[%s6561_s1 + $0x128] sm:$0x3] %v3491_v21  ;;  %v382_v29 = vsel %vm280_vm0, %v380_v50, %v381_v36  ;;  %v383_v39 = vrot.slane %v5106_v9, 1  ;;  %v384_v38 = vrot.slane %v5108_v15, 1  ;;  %v3252_v33 = vadd.f32 %v3172_v5, %v5020_v46 }
 0x142   :  { %v2011_v13 = vadd.f32 %v1722_v32, %v1562_v45  ;;  %v3253_v23 = vadd.f32 %v3173_v2, %v5041_v53  ;;  %v386_v6 = vrot.slane %v5110_v30, 1  ;;  %v387_v28 = vrot.slane %v5120_v3, 1 }
 0x143   :  { %v385_v60 = vsel %vm280_vm0, %v383_v39, %v384_v38  ;;  %v389_v12 = vrot.slane %v5122_v44, 1  ;;  %v390_v46 = vrot.slane %v5124_v41, 1  ;;  %v3332_v53 = vadd.f32 %v3252_v33, %v5063_v31 }
 0x144   :  { %v2460_v11 = vadd.f32 %v2171_v27, %v2011_v13  ;;  %v3333_v62 = vadd.f32 %v3253_v23, %v2907_v24  ;;  %v392_v32 = vrot.slane %v5129_v52, 1  ;;  %v388_v16 = vsel %vm280_vm0, %v386_v6, %v387_v28 }
 0x145   :  { %v391_v18 = vsel %vm280_vm0, %v389_v12, %v390_v46  ;;  %v393_v57 = vrot.slane %v5141_v17, 1  ;;  %v395_v58 = vrot.slane %v5143_v7, 1  ;;  %v3412_v56 = vadd.f32 %v3332_v53, %v2908_v43 }
 0x146   :  { %v2909_v0 = vadd.f32 %v2620_v49, %v2460_v11  ;;  %v396_v31 = vrot.slane %v5146_v35, 1  ;;  %v665_v27 = vadd.f32 %v379_v40, %v5086_v48  ;;  %v667_v25 = vadd.f32 %v382_v29, %v5098_v8 }
 0x147   :  { %v394_v42 = vsel %vm280_vm0, %v392_v32, %v393_v57  ;;  %v669_v34 = vadd.f32 %v385_v60, %v5106_v9  ;;  %v671_v24 = vadd.f32 %v388_v16, %v5110_v30  ;;  %v3492_v20 = vmul.f32 0.020408163, %v3412_v56 }
 0x148   :  { %v3413_v14 = vadd.f32 %v3333_v62, %v2909_v0  ;;  %v397_v49 = vsel %vm280_vm0, %v395_v58, %v396_v31  ;;  %v673_v59 = vadd.f32 %v391_v18, %v5122_v44  ;;  %v675_v1 = vadd.f32 %v394_v42, %v5129_v52 }
 0x149   :  { %v677_v10 = vadd.f32 %v397_v49, %v5143_v7  ;;  %v826_v51 = vrot.slane %v5086_v48, 2  ;;  %v827_v55 = vrot.slane %v5096_v54, 2  ;;  %3572 = vst [vmem:[%s6561_s1 + $0x130] sm:$0xff] %v3492_v20  ;;  %v829_v37 = vrot.slane %v5098_v8, 2 }
 0x14a   :  { %v3493_v4 = vmul.f32 0.020408163, %v3413_v14  ;;  %v830_v47 = vrot.slane %v5100_v22, 2  ;;  %v832_v61 = vrot.slane %v5106_v9, 2  ;;  %v833_v63 = vrot.slane %v5108_v15, 2 }
 0x14b   :  { %v828_v26 = vsel %vm729_vm1, %v826_v51, %v827_v55  ;;  %v835_v21 = vrot.slane %v5110_v30, 2  ;;  %v836_v50 = vrot.slane %v5120_v3, 2  ;;  %v838_v5 = vrot.slane %v5122_v44, 2 }
 0x14c   :  { %3573 = vst [vmem:[%s6561_s1 + $0x138] sm:$0x3] %v3493_v4  ;;  %v831_v43 = vsel %vm729_vm1, %v829_v37, %v830_v47  ;;  %v839_v45 = vrot.slane %v5124_v41, 2  ;;  %v841_v2 = vrot.slane %v5129_v52, 2  ;;  %v834_v40 = vsel %vm729_vm1, %v832_v61, %v833_v63 }
 0x14d   :  { %v837_v29 = vsel %vm729_vm1, %v835_v21, %v836_v50  ;;  %v842_v39 = vrot.slane %v5141_v17, 2  ;;  %v844_v33 = vrot.slane %v5143_v7, 2  ;;  %v845_v23 = vrot.slane %v5146_v35, 2 }
 0x14e   :  { %v840_v13 = vsel %vm729_vm1, %v838_v5, %v839_v45  ;;  %v1114_v6 = vadd.f32 %v828_v26, %v665_v27  ;;  %v1116_v60 = vadd.f32 %v831_v43, %v667_v25  ;;  %v1118_v53 = vadd.f32 %v834_v40, %v669_v34 }
 0x14f   :  { %v843_v12 = vsel %vm729_vm1, %v841_v2, %v842_v39  ;;  %v1120_v11 = vadd.f32 %v837_v29, %v671_v24  ;;  %v1122_v62 = vadd.f32 %v840_v13, %v673_v59  ;;  %v846_v32 = vsel %vm729_vm1, %v844_v33, %v845_v23 }
 0x150   :  { %v1124_v16 = vadd.f32 %v843_v12, %v675_v1  ;;  %v1275_v18 = vrot.slane %v5086_v48, 3  ;;  %v1276_v58 = vrot.slane %v5096_v54, 3  ;;  %v1126_v56 = vadd.f32 %v846_v32, %v677_v10 }
 0x151   :  { %v1278_v0 = vrot.slane %v5098_v8, 3  ;;  %v1279_v27 = vrot.slane %v5100_v22, 3  ;;  %v1281_v42 = vrot.slane %v5106_v9, 3  ;;  %v1282_v34 = vrot.slane %v5108_v15, 3 }
 0x152   :  { %v1277_v25 = vsel %vm1178_vm2, %v1275_v18, %v1276_v58  ;;  %v1284_v24 = vrot.slane %v5110_v30, 3  ;;  %v1285_v20 = vrot.slane %v5120_v3, 3  ;;  %v1287_v49 = vrot.slane %v5122_v44, 3 }
 0x153   :  { %v1280_v14 = vsel %vm1178_vm2, %v1278_v0, %v1279_v27  ;;  %v1288_v59 = vrot.slane %v5124_v41, 3  ;;  %v1290_v1 = vrot.slane %v5129_v52, 3  ;;  %v1283_v10 = vsel %vm1178_vm2, %v1281_v42, %v1282_v34 }
 0x154   :  { %v1286_v51 = vsel %vm1178_vm2, %v1284_v24, %v1285_v20  ;;  %v1291_v4 = vrot.slane %v5141_v17, 3  ;;  %v1293_v37 = vrot.slane %v5143_v7, 3  ;;  %v1294_v26 = vrot.slane %v5146_v35, 3 }
 0x155   :  { %v1289_v61 = vsel %vm1178_vm2, %v1287_v49, %v1288_v59  ;;  %v1563_v21 = vadd.f32 %v1277_v25, %v1114_v6  ;;  %v1565_v43 = vadd.f32 %v1280_v14, %v1116_v60  ;;  %v1567_v2 = vadd.f32 %v1283_v10, %v1118_v53 }
 0x156   :  { %v1292_v5 = vsel %vm1178_vm2, %v1290_v1, %v1291_v4  ;;  %v1569_v40 = vadd.f32 %v1286_v51, %v1120_v11  ;;  %v1571_v29 = vadd.f32 %v1289_v61, %v1122_v62  ;;  %v1295_v33 = vsel %vm1178_vm2, %v1293_v37, %v1294_v26 }
 0x157   :  { %v1573_v13 = vadd.f32 %v1292_v5, %v1124_v16  ;;  %v1724_v12 = vrot.slane %v5086_v48, 4  ;;  %v1725_v32 = vrot.slane %v5096_v54, 4  ;;  %v1575_v18 = vadd.f32 %v1295_v33, %v1126_v56 }
 0x158   :  { %v1727_v6 = vrot.slane %v5098_v8, 4  ;;  %v1728_v60 = vrot.slane %v5100_v22, 4  ;;  %v1730_v0 = vrot.slane %v5106_v9, 4  ;;  %v6583_v11 = vrot.slane %v5108_v15, 4 }
 0x159   :  { %v1726_v53 = vsel %vm1627_vm3, %v1724_v12, %v1725_v32  ;;  %v1733_v62 = vrot.slane %v5110_v30, 4  ;;  %v6582_v16 = vrot.slane %v5120_v3, 4  ;;  %v1736_v42 = vrot.slane %v5122_v44, 4 }
 0x15a   :  { %v1729_v56 = vsel %vm1627_vm3, %v1727_v6, %v1728_v60  ;;  %v6584_v25 = vrot.slane %v5124_v41, 4  ;;  %v1739_v24 = vrot.slane %v5129_v52, 4  ;;  %v1732_v14 = vsel %vm1627_vm3, %v1730_v0, %v6583_v11 }
 0x15b   :  { %v1735_v49 = vsel %vm1627_vm3, %v1733_v62, %v6582_v16  ;;  %v6590_v1 = vrot.slane %v5141_v17, 4  ;;  %v1742_v10 = vrot.slane %v5143_v7, 4  ;;  %v6588_v37 = vrot.slane %v5146_v35, 4 }
 0x15c   :  { %v1738_v51 = vsel %vm1627_vm3, %v1736_v42, %v6584_v25  ;;  %v2012_v61 = vadd.f32 %v1726_v53, %v1563_v21  ;;  %v2014_v5 = vadd.f32 %v1729_v56, %v1565_v43  ;;  %v2016_v12 = vadd.f32 %v1732_v14, %v1567_v2 }
 0x15d   :  { %v1741_v33 = vsel %vm1627_vm3, %v1739_v24, %v6590_v1  ;;  %v2018_v6 = vadd.f32 %v1735_v49, %v1569_v40  ;;  %v2020_v0 = vadd.f32 %v1738_v51, %v1571_v29  ;;  %v1744_v62 = vsel %vm1627_vm3, %v1742_v10, %v6588_v37 }
 0x15e   :  { %v2022_v16 = vadd.f32 %v1741_v33, %v1573_v13  ;;  %v2173_v11 = vrot.slane %v5086_v48, 5  ;;  %v6587_v42 = vrot.slane %v5096_v54, 5  ;;  %v2024_v25 = vadd.f32 %v1744_v62, %v1575_v18 }
 0x15f   :  { %v2176_v21 = vrot.slane %v5098_v8, 5  ;;  %v6585_v43 = vrot.slane %v5100_v22, 5  ;;  %v2179_v53 = vrot.slane %v5106_v9, 5  ;;  %v6586_v40 = vrot.slane %v5108_v15, 5 }
 0x160   :  { %v2175_v2 = vsel %vm2076_vm4, %v2173_v11, %v6587_v42  ;;  %v2182_v29 = vrot.slane %v5110_v30, 5  ;;  %v6589_v13 = vrot.slane %v5120_v3, 5  ;;  %v2185_v56 = vrot.slane %v5122_v44, 5 }
 0x161   :  { %v2178_v18 = vsel %vm2076_vm4, %v2176_v21, %v6585_v43  ;;  %v6591_v24 = vrot.slane %v5124_v41, 5  ;;  %v2188_v14 = vrot.slane %v5129_v52, 5  ;;  %v2181_v11 = vsel %vm2076_vm4, %v2179_v53, %v6586_v40 }
 0x162   :  { %v2184_v49 = vsel %vm2076_vm4, %v2182_v29, %v6589_v13  ;;  %v2189_v10 = vrot.slane %v5141_v17, 5  ;;  %v2191_v51 = vrot.slane %v5143_v7, 5  ;;  %v2192_v62 = vrot.slane %v5146_v35, 5 }
 0x163   :  { %v2187_v33 = vsel %vm2076_vm4, %v2185_v56, %v6591_v24  ;;  %v2461_v21 = vadd.f32 %v2175_v2, %v2012_v61  ;;  %v2463_v43 = vadd.f32 %v2178_v18, %v2014_v5  ;;  %v2465_v40 = vadd.f32 %v2181_v11, %v2016_v12 }
 0x164   :  { %v2190_v53 = vsel %vm2076_vm4, %v2188_v14, %v2189_v10  ;;  %v2467_v42 = vadd.f32 %v2184_v49, %v2018_v6  ;;  %v2469_v37 = vadd.f32 %v2187_v33, %v2020_v0  ;;  %v2193_v29 = vsel %vm2076_vm4, %v2191_v51, %v2192_v62 }
 0x165   :  { %v2471_v13 = vadd.f32 %v2190_v53, %v2022_v16  ;;  %v2622_v1 = vrot.slane %v5086_v48, 6  ;;  %v2623_v56 = vrot.slane %v5096_v54, 6  ;;  %v2473_v24 = vadd.f32 %v2193_v29, %v2024_v25 }
 0x166   :  { %v2625_v61 = vrot.slane %v5098_v8, 6  ;;  %v2626_v5 = vrot.slane %v5100_v22, 6  ;;  %v2628_v2 = vrot.slane %v5106_v9, 6  ;;  %v2629_v6 = vrot.slane %v5108_v15, 6 }
 0x167   :  { %v2624_v12 = vsel %vm2525_vm5, %v2622_v1, %v2623_v56  ;;  %v2631_v0 = vrot.slane %v5110_v30, 6  ;;  %v2632_v16 = vrot.slane %v5120_v3, 6  ;;  %v2634_v8 = vrot.slane %v5122_v44, 6 }
 0x168   :  { %v2627_v48 = vsel %vm2525_vm5, %v2625_v61, %v2626_v5  ;;  %v2635_v25 = vrot.slane %v5124_v41, 6  ;;  %v2637_v9 = vrot.slane %v5129_v52, 6  ;;  %v2630_v1 = vsel %vm2525_vm5, %v2628_v2, %v2629_v6 }
 0x169   :  { %v2633_v30 = vsel %vm2525_vm5, %v2631_v0, %v2632_v16  ;;  %v2638_v18 = vrot.slane %v5141_v17, 6  ;;  %v2640_v14 = vrot.slane %v5143_v7, 6  ;;  %v2641_v11 = vrot.slane %v5146_v35, 6 }
 0x16a   :  { %v2636_v44 = vsel %vm2525_vm5, %v2634_v8, %v2635_v25  ;;  %v2910_v49 = vadd.f32 %v2624_v12, %v2461_v21  ;;  %v5353_v52 = vadd.f32 %v2627_v48, %v2463_v43  ;;  %v5356_v33 = vadd.f32 %v2630_v1, %v2465_v40 }
 0x16b   :  { %v2639_v51 = vsel %vm2525_vm5, %v2637_v9, %v2638_v18  ;;  %v5358_v53 = vadd.f32 %v2633_v30, %v2467_v42  ;;  %v5360_v29 = vadd.f32 %v2636_v44, %v2469_v37  ;;  %v2642_v61 = vsel %vm2525_vm5, %v2640_v14, %v2641_v11 }
 0x16c   :  { %v5363_v7 = vadd.f32 %v2639_v51, %v2471_v13  ;;  %v3014_v2 = vadd.f32 %v5353_v52, %v2910_v49  ;;  %v666_v21 = vadd.f32 %v378_v19, %v5096_v54  ;;  %v5369_v43 = vadd.f32 %v2642_v61, %v2473_v24 }
 0x16d   :  { %v668_v40 = vadd.f32 %v381_v36, %v5100_v22  ;;  %v670_v37 = vadd.f32 %v384_v38, %v5108_v15  ;;  %v672_v42 = vadd.f32 %v387_v28, %v5120_v3  ;;  %v674_v19 = vadd.f32 %v390_v46, %v5124_v41 }
 0x16e   :  { %v3094_v13 = vadd.f32 %v3014_v2, %v5356_v33  ;;  %v676_v24 = vadd.f32 %v393_v57, %v5141_v17  ;;  %v678_v36 = vadd.f32 %v396_v31, %v5146_v35  ;;  %v1115_v38 = vadd.f32 %v827_v55, %v666_v21 }
 0x16f   :  { %v1117_v28 = vadd.f32 %v830_v47, %v668_v40  ;;  %v1119_v12 = vadd.f32 %v833_v63, %v670_v37  ;;  %v1121_v46 = vadd.f32 %v836_v50, %v672_v42  ;;  %v1123_v57 = vadd.f32 %v839_v45, %v674_v19 }
 0x170   :  { %v3174_v0 = vadd.f32 %v3094_v13, %v5358_v53  ;;  %v1125_v31 = vadd.f32 %v842_v39, %v676_v24  ;;  %v1127_v55 = vadd.f32 %v845_v23, %v678_v36  ;;  %v1564_v47 = vadd.f32 %v1276_v58, %v1115_v38  ;;  %v102_v38 = vld [vmem:[#allocation2 + $0x270] sm:$0xff] }
 0x171   :  { %v1566_v63 = vadd.f32 %v1279_v27, %v1117_v28  ;;  %v1568_v50 = vadd.f32 %v1282_v34, %v1119_v12  ;;  %v1570_v48 = vadd.f32 %v1285_v20, %v1121_v46  ;;  %v1572_v39 = vadd.f32 %v1288_v59, %v1123_v57  ;;  %v5450_v28 = vld [vmem:[#allocation2 + $0x278] sm:$0xff] }
 0x172   :  { %v3254_v45 = vadd.f32 %v3174_v0, %v5360_v29  ;;  %v1574_v23 = vadd.f32 %v1291_v4, %v1125_v31  ;;  %v1576_v58 = vadd.f32 %v1294_v26, %v1127_v55  ;;  %v2013_v27 = vadd.f32 %v1725_v32, %v1564_v47 }
 0x173   :  { %v2015_v34 = vadd.f32 %v1728_v60, %v1566_v63  ;;  %v6622_v8 = vrot.slane %v5108_v15, 4  ;;  %v6623_v9 = vrot.slane %v5120_v3, 4  ;;  %v6624_v30 = vrot.slane %v5124_v41, 4 }
 0x174   :  { %v3334_v59 = vadd.f32 %v3254_v45, %v5363_v7  ;;  %v6625_v14 = vrot.slane %v5141_v17, 4  ;;  %v6626_v44 = vrot.slane %v5146_v35, 4  ;;  %v6627_v49 = vrot.slane %v5096_v54, 5 }
 0x175   :  { %v2017_v20 = vadd.f32 %v6622_v8, %v1568_v50  ;;  %v2019_v1 = vadd.f32 %v6623_v9, %v1570_v48  ;;  %v2021_v4 = vadd.f32 %v6624_v30, %v1572_v39  ;;  %v6628_v51 = vrot.slane %v5100_v22, 5  ;;  %v5484_v50 = vld [vmem:[#allocation2 + $0x280] sm:$0xff] }
 0x176   :  { %v2023_v26 = vadd.f32 %v6625_v14, %v1574_v23  ;;  %v2025_v32 = vadd.f32 %v6626_v44, %v1576_v58  ;;  %v2462_v60 = vadd.f32 %v6627_v49, %v2013_v27  ;;  %v6629_v2 = vrot.slane %v5108_v15, 5  ;;  %v5489_v58 = vld [vmem:[#allocation2 + $0x288] sm:$0xff] }
 0x177   :  { %v2464_v61 = vadd.f32 %v6628_v51, %v2015_v34  ;;  %v6630_v40 = vrot.slane %v5120_v3, 5  ;;  %v3414_v42 = vadd.f32 %v3334_v59, %v5369_v43  ;;  %v6631_v13 = vrot.slane %v5124_v41, 5 }
 0x178   :  { %v2466_v21 = vadd.f32 %v6629_v2, %v2017_v20  ;;  %v2472_v24 = vadd.f32 %v2189_v10, %v2023_v26  ;;  %v2474_v36 = vadd.f32 %v2192_v62, %v2025_v32  ;;  %v2911_v12 = vadd.f32 %v2623_v56, %v2462_v60 }
 0x179   :  { %v2468_v37 = vadd.f32 %v6630_v40, %v2019_v1  ;;  %v2470_v19 = vadd.f32 %v6631_v13, %v2021_v4  ;;  %v2913_v46 = vadd.f32 %v2626_v5, %v2464_v61  ;;  %v3494_v10 = vmul.f32 0.020408163, %v3414_v42 }
 0x17a   :  { %v5458_v0 = vadd.f32 %v2629_v6, %v2466_v21  ;;  %v5468_v62 = vadd.f32 %v2638_v18, %v2472_v24  ;;  %v5470_v54 = vadd.f32 %v2641_v11, %v2474_v36  ;;  %v398_v22 = vrot.slane %v102_v38, 1 }
 0x17b   :  { %v5462_v17 = vadd.f32 %v2632_v16, %v2468_v37  ;;  %v5466_v35 = vadd.f32 %v2635_v25, %v2470_v19  ;;  %v3015_v56 = vadd.f32 %v2913_v46, %v2911_v12  ;;  %v399_v5 = vrot.slane %v5450_v28, 1  ;;  %3574 = vst [vmem:[%s6561_s1 + $0x140] sm:$0xff] %v3494_v10 }
 0x17c   :  { %v847_v15 = vrot.slane %v102_v38, 2  ;;  %v848_v3 = vrot.slane %v5450_v28, 2  ;;  %v1296_v6 = vrot.slane %v102_v38, 3  ;;  %v1297_v41 = vrot.slane %v5450_v28, 3 }
 0x17d   :  { %v1745_v16 = vrot.slane %v102_v38, 4  ;;  %v3095_v25 = vadd.f32 %v3015_v56, %v5458_v0  ;;  %v400_v18 = vsel %vm280_vm0, %v398_v22, %v399_v5  ;;  %v1746_v11 = vrot.slane %v5450_v28, 4 }
 0x17e   :  { %v2194_v57 = vrot.slane %v102_v38, 5  ;;  %v679_v31 = vadd.f32 %v400_v18, %v102_v38  ;;  %v849_v55 = vsel %vm729_vm1, %v847_v15, %v848_v3  ;;  %v1298_v47 = vsel %vm1178_vm2, %v1296_v6, %v1297_v41 }
 0x17f   :  { %v2195_v63 = vrot.slane %v5450_v28, 5  ;;  %v3175_v48 = vadd.f32 %v3095_v25, %v5462_v17  ;;  %v1747_v45 = vsel %vm1627_vm3, %v1745_v16, %v1746_v11  ;;  %v2643_v39 = vrot.slane %v102_v38, 6 }
 0x180   :  { %v2644_v23 = vrot.slane %v5450_v28, 6  ;;  %v1128_v27 = vadd.f32 %v849_v55, %v679_v31  ;;  %v3016_v8 = vadd.f32 %v5356_v33, %v5353_v52  ;;  %v680_v20 = vadd.f32 %v399_v5, %v5450_v28 }
 0x181   :  { %v2196_v34 = vsel %vm2076_vm4, %v2194_v57, %v2195_v63  ;;  %v3255_v9 = vadd.f32 %v3175_v48, %v5466_v35  ;;  %v3017_v59 = vadd.f32 %v5458_v0, %v2913_v46  ;;  %v401_v30 = vrot.slane %v5484_v50, 1  ;;  %v106_v48 = vld [vmem:[#allocation2 + $0x290] sm:$0xff] }
 0x182   :  { %v2645_v1 = vsel %vm2525_vm5, %v2643_v39, %v2644_v23  ;;  %v1577_v4 = vadd.f32 %v1298_v47, %v1128_v27  ;;  %v3096_v14 = vadd.f32 %v3016_v8, %v5358_v53  ;;  %v1129_v26 = vadd.f32 %v848_v3, %v680_v20 }
 0x183   :  { %v402_v44 = vrot.slane %v5489_v58, 1  ;;  %v3335_v32 = vadd.f32 %v3255_v9, %v5468_v62  ;;  %v3097_v52 = vadd.f32 %v3017_v59, %v5462_v17  ;;  %v850_v49 = vrot.slane %v5484_v50, 2 }
 0x184   :  { %v851_v60 = vrot.slane %v5489_v58, 2  ;;  %v2026_v51 = vadd.f32 %v1747_v45, %v1577_v4  ;;  %v3176_v61 = vadd.f32 %v3096_v14, %v5360_v29  ;;  %v1578_v2 = vadd.f32 %v1297_v41, %v1129_v26  ;;  %v5535_v45 = vld [vmem:[#allocation2 + $0x298] sm:$0xff] }
 0x185   :  { %v403_v21 = vsel %vm280_vm0, %v401_v30, %v402_v44  ;;  %v3415_v40 = vadd.f32 %v3335_v32, %v5470_v54  ;;  %v3177_v37 = vadd.f32 %v3097_v52, %v5466_v35  ;;  %v1299_v38 = vrot.slane %v5484_v50, 3 }
 0x186   :  { %v681_v42 = vadd.f32 %v403_v21, %v5484_v50  ;;  %v852_v13 = vsel %vm729_vm1, %v850_v49, %v851_v60  ;;  %v2475_v19 = vadd.f32 %v2196_v34, %v2026_v51  ;;  %v3256_v24 = vadd.f32 %v3176_v61, %v5363_v7 }
 0x187   :  { %v2027_v36 = vadd.f32 %v1746_v11, %v1578_v2  ;;  %v3495_v28 = vmul.f32 0.020408163, %v3415_v40  ;;  %v3257_v12 = vadd.f32 %v3177_v37, %v5468_v62  ;;  %v1300_v10 = vrot.slane %v5489_v58, 3 }
 0x188   :  { %v1130_v46 = vadd.f32 %v852_v13, %v681_v42  ;;  %v5515_v56 = vadd.f32 %v2645_v1, %v2475_v19  ;;  %v3336_v22 = vadd.f32 %v3256_v24, %v5369_v43  ;;  %v1748_v15 = vrot.slane %v5484_v50, 4 }
 0x189   :  { %v2476_v5 = vadd.f32 %v2195_v63, %v2027_v36  ;;  %3575 = vst [vmem:[%s6561_s1 + $0x148] sm:$0x3] %v3495_v28  ;;  %v3337_v3 = vadd.f32 %v3257_v12, %v5470_v54  ;;  %v1301_v6 = vsel %vm1178_vm2, %v1299_v38, %v1300_v10  ;;  %v1749_v41 = vrot.slane %v5489_v58, 4 }
 0x18a   :  { %v2197_v16 = vrot.slane %v5484_v50, 5  ;;  %v3416_v25 = vadd.f32 %v3336_v22, %v5515_v56  ;;  %v1579_v11 = vadd.f32 %v1301_v6, %v1130_v46  ;;  %v2198_v57 = vrot.slane %v5489_v58, 5 }
 0x18b   :  { %v5527_v18 = vadd.f32 %v2644_v23, %v2476_v5  ;;  %v1750_v31 = vsel %vm1627_vm3, %v1748_v15, %v1749_v41  ;;  %v2646_v55 = vrot.slane %v5484_v50, 6  ;;  %v2647_v47 = vrot.slane %v5489_v58, 6  ;;  %v108_v15 = vld [vmem:[#allocation2 + $0x2a0] sm:$0xff] }
 0x18c   :  { %v3018_v63 = vadd.f32 %v5358_v53, %v5356_v33  ;;  %v3496_v39 = vmul.f32 0.020408163, %v3416_v25  ;;  %v2028_v23 = vadd.f32 %v1750_v31, %v1579_v11  ;;  %v2199_v34 = vsel %vm2076_vm4, %v2197_v16, %v2198_v57  ;;  %v5573_v25 = vld [vmem:[#allocation2 + $0x2a8] sm:$0xff] }
 0x18d   :  { %v3417_v27 = vadd.f32 %v3337_v3, %v5527_v18  ;;  %v2648_v8 = vsel %vm2525_vm5, %v2646_v55, %v2647_v47  ;;  %v682_v50 = vadd.f32 %v402_v44, %v5489_v58  ;;  %v3019_v9 = vadd.f32 %v5462_v17, %v5458_v0 }
 0x18e   :  { %v3098_v20 = vadd.f32 %v3018_v63, %v5360_v29  ;;  %3576 = vst [vmem:[%s6561_s1 + $0x150] sm:$0xff] %v3496_v39  ;;  %v2477_v1 = vadd.f32 %v2199_v34, %v2028_v23  ;;  %v404_v59 = vrot.slane %v106_v48, 1  ;;  %v405_v30 = vrot.slane %v5535_v45, 1 }
 0x18f   :  { %v3497_v33 = vmul.f32 0.020408163, %v3417_v27  ;;  %v1131_v14 = vadd.f32 %v851_v60, %v682_v50  ;;  %v3099_v26 = vadd.f32 %v3019_v9, %v5466_v35  ;;  %v853_v32 = vrot.slane %v106_v48, 2 }
 0x190   :  { %v3178_v4 = vadd.f32 %v3098_v20, %v5363_v7  ;;  %v5553_v0 = vadd.f32 %v2648_v8, %v2477_v1  ;;  %v406_v58 = vsel %vm280_vm0, %v404_v59, %v405_v30  ;;  %v854_v44 = vrot.slane %v5535_v45, 2 }
 0x191   :  { %3577 = vst [vmem:[%s6561_s1 + $0x158] sm:$0x3] %v3497_v33  ;;  %v1302_v52 = vrot.slane %v106_v48, 3  ;;  %v1580_v51 = vadd.f32 %v1300_v10, %v1131_v14  ;;  %v3179_v61 = vadd.f32 %v3099_v26, %v5468_v62  ;;  %v683_v60 = vadd.f32 %v406_v58, %v106_v48 }
 0x192   :  { %v3258_v49 = vadd.f32 %v3178_v4, %v5369_v43  ;;  %v855_v2 = vsel %vm729_vm1, %v853_v32, %v854_v44  ;;  %v1303_v21 = vrot.slane %v5535_v45, 3  ;;  %v1751_v40 = vrot.slane %v106_v48, 4 }
 0x193   :  { %v1752_v37 = vrot.slane %v5535_v45, 4  ;;  %v2029_v13 = vadd.f32 %v1749_v41, %v1580_v51  ;;  %v3259_v19 = vadd.f32 %v3179_v61, %v5470_v54  ;;  %v1132_v24 = vadd.f32 %v855_v2, %v683_v60 }
 0x194   :  { %v3338_v42 = vadd.f32 %v3258_v49, %v5515_v56  ;;  %v1304_v36 = vsel %vm1178_vm2, %v1302_v52, %v1303_v21  ;;  %v2200_v28 = vrot.slane %v106_v48, 5  ;;  %v2201_v12 = vrot.slane %v5535_v45, 5 }
 0x195   :  { %v1753_v38 = vsel %vm1627_vm3, %v1751_v40, %v1752_v37  ;;  %v2478_v10 = vadd.f32 %v2198_v57, %v2029_v13  ;;  %v3339_v22 = vadd.f32 %v3259_v19, %v5527_v18  ;;  %v1581_v5 = vadd.f32 %v1304_v36, %v1132_v24  ;;  %v110_v24 = vld [vmem:[#allocation2 + $0x2b0] sm:$0xff] }
 0x196   :  { %v3418_v46 = vadd.f32 %v3338_v42, %v5553_v0  ;;  %v2202_v3 = vsel %vm2076_vm4, %v2200_v28, %v2201_v12  ;;  %v2649_v6 = vrot.slane %v106_v48, 6  ;;  %v2650_v41 = vrot.slane %v5535_v45, 6 }
 0x197   :  { %v3020_v16 = vadd.f32 %v5360_v29, %v5358_v53  ;;  %v5575_v31 = vadd.f32 %v2647_v47, %v2478_v10  ;;  %v2030_v55 = vadd.f32 %v1753_v38, %v1581_v5  ;;  %v684_v57 = vadd.f32 %v405_v30, %v5535_v45 }
 0x198   :  { %v3498_v11 = vmul.f32 0.020408163, %v3418_v46  ;;  %v2651_v63 = vsel %vm2525_vm5, %v2649_v6, %v2650_v41  ;;  %v3021_v48 = vadd.f32 %v5466_v35, %v5462_v17  ;;  %v407_v27 = vrot.slane %v108_v15, 1  ;;  %v5612_v46 = vld [vmem:[#allocation2 + $0x2b8] sm:$0xff] }
 0x199   :  { %v3100_v39 = vadd.f32 %v3020_v16, %v5363_v7  ;;  %v3419_v53 = vadd.f32 %v3339_v22, %v5575_v31  ;;  %v2479_v23 = vadd.f32 %v2202_v3, %v2030_v55  ;;  %v1133_v47 = vadd.f32 %v854_v44, %v684_v57 }
 0x19a   :  { %3578 = vst [vmem:[%s6561_s1 + $0x160] sm:$0xff] %v3498_v11  ;;  %v408_v34 = vrot.slane %v5573_v25, 1  ;;  %v3101_v8 = vadd.f32 %v3021_v48, %v5468_v62  ;;  %v856_v20 = vrot.slane %v108_v15, 2  ;;  %v857_v50 = vrot.slane %v5573_v25, 2 }
 0x19b   :  { %v3180_v45 = vadd.f32 %v3100_v39, %v5369_v43  ;;  %v3499_v9 = vmul.f32 0.020408163, %v3419_v53  ;;  %v5590_v17 = vadd.f32 %v2651_v63, %v2479_v23  ;;  %v1582_v33 = vadd.f32 %v1303_v21, %v1133_v47 }
 0x19c   :  { %v409_v1 = vsel %vm280_vm0, %v407_v27, %v408_v34  ;;  %v3181_v30 = vadd.f32 %v3101_v8, %v5470_v54  ;;  %v858_v14 = vsel %vm729_vm1, %v856_v20, %v857_v50  ;;  %v1305_v32 = vrot.slane %v108_v15, 3 }
 0x19d   :  { %v3260_v59 = vadd.f32 %v3180_v45, %v5515_v56  ;;  %v685_v4 = vadd.f32 %v409_v1, %v108_v15  ;;  %3579 = vst [vmem:[%s6561_s1 + $0x168] sm:$0x3] %v3499_v9  ;;  %v2031_v26 = vadd.f32 %v1752_v37, %v1582_v33  ;;  %v1306_v58 = vrot.slane %v5573_v25, 3 }
 0x19e   :  { %v1754_v44 = vrot.slane %v108_v15, 4  ;;  %v3261_v49 = vadd.f32 %v3181_v30, %v5527_v18  ;;  %v1755_v61 = vrot.slane %v5573_v25, 4  ;;  %v2203_v21 = vrot.slane %v108_v15, 5 }
 0x19f   :  { %v3340_v52 = vadd.f32 %v3260_v59, %v5553_v0  ;;  %v1134_v51 = vadd.f32 %v858_v14, %v685_v4  ;;  %v2480_v60 = vadd.f32 %v2201_v12, %v2031_v26  ;;  %v1307_v2 = vsel %vm1178_vm2, %v1305_v32, %v1306_v58 }
 0x1a0   :  { %v2204_v40 = vrot.slane %v5573_v25, 5  ;;  %v3341_v37 = vadd.f32 %v3261_v49, %v5575_v31  ;;  %v1756_v19 = vsel %vm1627_vm3, %v1754_v44, %v1755_v61  ;;  %v2652_v28 = vrot.slane %v108_v15, 6 }
 0x1a1   :  { %v3420_v42 = vadd.f32 %v3340_v52, %v5590_v17  ;;  %v1583_v13 = vadd.f32 %v1307_v2, %v1134_v51  ;;  %v5608_v36 = vadd.f32 %v2650_v41, %v2480_v60  ;;  %v2653_v12 = vrot.slane %v5573_v25, 6 }
 0x1a2   :  { %v2205_v38 = vsel %vm2076_vm4, %v2203_v21, %v2204_v40  ;;  %v3022_v5 = vadd.f32 %v5363_v7, %v5360_v29  ;;  %v686_v3 = vadd.f32 %v408_v34, %v5573_v25  ;;  %v3023_v41 = vadd.f32 %v5468_v62, %v5466_v35 }
 0x1a3   :  { %v3500_v10 = vmul.f32 0.020408163, %v3420_v42  ;;  %v2032_v22 = vadd.f32 %v1756_v19, %v1583_v13  ;;  %v3421_v6 = vadd.f32 %v3341_v37, %v5608_v36  ;;  %v2654_v16 = vsel %vm2525_vm5, %v2652_v28, %v2653_v12 }
 0x1a4   :  { %v410_v11 = vrot.slane %v110_v24, 1  ;;  %v3102_v55 = vadd.f32 %v3022_v5, %v5369_v43  ;;  %v1135_v57 = vadd.f32 %v857_v50, %v686_v3  ;;  %v411_v29 = vrot.slane %v5612_v46, 1 }
 0x1a5   :  { %3580 = vst [vmem:[%s6561_s1 + $0x170] sm:$0xff] %v3500_v10  ;;  %v2481_v15 = vadd.f32 %v2205_v38, %v2032_v22  ;;  %v3501_v63 = vmul.f32 0.020408163, %v3421_v6  ;;  %v3103_v25 = vadd.f32 %v3023_v41, %v5470_v54  ;;  %v859_v39 = vrot.slane %v110_v24, 2  ;;  %v5656_v38 = vld [vmem:[#allocation2 + $0x2c8] sm:$0xff] }
 0x1a6   :  { %v860_v48 = vrot.slane %v5612_v46, 2  ;;  %v3182_v35 = vadd.f32 %v3102_v55, %v5515_v56  ;;  %v1584_v53 = vadd.f32 %v1306_v58, %v1135_v57  ;;  %v412_v23 = vsel %vm280_vm0, %v410_v11, %v411_v29 }
 0x1a7   :  { %v5628_v27 = vadd.f32 %v2654_v16, %v2481_v15  ;;  %3581 = vst [vmem:[%s6561_s1 + $0x178] sm:$0x3] %v3501_v63  ;;  %v3183_v47 = vadd.f32 %v3103_v25, %v5527_v18  ;;  %v687_v34 = vadd.f32 %v412_v23, %v110_v24  ;;  %v1308_v8 = vrot.slane %v110_v24, 3 }
 0x1a8   :  { %v861_v45 = vsel %vm729_vm1, %v859_v39, %v860_v48  ;;  %v3262_v20 = vadd.f32 %v3182_v35, %v5553_v0  ;;  %v2033_v50 = vadd.f32 %v1755_v61, %v1584_v53  ;;  %v1309_v9 = vrot.slane %v5612_v46, 3  ;;  %v112_v61 = vld [vmem:[#allocation2 + $0x2c0] sm:$0xff] }
 0x1a9   :  { %v1757_v33 = vrot.slane %v110_v24, 4  ;;  %v3263_v1 = vadd.f32 %v3183_v47, %v5575_v31  ;;  %v1136_v59 = vadd.f32 %v861_v45, %v687_v34  ;;  %v1758_v30 = vrot.slane %v5612_v46, 4 }
 0x1aa   :  { %v2206_v4 = vrot.slane %v110_v24, 5  ;;  %v3342_v14 = vadd.f32 %v3262_v20, %v5590_v17  ;;  %v2482_v26 = vadd.f32 %v2204_v40, %v2033_v50  ;;  %v1310_v32 = vsel %vm1178_vm2, %v1308_v8, %v1309_v9 }
 0x1ab   :  { %v2207_v58 = vrot.slane %v5612_v46, 5  ;;  %v3343_v44 = vadd.f32 %v3263_v1, %v5608_v36  ;;  %v1585_v52 = vadd.f32 %v1310_v32, %v1136_v59  ;;  %v1759_v49 = vsel %vm1627_vm3, %v1757_v33, %v1758_v30 }
 0x1ac   :  { %v2655_v51 = vrot.slane %v110_v24, 6  ;;  %v3422_v60 = vadd.f32 %v3342_v14, %v5628_v27  ;;  %v5647_v2 = vadd.f32 %v2653_v12, %v2482_v26  ;;  %v2656_v42 = vrot.slane %v5612_v46, 6 }
 0x1ad   :  { %v2208_v21 = vsel %vm2076_vm4, %v2206_v4, %v2207_v58  ;;  %v2034_v40 = vadd.f32 %v1759_v49, %v1585_v52  ;;  %v3024_v37 = vadd.f32 %v5369_v43, %v5363_v7  ;;  %v688_v13 = vadd.f32 %v411_v29, %v5612_v46 }
 0x1ae   :  { %v3025_v19 = vadd.f32 %v5470_v54, %v5468_v62  ;;  %v3502_v24 = vmul.f32 0.020408163, %v3422_v60  ;;  %v3423_v28 = vadd.f32 %v3343_v44, %v5647_v2  ;;  %v2657_v12 = vsel %vm2525_vm5, %v2655_v51, %v2656_v42  ;;  %v114_v44 = vld [vmem:[#allocation2 + $0x2d0] sm:$0xff] }
 0x1af   :  { %v413_v10 = vrot.slane %v112_v61, 1  ;;  %v2483_v22 = vadd.f32 %v2208_v21, %v2034_v40  ;;  %v3104_v5 = vadd.f32 %v3024_v37, %v5515_v56  ;;  %v1137_v3 = vadd.f32 %v860_v48, %v688_v13 }
 0x1b0   :  { %v3105_v6 = vadd.f32 %v3025_v19, %v5527_v18  ;;  %3582 = vst [vmem:[%s6561_s1 + $0x180] sm:$0xff] %v3502_v24  ;;  %v3503_v7 = vmul.f32 0.020408163, %v3423_v28  ;;  %v414_v62 = vrot.slane %v5656_v38, 1  ;;  %v862_v46 = vrot.slane %v112_v61, 2 }
 0x1b1   :  { %v863_v16 = vrot.slane %v5656_v38, 2  ;;  %v5667_v41 = vadd.f32 %v2657_v12, %v2483_v22  ;;  %v3184_v11 = vadd.f32 %v3104_v5, %v5553_v0  ;;  %v1586_v15 = vadd.f32 %v1309_v9, %v1137_v3 }
 0x1b2   :  { %v3185_v55 = vadd.f32 %v3105_v6, %v5575_v31  ;;  %3583 = vst [vmem:[%s6561_s1 + $0x188] sm:$0x3] %v3503_v7  ;;  %v415_v57 = vsel %vm280_vm0, %v413_v10, %v414_v62  ;;  %v1311_v63 = vrot.slane %v112_v61, 3  ;;  %v1312_v25 = vrot.slane %v5656_v38, 3 }
 0x1b3   :  { %v864_v29 = vsel %vm729_vm1, %v862_v46, %v863_v16  ;;  %v3264_v39 = vadd.f32 %v3184_v11, %v5590_v17  ;;  %v2035_v48 = vadd.f32 %v1758_v30, %v1586_v15  ;;  %v689_v53 = vadd.f32 %v415_v57, %v112_v61 }
 0x1b4   :  { %v3265_v35 = vadd.f32 %v3185_v55, %v5608_v36  ;;  %v1313_v23 = vsel %vm1178_vm2, %v1311_v63, %v1312_v25  ;;  %v1760_v47 = vrot.slane %v112_v61, 4  ;;  %v1761_v34 = vrot.slane %v5656_v38, 4 }
 0x1b5   :  { %v2209_v45 = vrot.slane %v112_v61, 5  ;;  %v3344_v8 = vadd.f32 %v3264_v39, %v5628_v27  ;;  %v2484_v20 = vadd.f32 %v2207_v58, %v2035_v48  ;;  %v1138_v9 = vadd.f32 %v864_v29, %v689_v53  ;;  %v5691_v58 = vld [vmem:[#allocation2 + $0x2d8] sm:$0xff] }
 0x1b6   :  { %v3345_v50 = vadd.f32 %v3265_v35, %v5647_v2  ;;  %v1762_v33 = vsel %vm1627_vm3, %v1760_v47, %v1761_v34  ;;  %v2210_v1 = vrot.slane %v5656_v38, 5  ;;  %v2658_v59 = vrot.slane %v112_v61, 6 }
 0x1b7   :  { %v2659_v30 = vrot.slane %v5656_v38, 6  ;;  %v3424_v4 = vadd.f32 %v3344_v8, %v5667_v41  ;;  %v5687_v14 = vadd.f32 %v2656_v42, %v2484_v20  ;;  %v1587_v26 = vadd.f32 %v1313_v23, %v1138_v9  ;;  %v116_v9 = vld [vmem:[#allocation2 + $0x2e0] sm:$0xff] }
 0x1b8   :  { %v3026_v32 = vadd.f32 %v5515_v56, %v5369_v43  ;;  %v2211_v52 = vsel %vm2076_vm4, %v2209_v45, %v2210_v1  ;;  %v690_v51 = vadd.f32 %v414_v62, %v5656_v38  ;;  %v3027_v61 = vadd.f32 %v5527_v18, %v5470_v54 }
 0x1b9   :  { %v2660_v49 = vsel %vm2525_vm5, %v2658_v59, %v2659_v30  ;;  %v3504_v60 = vmul.f32 0.020408163, %v3424_v4  ;;  %v3425_v21 = vadd.f32 %v3345_v50, %v5687_v14  ;;  %v2036_v42 = vadd.f32 %v1762_v33, %v1587_v26  ;;  %v5730_v33 = vld [vmem:[#allocation2 + $0x2e8] sm:$0xff] }
 0x1ba   :  { %v3106_v40 = vadd.f32 %v3026_v32, %v5553_v0  ;;  %v1139_v37 = vadd.f32 %v863_v16, %v690_v51  ;;  %v3107_v43 = vadd.f32 %v3027_v61, %v5575_v31  ;;  %v416_v13 = vrot.slane %v114_v44, 1 }
 0x1bb   :  { %v417_v19 = vrot.slane %v5691_v58, 1  ;;  %3584 = vst [vmem:[%s6561_s1 + $0x190] sm:$0xff] %v3504_v60  ;;  %v3505_v38 = vmul.f32 0.020408163, %v3425_v21  ;;  %v2485_v24 = vadd.f32 %v2211_v52, %v2036_v42  ;;  %v865_v28 = vrot.slane %v114_v44, 2 }
 0x1bc   :  { %v3186_v54 = vadd.f32 %v3106_v40, %v5590_v17  ;;  %v1588_v12 = vadd.f32 %v1312_v25, %v1139_v37  ;;  %v3187_v10 = vadd.f32 %v3107_v43, %v5608_v36  ;;  %v866_v5 = vrot.slane %v5691_v58, 2 }
 0x1bd   :  { %v418_v22 = vsel %vm280_vm0, %v416_v13, %v417_v19  ;;  %3585 = vst [vmem:[%s6561_s1 + $0x198] sm:$0x3] %v3505_v38  ;;  %v5712_v3 = vadd.f32 %v2660_v49, %v2485_v24  ;;  %v1314_v62 = vrot.slane %v114_v44, 3  ;;  %v1315_v15 = vrot.slane %v5691_v58, 3 }
 0x1be   :  { %v3266_v6 = vadd.f32 %v3186_v54, %v5628_v27  ;;  %v691_v7 = vadd.f32 %v418_v22, %v114_v44  ;;  %v2037_v46 = vadd.f32 %v1761_v34, %v1588_v12  ;;  %v3267_v16 = vadd.f32 %v3187_v10, %v5647_v2 }
 0x1bf   :  { %v867_v11 = vsel %vm729_vm1, %v865_v28, %v866_v5  ;;  %v1763_v29 = vrot.slane %v114_v44, 4  ;;  %v1764_v63 = vrot.slane %v5691_v58, 4  ;;  %v1316_v48 = vsel %vm1178_vm2, %v1314_v62, %v1315_v15 }
 0x1c0   :  { %v3346_v55 = vadd.f32 %v3266_v6, %v5667_v41  ;;  %v1140_v57 = vadd.f32 %v867_v11, %v691_v7  ;;  %v2486_v25 = vadd.f32 %v2210_v1, %v2037_v46  ;;  %v3347_v39 = vadd.f32 %v3267_v16, %v5687_v14 }
 0x1c1   :  { %v2212_v35 = vrot.slane %v114_v44, 5  ;;  %v1765_v47 = vsel %vm1627_vm3, %v1763_v29, %v1764_v63  ;;  %v2213_v34 = vrot.slane %v5691_v58, 5  ;;  %v2661_v8 = vrot.slane %v114_v44, 6 }
 0x1c2   :  { %v3426_v53 = vadd.f32 %v3346_v55, %v5712_v3  ;;  %v1589_v23 = vadd.f32 %v1316_v48, %v1140_v57  ;;  %v5725_v45 = vadd.f32 %v2659_v30, %v2486_v25  ;;  %v2662_v20 = vrot.slane %v5691_v58, 6 }
 0x1c3   :  { %v3028_v50 = vadd.f32 %v5553_v0, %v5515_v56  ;;  %v2214_v4 = vsel %vm2076_vm4, %v2212_v35, %v2213_v34  ;;  %v692_v26 = vadd.f32 %v417_v19, %v5691_v58  ;;  %v3029_v52 = vadd.f32 %v5575_v31, %v5527_v18 }
 0x1c4   :  { %v3506_v1 = vmul.f32 0.020408163, %v3426_v53  ;;  %v2038_v59 = vadd.f32 %v1765_v47, %v1589_v23  ;;  %v3427_v32 = vadd.f32 %v3347_v39, %v5725_v45  ;;  %v2663_v30 = vsel %vm2525_vm5, %v2661_v8, %v2662_v20  ;;  %v5770_v53 = vld [vmem:[#allocation2 + $0x2f8] sm:$0xff] }
 0x1c5   :  { %v3108_v44 = vadd.f32 %v3028_v50, %v5590_v17  ;;  %v1141_v49 = vadd.f32 %v866_v5, %v692_v26  ;;  %v419_v51 = vrot.slane %v116_v9, 1  ;;  %v420_v61 = vrot.slane %v5730_v33, 1 }
 0x1c6   :  { %3586 = vst [vmem:[%s6561_s1 + $0x1a0] sm:$0xff] %v3506_v1  ;;  %v2487_v56 = vadd.f32 %v2214_v4, %v2038_v59  ;;  %v3507_v60 = vmul.f32 0.020408163, %v3427_v32  ;;  %v3109_v21 = vadd.f32 %v3029_v52, %v5608_v36  ;;  %v868_v42 = vrot.slane %v116_v9, 2 }
 0x1c7   :  { %v3188_v58 = vadd.f32 %v3108_v44, %v5628_v27  ;;  %v1590_v37 = vadd.f32 %v1315_v15, %v1141_v49  ;;  %v421_v18 = vsel %vm280_vm0, %v419_v51, %v420_v61  ;;  %v869_v43 = vrot.slane %v5730_v33, 2 }
 0x1c8   :  { %v5745_v40 = vadd.f32 %v2663_v30, %v2487_v56  ;;  %3587 = vst [vmem:[%s6561_s1 + $0x1a8] sm:$0x3] %v3507_v60  ;;  %v3189_v19 = vadd.f32 %v3109_v21, %v5647_v2  ;;  %v693_v38 = vadd.f32 %v421_v18, %v116_v9  ;;  %v1317_v24 = vrot.slane %v116_v9, 3 }
 0x1c9   :  { %v3268_v13 = vadd.f32 %v3188_v58, %v5667_v41  ;;  %v2039_v54 = vadd.f32 %v1764_v63, %v1590_v37  ;;  %v870_v28 = vsel %vm729_vm1, %v868_v42, %v869_v43  ;;  %v1318_v12 = vrot.slane %v5730_v33, 3  ;;  %v5764_v63 = vld [vmem:[#allocation2 + $0x2f0] sm:$0xff] }
 0x1ca   :  { %v1766_v10 = vrot.slane %v116_v9, 4  ;;  %v3269_v5 = vadd.f32 %v3189_v19, %v5687_v14  ;;  %v1142_v6 = vadd.f32 %v870_v28, %v693_v38  ;;  %v1767_v7 = vrot.slane %v5730_v33, 4 }
 0x1cb   :  { %v3348_v22 = vadd.f32 %v3268_v13, %v5712_v3  ;;  %v2488_v62 = vadd.f32 %v2213_v34, %v2039_v54  ;;  %v1319_v46 = vsel %vm1178_vm2, %v1317_v24, %v1318_v12  ;;  %v2215_v16 = vrot.slane %v116_v9, 5 }
 0x1cc   :  { %v2216_v11 = vrot.slane %v5730_v33, 5  ;;  %v3349_v55 = vadd.f32 %v3269_v5, %v5725_v45  ;;  %v1591_v57 = vadd.f32 %v1319_v46, %v1142_v6  ;;  %v1768_v29 = vsel %vm1627_vm3, %v1766_v10, %v1767_v7 }
 0x1cd   :  { %v3428_v15 = vadd.f32 %v3348_v22, %v5745_v40  ;;  %v5766_v25 = vadd.f32 %v2662_v20, %v2488_v62  ;;  %v2664_v48 = vrot.slane %v116_v9, 6  ;;  %v2665_v35 = vrot.slane %v5730_v33, 6 }
 0x1ce   :  { %v2217_v39 = vsel %vm2076_vm4, %v2215_v16, %v2216_v11  ;;  %v2040_v47 = vadd.f32 %v1768_v29, %v1591_v57  ;;  %v3030_v34 = vadd.f32 %v5590_v17, %v5553_v0  ;;  %v694_v8 = vadd.f32 %v420_v61, %v5730_v33 }
 0x1cf   :  { %v3508_v23 = vmul.f32 0.020408163, %v3428_v15  ;;  %v3429_v50 = vadd.f32 %v3349_v55, %v5766_v25  ;;  %v2666_v1 = vsel %vm2525_vm5, %v2664_v48, %v2665_v35  ;;  %v3031_v20 = vadd.f32 %v5608_v36, %v5575_v31  ;;  %v5825_v48 = vld [vmem:[#allocation2 + $0x318] sm:$0xff] }
 0x1d0   :  { %v422_v9 = vrot.slane %v5764_v63, 1  ;;  %v2489_v59 = vadd.f32 %v2217_v39, %v2040_v47  ;;  %v3110_v4 = vadd.f32 %v3030_v34, %v5628_v27  ;;  %v1143_v26 = vadd.f32 %v869_v43, %v694_v8  ;;  %v5821_v39 = vld [vmem:[#allocation2 + $0x308] sm:$0xff] }
 0x1d1   :  { %3588 = vst [vmem:[%s6561_s1 + $0x1b0] sm:$0xff] %v3508_v23  ;;  %v423_v0 = vrot.slane %v5770_v53, 1  ;;  %v3509_v33 = vmul.f32 0.020408163, %v3429_v50  ;;  %v3111_v32 = vadd.f32 %v3031_v20, %v5647_v2  ;;  %v871_v30 = vrot.slane %v5764_v63, 2  ;;  %v5831_v50 = vld [vmem:[#allocation2 + $0x320] sm:$0xff] }
 0x1d2   :  { %v872_v44 = vrot.slane %v5770_v53, 2  ;;  %v5788_v31 = vadd.f32 %v2666_v1, %v2489_v59  ;;  %v3190_v52 = vadd.f32 %v3110_v4, %v5667_v41  ;;  %v1592_v56 = vadd.f32 %v1318_v12, %v1143_v26 }
 0x1d3   :  { %v424_v49 = vsel %vm280_vm0, %v422_v9, %v423_v0  ;;  %3589 = vst [vmem:[%s6561_s1 + $0x1b8] sm:$0x3] %v3509_v33  ;;  %v3191_v51 = vadd.f32 %v3111_v32, %v5687_v14  ;;  %v1320_v58 = vrot.slane %v5764_v63, 3  ;;  %v1321_v37 = vrot.slane %v5770_v53, 3  ;;  %v5847_v33 = vld [vmem:[#allocation2 + $0x340] sm:$0xff]  ;;  %v5849_v32 = vld [vmem:[#allocation2 + $0x348] sm:$0xff] }
 0x1d4   :  { %v695_v61 = vadd.f32 %v424_v49, %v5764_v63  ;;  %v873_v60 = vsel %vm729_vm1, %v871_v30, %v872_v44  ;;  %v3270_v21 = vadd.f32 %v3190_v52, %v5712_v3  ;;  %v2041_v42 = vadd.f32 %v1767_v7, %v1592_v56  ;;  %v5811_v7 = vld [vmem:[#allocation2 + $0x300] sm:$0xff]  ;;  %v5854_v30 = vld [vmem:[#allocation2 + $0x350] sm:$0xff] }
 0x1d5   :  { %v1769_v18 = vrot.slane %v5764_v63, 4  ;;  %v3271_v43 = vadd.f32 %v3191_v51, %v5725_v45  ;;  %v1770_v19 = vrot.slane %v5770_v53, 4  ;;  %v2218_v38 = vrot.slane %v5764_v63, 5 }
 0x1d6   :  { %v1144_v13 = vadd.f32 %v873_v60, %v695_v61  ;;  %v3350_v24 = vadd.f32 %v3270_v21, %v5745_v40  ;;  %v2490_v54 = vadd.f32 %v2216_v11, %v2041_v42  ;;  %v1322_v28 = vsel %vm1178_vm2, %v1320_v58, %v1321_v37  ;;  %v5866_v61 = vld [vmem:[#allocation2 + $0x358] sm:$0xff]  ;;  %v5868_v60 = vld [vmem:[#allocation2 + $0x360] sm:$0xff]  ;;  %v5871_v21 = vld [vmem:[#allocation2 + $0x368] sm:$0xff] }
 0x1d7   :  { %v2219_v12 = vrot.slane %v5770_v53, 5  ;;  %v3351_v10 = vadd.f32 %v3271_v43, %v5766_v25  ;;  %v1771_v5 = vsel %vm1627_vm3, %v1769_v18, %v1770_v19  ;;  %v2667_v6 = vrot.slane %v5764_v63, 6  ;;  %v5823_v63 = vld [vmem:[#allocation2 + $0x310] sm:$0xff] }
 0x1d8   :  { %v1593_v22 = vadd.f32 %v1322_v28, %v1144_v13  ;;  %v3430_v62 = vadd.f32 %v3350_v24, %v5788_v31  ;;  %v2939_v46 = vadd.f32 %v2665_v35, %v2490_v54  ;;  %v2668_v11 = vrot.slane %v5770_v53, 6 }
 0x1d9   :  { %v2220_v16 = vsel %vm2076_vm4, %v2218_v38, %v2219_v12  ;;  %v3032_v55 = vadd.f32 %v5628_v27, %v5590_v17  ;;  %v696_v57 = vadd.f32 %v423_v0, %v5770_v53  ;;  %v3033_v29 = vadd.f32 %v5647_v2, %v5608_v36  ;;  %v5833_v36 = vld [vmem:[#allocation2 + $0x328] sm:$0xff]  ;;  %v5835_v2 = vld [vmem:[#allocation2 + $0x330] sm:$0xff]  ;;  %v5845_v0 = vld [vmem:[#allocation2 + $0x338] sm:$0xff] }
 0x1da   :  { %v2042_v15 = vadd.f32 %v1771_v5, %v1593_v22  ;;  %v3510_v35 = vmul.f32 0.020408163, %v3430_v62  ;;  %v3431_v23 = vadd.f32 %v3351_v10, %v2939_v46  ;;  %v2669_v47 = vsel %vm2525_vm5, %v2667_v6, %v2668_v11 }
 0x1db   :  { %v425_v34 = vrot.slane %v5811_v7, 1  ;;  %v3112_v17 = vadd.f32 %v3032_v55, %v5667_v41  ;;  %v1145_v27 = vadd.f32 %v872_v44, %v696_v57  ;;  %v3113_v53 = vadd.f32 %v3033_v29, %v5687_v14 }
 0x1dc   :  { %v2491_v8 = vadd.f32 %v2220_v16, %v2042_v15  ;;  %3590 = vst [vmem:[%s6561_s1 + $0x1c0] sm:$0xff] %v3510_v35  ;;  %v3511_v1 = vmul.f32 0.020408163, %v3431_v23  ;;  %v426_v20 = vrot.slane %v5821_v39, 1  ;;  %v428_v9 = vrot.slane %v5823_v63, 1 }
 0x1dd   :  { %v429_v41 = vrot.slane %v5825_v48, 1  ;;  %v3192_v14 = vadd.f32 %v3112_v17, %v5712_v3  ;;  %v1594_v4 = vadd.f32 %v1321_v37, %v1145_v27  ;;  %v3193_v26 = vadd.f32 %v3113_v53, %v5725_v45 }
 0x1de   :  { %v2940_v59 = vadd.f32 %v2669_v47, %v2491_v8  ;;  %3591 = vst [vmem:[%s6561_s1 + $0x1c8] sm:$0x3] %v3511_v1  ;;  %v427_v44 = vsel %vm280_vm0, %v425_v34, %v426_v20  ;;  %v431_v45 = vrot.slane %v5831_v50, 1  ;;  %v432_v52 = vrot.slane %v5833_v36, 1 }
 0x1df   :  { %v430_v3 = vsel %vm280_vm0, %v428_v9, %v429_v41  ;;  %v3272_v56 = vadd.f32 %v3192_v14, %v5745_v40  ;;  %v2043_v49 = vadd.f32 %v1770_v19, %v1594_v4  ;;  %v3273_v51 = vadd.f32 %v3193_v26, %v5766_v25 }
 0x1e0   :  { %v434_v58 = vrot.slane %v5835_v2, 1  ;;  %v433_v42 = vsel %vm280_vm0, %v431_v45, %v432_v52  ;;  %v435_v37 = vrot.slane %v5845_v0, 1  ;;  %v437_v18 = vrot.slane %v5847_v33, 1 }
 0x1e1   :  { %v438_v40 = vrot.slane %v5849_v32, 1  ;;  %v3352_v25 = vadd.f32 %v3272_v56, %v5788_v31  ;;  %v2492_v43 = vadd.f32 %v2219_v12, %v2043_v49  ;;  %v3353_v13 = vadd.f32 %v3273_v51, %v2939_v46 }
 0x1e2   :  { %v440_v19 = vrot.slane %v5854_v30, 1  ;;  %v436_v38 = vsel %vm280_vm0, %v434_v58, %v435_v37  ;;  %v441_v54 = vrot.slane %v5866_v61, 1  ;;  %v443_v28 = vrot.slane %v5868_v60, 1 }
 0x1e3   :  { %v439_v24 = vsel %vm280_vm0, %v437_v18, %v438_v40  ;;  %v3432_v10 = vadd.f32 %v3352_v25, %v2940_v59  ;;  %v2941_v22 = vadd.f32 %v2668_v11, %v2492_v43  ;;  %v444_v31 = vrot.slane %v5871_v21, 1 }
 0x1e4   :  { %v697_v12 = vadd.f32 %v427_v44, %v5811_v7  ;;  %v442_v5 = vsel %vm280_vm0, %v440_v19, %v441_v54  ;;  %v699_v6 = vadd.f32 %v430_v3, %v5823_v63  ;;  %v701_v62 = vadd.f32 %v433_v42, %v5831_v50 }
 0x1e5   :  { %v703_v46 = vadd.f32 %v436_v38, %v5835_v2  ;;  %v3512_v16 = vmul.f32 0.020408163, %v3432_v10  ;;  %v3433_v15 = vadd.f32 %v3353_v13, %v2941_v22  ;;  %v445_v11 = vsel %vm280_vm0, %v443_v28, %v444_v31 }
 0x1e6   :  { %v705_v55 = vadd.f32 %v439_v24, %v5847_v33  ;;  %v707_v57 = vadd.f32 %v442_v5, %v5854_v30  ;;  %v709_v29 = vadd.f32 %v445_v11, %v5868_v60  ;;  %v874_v35 = vrot.slane %v5811_v7, 2 }
 0x1e7   :  { %v875_v23 = vrot.slane %v5821_v39, 2  ;;  %3592 = vst [vmem:[%s6561_s1 + $0x1d0] sm:$0xff] %v3512_v16  ;;  %v3513_v47 = vmul.f32 0.020408163, %v3433_v15  ;;  %v877_v34 = vrot.slane %v5823_v63, 2  ;;  %v878_v8 = vrot.slane %v5825_v48, 2 }
 0x1e8   :  { %v880_v17 = vrot.slane %v5831_v50, 2  ;;  %v881_v53 = vrot.slane %v5833_v36, 2  ;;  %v883_v1 = vrot.slane %v5835_v2, 2  ;;  %v884_v9 = vrot.slane %v5845_v0, 2 }
 0x1e9   :  { %v876_v27 = vsel %vm729_vm1, %v874_v35, %v875_v23  ;;  %3593 = vst [vmem:[%s6561_s1 + $0x1d8] sm:$0x3] %v3513_v47  ;;  %v879_v59 = vsel %vm729_vm1, %v877_v34, %v878_v8  ;;  %v886_v14 = vrot.slane %v5847_v33, 2  ;;  %v887_v4 = vrot.slane %v5849_v32, 2 }
 0x1ea   :  { %v889_v26 = vrot.slane %v5854_v30, 2  ;;  %v882_v44 = vsel %vm729_vm1, %v880_v17, %v881_v53  ;;  %v885_v3 = vsel %vm729_vm1, %v883_v1, %v884_v9  ;;  %v890_v45 = vrot.slane %v5866_v61, 2 }
 0x1eb   :  { %v892_v56 = vrot.slane %v5868_v60, 2  ;;  %v888_v49 = vsel %vm729_vm1, %v886_v14, %v887_v4  ;;  %v893_v51 = vrot.slane %v5871_v21, 2  ;;  %v1146_v58 = vadd.f32 %v876_v27, %v697_v12 }
 0x1ec   :  { %v1148_v42 = vadd.f32 %v879_v59, %v699_v6  ;;  %v891_v18 = vsel %vm729_vm1, %v889_v26, %v890_v45  ;;  %v1150_v25 = vadd.f32 %v882_v44, %v701_v62  ;;  %v1152_v43 = vadd.f32 %v885_v3, %v703_v46 }
 0x1ed   :  { %v1154_v13 = vadd.f32 %v888_v49, %v705_v55  ;;  %v894_v19 = vsel %vm729_vm1, %v892_v56, %v893_v51  ;;  %v1156_v38 = vadd.f32 %v891_v18, %v707_v57  ;;  %v1323_v24 = vrot.slane %v5811_v7, 3 }
 0x1ee   :  { %v1324_v28 = vrot.slane %v5821_v39, 3  ;;  %v1158_v10 = vadd.f32 %v894_v19, %v709_v29  ;;  %v1326_v22 = vrot.slane %v5823_v63, 3  ;;  %v1327_v12 = vrot.slane %v5825_v48, 3 }
 0x1ef   :  { %v1329_v5 = vrot.slane %v5831_v50, 3  ;;  %v1330_v62 = vrot.slane %v5833_v36, 3  ;;  %v1332_v46 = vrot.slane %v5835_v2, 3  ;;  %v1333_v16 = vrot.slane %v5845_v0, 3 }
 0x1f0   :  { %v1325_v6 = vsel %vm1178_vm2, %v1323_v24, %v1324_v28  ;;  %v1328_v15 = vsel %vm1178_vm2, %v1326_v22, %v1327_v12  ;;  %v1335_v11 = vrot.slane %v5847_v33, 3  ;;  %v1336_v55 = vrot.slane %v5849_v32, 3 }
 0x1f1   :  { %v1338_v57 = vrot.slane %v5854_v30, 3  ;;  %v1331_v29 = vsel %vm1178_vm2, %v1329_v5, %v1330_v62  ;;  %v1334_v35 = vsel %vm1178_vm2, %v1332_v46, %v1333_v16  ;;  %v1339_v47 = vrot.slane %v5866_v61, 3 }
 0x1f2   :  { %v1341_v34 = vrot.slane %v5868_v60, 3  ;;  %v1337_v17 = vsel %vm1178_vm2, %v1335_v11, %v1336_v55  ;;  %v1342_v27 = vrot.slane %v5871_v21, 3  ;;  %v1595_v1 = vadd.f32 %v1325_v6, %v1146_v58 }
 0x1f3   :  { %v1597_v59 = vadd.f32 %v1328_v15, %v1148_v42  ;;  %v1340_v14 = vsel %vm1178_vm2, %v1338_v57, %v1339_v47  ;;  %v1599_v26 = vadd.f32 %v1331_v29, %v1150_v25  ;;  %v1601_v44 = vadd.f32 %v1334_v35, %v1152_v43 }
 0x1f4   :  { %v1603_v3 = vadd.f32 %v1337_v17, %v1154_v13  ;;  %v1343_v56 = vsel %vm1178_vm2, %v1341_v34, %v1342_v27  ;;  %v1605_v49 = vadd.f32 %v1340_v14, %v1156_v38  ;;  %v1772_v18 = vrot.slane %v5811_v7, 4 }
 0x1f5   :  { %v1773_v19 = vrot.slane %v5821_v39, 4  ;;  %v1607_v24 = vadd.f32 %v1343_v56, %v1158_v10  ;;  %v1775_v58 = vrot.slane %v5823_v63, 4  ;;  %v1776_v42 = vrot.slane %v5825_v48, 4 }
 0x1f6   :  { %v1778_v22 = vrot.slane %v5831_v50, 4  ;;  %v6593_v43 = vrot.slane %v5833_v36, 4  ;;  %v1781_v13 = vrot.slane %v5835_v2, 4  ;;  %v6592_v38 = vrot.slane %v5845_v0, 4 }
 0x1f7   :  { %v1774_v25 = vsel %vm1627_vm3, %v1772_v18, %v1773_v19  ;;  %v1777_v10 = vsel %vm1627_vm3, %v1775_v58, %v1776_v42  ;;  %v1784_v5 = vrot.slane %v5847_v33, 4  ;;  %v6594_v6 = vrot.slane %v5849_v32, 4 }
 0x1f8   :  { %v1787_v46 = vrot.slane %v5854_v30, 4  ;;  %v1780_v15 = vsel %vm1627_vm3, %v1778_v22, %v6593_v43  ;;  %v1783_v11 = vsel %vm1627_vm3, %v1781_v13, %v6592_v38  ;;  %v6600_v57 = vrot.slane %v5866_v61, 4 }
 0x1f9   :  { %v1790_v29 = vrot.slane %v5868_v60, 4  ;;  %v1786_v35 = vsel %vm1627_vm3, %v1784_v5, %v6594_v6  ;;  %v6598_v34 = vrot.slane %v5871_v21, 4  ;;  %v2044_v17 = vadd.f32 %v1774_v25, %v1595_v1 }
 0x1fa   :  { %v2046_v14 = vadd.f32 %v1777_v10, %v1597_v59  ;;  %v1789_v56 = vsel %vm1627_vm3, %v1787_v46, %v6600_v57  ;;  %v2048_v18 = vadd.f32 %v1780_v15, %v1599_v26  ;;  %v2050_v58 = vadd.f32 %v1783_v11, %v1601_v44 }
 0x1fb   :  { %v2052_v22 = vadd.f32 %v1786_v35, %v1603_v3  ;;  %v1792_v13 = vsel %vm1627_vm3, %v1790_v29, %v6598_v34  ;;  %v2054_v38 = vadd.f32 %v1789_v56, %v1605_v49  ;;  %v2221_v43 = vrot.slane %v5811_v7, 5 }
 0x1fc   :  { %v6597_v5 = vrot.slane %v5821_v39, 5  ;;  %v2056_v6 = vadd.f32 %v1792_v13, %v1607_v24  ;;  %v2224_v1 = vrot.slane %v5823_v63, 5  ;;  %v6595_v59 = vrot.slane %v5825_v48, 5 }
 0x1fd   :  { %v2227_v25 = vrot.slane %v5831_v50, 5  ;;  %v6596_v44 = vrot.slane %v5833_v36, 5  ;;  %v2230_v3 = vrot.slane %v5835_v2, 5  ;;  %v6599_v49 = vrot.slane %v5845_v0, 5 }
 0x1fe   :  { %v2223_v26 = vsel %vm2076_vm4, %v2221_v43, %v6597_v5  ;;  %v2226_v24 = vsel %vm2076_vm4, %v2224_v1, %v6595_v59  ;;  %v2233_v10 = vrot.slane %v5847_v33, 5  ;;  %v6601_v46 = vrot.slane %v5849_v32, 5 }
 0x1ff   :  { %v2236_v15 = vrot.slane %v5854_v30, 5  ;;  %v2229_v43 = vsel %vm2076_vm4, %v2227_v25, %v6596_v44  ;;  %v2232_v11 = vsel %vm2076_vm4, %v2230_v3, %v6599_v49  ;;  %v2237_v29 = vrot.slane %v5866_v61, 5 }
 0x200   :  { %v2239_v35 = vrot.slane %v5868_v60, 5  ;;  %v2235_v56 = vsel %vm2076_vm4, %v2233_v10, %v6601_v46  ;;  %v2240_v13 = vrot.slane %v5871_v21, 5  ;;  %v2493_v1 = vadd.f32 %v2223_v26, %v2044_v17 }
 0x201   :  { %v2495_v59 = vadd.f32 %v2226_v24, %v2046_v14  ;;  %v2238_v25 = vsel %vm2076_vm4, %v2236_v15, %v2237_v29  ;;  %v2497_v44 = vadd.f32 %v2229_v43, %v2048_v18  ;;  %v2499_v5 = vadd.f32 %v2232_v11, %v2050_v58 }
 0x202   :  { %v2501_v34 = vadd.f32 %v2235_v56, %v2052_v22  ;;  %v2241_v3 = vsel %vm2076_vm4, %v2239_v35, %v2240_v13  ;;  %v2503_v49 = vadd.f32 %v2238_v25, %v2054_v38  ;;  %v2670_v57 = vrot.slane %v5811_v7, 6 }
 0x203   :  { %v2671_v10 = vrot.slane %v5821_v39, 6  ;;  %v2505_v46 = vadd.f32 %v2241_v3, %v2056_v6  ;;  %v2673_v17 = vrot.slane %v5823_v63, 6  ;;  %v2674_v14 = vrot.slane %v5825_v48, 6 }
 0x204   :  { %v2676_v26 = vrot.slane %v5831_v50, 6  ;;  %v2677_v58 = vrot.slane %v5833_v36, 6  ;;  %v2679_v22 = vrot.slane %v5835_v2, 6  ;;  %v2680_v38 = vrot.slane %v5845_v0, 6 }
 0x205   :  { %v2672_v18 = vsel %vm2525_vm5, %v2670_v57, %v2671_v10  ;;  %v2675_v7 = vsel %vm2525_vm5, %v2673_v17, %v2674_v14  ;;  %v2682_v63 = vrot.slane %v5847_v33, 6  ;;  %v2683_v6 = vrot.slane %v5849_v32, 6 }
 0x206   :  { %v2685_v50 = vrot.slane %v5854_v30, 6  ;;  %v2678_v57 = vsel %vm2525_vm5, %v2676_v26, %v2677_v58  ;;  %v2681_v2 = vsel %vm2525_vm5, %v2679_v22, %v2680_v38  ;;  %v2686_v24 = vrot.slane %v5866_v61, 6 }
 0x207   :  { %v2688_v15 = vrot.slane %v5868_v60, 6  ;;  %v2684_v33 = vsel %vm2525_vm5, %v2682_v63, %v2683_v6  ;;  %v2689_v43 = vrot.slane %v5871_v21, 6  ;;  %v2942_v11 = vadd.f32 %v2672_v18, %v2493_v1 }
 0x208   :  { %v6078_v30 = vadd.f32 %v2675_v7, %v2495_v59  ;;  %v2687_v35 = vsel %vm2525_vm5, %v2685_v50, %v2686_v24  ;;  %v6081_v56 = vadd.f32 %v2678_v57, %v2497_v44  ;;  %v6083_v25 = vadd.f32 %v2681_v2, %v2499_v5 }
 0x209   :  { %v6085_v3 = vadd.f32 %v2684_v33, %v2501_v34  ;;  %v2690_v17 = vsel %vm2525_vm5, %v2688_v15, %v2689_v43  ;;  %v6088_v60 = vadd.f32 %v2687_v35, %v2503_v49  ;;  %v698_v1 = vadd.f32 %v426_v20, %v5821_v39 }
 0x20a   :  { %v3034_v26 = vadd.f32 %v6078_v30, %v2942_v11  ;;  %v6094_v59 = vadd.f32 %v2690_v17, %v2505_v46  ;;  %v700_v44 = vadd.f32 %v429_v41, %v5825_v48  ;;  %v702_v34 = vadd.f32 %v432_v52, %v5833_v36 }
 0x20b   :  { %v704_v5 = vadd.f32 %v435_v37, %v5845_v0  ;;  %v706_v20 = vadd.f32 %v438_v40, %v5849_v32  ;;  %v708_v46 = vadd.f32 %v441_v54, %v5866_v61  ;;  %v710_v41 = vadd.f32 %v444_v31, %v5871_v21 }
 0x20c   :  { %v3114_v49 = vadd.f32 %v3034_v26, %v6081_v56  ;;  %v1147_v52 = vadd.f32 %v875_v23, %v698_v1  ;;  %v1149_v37 = vadd.f32 %v878_v8, %v700_v44  ;;  %v1151_v18 = vadd.f32 %v881_v53, %v702_v34 }
 0x20d   :  { %v1153_v40 = vadd.f32 %v884_v9, %v704_v5  ;;  %v1155_v54 = vadd.f32 %v887_v4, %v706_v20  ;;  %v1157_v31 = vadd.f32 %v890_v45, %v708_v46  ;;  %v1159_v23 = vadd.f32 %v893_v51, %v710_v41 }
 0x20e   :  { %v3194_v22 = vadd.f32 %v3114_v49, %v6083_v25  ;;  %v1596_v8 = vadd.f32 %v1324_v28, %v1147_v52  ;;  %v1598_v53 = vadd.f32 %v1327_v12, %v1149_v37  ;;  %v1600_v9 = vadd.f32 %v1330_v62, %v1151_v18  ;;  %v134_v52 = vld [vmem:[#allocation2 + $0x370] sm:$0xff]  ;;  %v6175_v37 = vld [vmem:[#allocation2 + $0x378] sm:$0xff] }
 0x20f   :  { %v1602_v7 = vadd.f32 %v1333_v16, %v1153_v40  ;;  %v1604_v45 = vadd.f32 %v1336_v55, %v1155_v54  ;;  %v1606_v51 = vadd.f32 %v1339_v47, %v1157_v31  ;;  %v1608_v28 = vadd.f32 %v1342_v27, %v1159_v23 }
 0x210   :  { %v3274_v4 = vadd.f32 %v3194_v22, %v6085_v3  ;;  %v2045_v12 = vadd.f32 %v1773_v19, %v1596_v8  ;;  %v2047_v62 = vadd.f32 %v1776_v42, %v1598_v53  ;;  %v6632_v63 = vrot.slane %v5833_v36, 4 }
 0x211   :  { %v6633_v50 = vrot.slane %v5845_v0, 4  ;;  %v6634_v2 = vrot.slane %v5849_v32, 4  ;;  %v6635_v15 = vrot.slane %v5866_v61, 4  ;;  %v6636_v33 = vrot.slane %v5871_v21, 4 }
 0x212   :  { %v2049_v16 = vadd.f32 %v6632_v63, %v1600_v9  ;;  %v3354_v55 = vadd.f32 %v3274_v4, %v6088_v60  ;;  %v6637_v11 = vrot.slane %v5821_v39, 5  ;;  %v6638_v35 = vrot.slane %v5825_v48, 5  ;;  %v6209_v9 = vld [vmem:[#allocation2 + $0x380] sm:$0xff] }
 0x213   :  { %v2051_v57 = vadd.f32 %v6633_v50, %v1602_v7  ;;  %v2053_v47 = vadd.f32 %v6634_v2, %v1604_v45  ;;  %v2055_v27 = vadd.f32 %v6635_v15, %v1606_v51  ;;  %v2057_v19 = vadd.f32 %v6636_v33, %v1608_v28  ;;  %v6214_v28 = vld [vmem:[#allocation2 + $0x388] sm:$0xff] }
 0x214   :  { %v2494_v42 = vadd.f32 %v6637_v11, %v2045_v12  ;;  %v2496_v17 = vadd.f32 %v6638_v35, %v2047_v62  ;;  %v6639_v26 = vrot.slane %v5833_v36, 5  ;;  %v6640_v44 = vrot.slane %v5845_v0, 5 }
 0x215   :  { %v3434_v5 = vadd.f32 %v3354_v55, %v6094_v59  ;;  %v6641_v49 = vrot.slane %v5849_v32, 5  ;;  %v2504_v46 = vadd.f32 %v2237_v29, %v2055_v27  ;;  %v2506_v41 = vadd.f32 %v2240_v13, %v2057_v19 }
 0x216   :  { %v2498_v1 = vadd.f32 %v6639_v26, %v2049_v16  ;;  %v2500_v34 = vadd.f32 %v6640_v44, %v2051_v57  ;;  %v2943_v18 = vadd.f32 %v2671_v10, %v2494_v42  ;;  %v2945_v40 = vadd.f32 %v2674_v14, %v2496_v17 }
 0x217   :  { %v2502_v20 = vadd.f32 %v6641_v49, %v2053_v47  ;;  %v3514_v29 = vmul.f32 0.020408163, %v3434_v5  ;;  %v6193_v13 = vadd.f32 %v2686_v24, %v2504_v46  ;;  %v6195_v39 = vadd.f32 %v2689_v43, %v2506_v41 }
 0x218   :  { %v6183_v22 = vadd.f32 %v2677_v58, %v2498_v1  ;;  %v6187_v61 = vadd.f32 %v2680_v38, %v2500_v34  ;;  %v3035_v10 = vadd.f32 %v2945_v40, %v2943_v18  ;;  %v446_v48 = vrot.slane %v134_v52, 1 }
 0x219   :  { %v6191_v21 = vadd.f32 %v2683_v6, %v2502_v20  ;;  %v447_v14 = vrot.slane %v6175_v37, 1  ;;  %v895_v36 = vrot.slane %v134_v52, 2  ;;  %3594 = vst [vmem:[%s6561_s1 + $0x1e0] sm:$0xff] %v3514_v29  ;;  %v896_v0 = vrot.slane %v6175_v37, 2 }
 0x21a   :  { %v1344_v58 = vrot.slane %v134_v52, 3  ;;  %v1345_v32 = vrot.slane %v6175_v37, 3  ;;  %v1793_v38 = vrot.slane %v134_v52, 4  ;;  %v3115_v6 = vadd.f32 %v3035_v10, %v6183_v22 }
 0x21b   :  { %v448_v24 = vsel %vm280_vm0, %v446_v48, %v447_v14  ;;  %v1794_v43 = vrot.slane %v6175_v37, 4  ;;  %v2242_v54 = vrot.slane %v134_v52, 5  ;;  %v897_v23 = vsel %vm729_vm1, %v895_v36, %v896_v0 }
 0x21c   :  { %v711_v31 = vadd.f32 %v448_v24, %v134_v52  ;;  %v1346_v8 = vsel %vm1178_vm2, %v1344_v58, %v1345_v32  ;;  %v2243_v53 = vrot.slane %v6175_v37, 5  ;;  %v3195_v7 = vadd.f32 %v3115_v6, %v6187_v61 }
 0x21d   :  { %v1795_v4 = vsel %vm1627_vm3, %v1793_v38, %v1794_v43  ;;  %v2691_v45 = vrot.slane %v134_v52, 6  ;;  %v2692_v51 = vrot.slane %v6175_v37, 6  ;;  %v3036_v63 = vadd.f32 %v6081_v56, %v6078_v30 }
 0x21e   :  { %v1160_v12 = vadd.f32 %v897_v23, %v711_v31  ;;  %v2244_v62 = vsel %vm2076_vm4, %v2242_v54, %v2243_v53  ;;  %v712_v16 = vadd.f32 %v447_v14, %v6175_v37  ;;  %v3275_v50 = vadd.f32 %v3195_v7, %v6191_v21  ;;  %v138_v7 = vld [vmem:[#allocation2 + $0x390] sm:$0xff] }
 0x21f   :  { %v2693_v57 = vsel %vm2525_vm5, %v2691_v45, %v2692_v51  ;;  %v3037_v55 = vadd.f32 %v6183_v22, %v2945_v40  ;;  %v449_v2 = vrot.slane %v6209_v9, 1  ;;  %v3116_v15 = vadd.f32 %v3036_v63, %v6083_v25 }
 0x220   :  { %v1609_v47 = vadd.f32 %v1346_v8, %v1160_v12  ;;  %v1161_v27 = vadd.f32 %v896_v0, %v712_v16  ;;  %v450_v33 = vrot.slane %v6214_v28, 1  ;;  %v3355_v19 = vadd.f32 %v3275_v50, %v6193_v13 }
 0x221   :  { %v3117_v30 = vadd.f32 %v3037_v55, %v6187_v61  ;;  %v898_v11 = vrot.slane %v6209_v9, 2  ;;  %v899_v42 = vrot.slane %v6214_v28, 2  ;;  %v3196_v17 = vadd.f32 %v3116_v15, %v6085_v3 }
 0x222   :  { %v2058_v35 = vadd.f32 %v1795_v4, %v1609_v47  ;;  %v1610_v26 = vadd.f32 %v1345_v32, %v1161_v27  ;;  %v451_v1 = vsel %vm280_vm0, %v449_v2, %v450_v33  ;;  %v3435_v44 = vadd.f32 %v3355_v19, %v6195_v39  ;;  %v6260_v4 = vld [vmem:[#allocation2 + $0x398] sm:$0xff] }
 0x223   :  { %v3197_v34 = vadd.f32 %v3117_v30, %v6191_v21  ;;  %v713_v5 = vadd.f32 %v451_v1, %v6209_v9  ;;  %v900_v49 = vsel %vm729_vm1, %v898_v11, %v899_v42  ;;  %v3276_v46 = vadd.f32 %v3196_v17, %v6088_v60 }
 0x224   :  { %v2507_v20 = vadd.f32 %v2244_v62, %v2058_v35  ;;  %v2059_v41 = vadd.f32 %v1794_v43, %v1610_v26  ;;  %v1347_v52 = vrot.slane %v6209_v9, 3  ;;  %v3515_v37 = vmul.f32 0.020408163, %v3435_v44 }
 0x225   :  { %v3277_v18 = vadd.f32 %v3197_v34, %v6193_v13  ;;  %v1162_v40 = vadd.f32 %v900_v49, %v713_v5  ;;  %v1348_v29 = vrot.slane %v6214_v28, 3  ;;  %v3356_v48 = vadd.f32 %v3276_v46, %v6094_v59 }
 0x226   :  { %v6240_v10 = vadd.f32 %v2693_v57, %v2507_v20  ;;  %v2508_v14 = vadd.f32 %v2243_v53, %v2059_v41  ;;  %v1796_v36 = vrot.slane %v6209_v9, 4  ;;  %3595 = vst [vmem:[%s6561_s1 + $0x1e8] sm:$0x3] %v3515_v37  ;;  %v1797_v32 = vrot.slane %v6214_v28, 4 }
 0x227   :  { %v3357_v0 = vadd.f32 %v3277_v18, %v6195_v39  ;;  %v1349_v58 = vsel %vm1178_vm2, %v1347_v52, %v1348_v29  ;;  %v2245_v38 = vrot.slane %v6209_v9, 5  ;;  %v2246_v54 = vrot.slane %v6214_v28, 5 }
 0x228   :  { %v3436_v6 = vadd.f32 %v3356_v48, %v6240_v10  ;;  %v6252_v24 = vadd.f32 %v2692_v51, %v2508_v14  ;;  %v1611_v43 = vadd.f32 %v1349_v58, %v1162_v40  ;;  %v1798_v31 = vsel %vm1627_vm3, %v1796_v36, %v1797_v32  ;;  %v140_v36 = vld [vmem:[#allocation2 + $0x3a0] sm:$0xff] }
 0x229   :  { %v2694_v23 = vrot.slane %v6209_v9, 6  ;;  %v2695_v8 = vrot.slane %v6214_v28, 6  ;;  %v3038_v53 = vadd.f32 %v6083_v25, %v6081_v56  ;;  %v2247_v62 = vsel %vm2076_vm4, %v2245_v38, %v2246_v54 }
 0x22a   :  { %v3516_v45 = vmul.f32 0.020408163, %v3436_v6  ;;  %v3437_v12 = vadd.f32 %v3357_v0, %v6252_v24  ;;  %v2060_v51 = vadd.f32 %v1798_v31, %v1611_v43  ;;  %v714_v9 = vadd.f32 %v450_v33, %v6214_v28  ;;  %v6298_v6 = vld [vmem:[#allocation2 + $0x3a8] sm:$0xff] }
 0x22b   :  { %v2696_v63 = vsel %vm2525_vm5, %v2694_v23, %v2695_v8  ;;  %v3118_v16 = vadd.f32 %v3038_v53, %v6085_v3  ;;  %v3039_v50 = vadd.f32 %v6187_v61, %v6183_v22  ;;  %v452_v55 = vrot.slane %v138_v7, 1 }
 0x22c   :  { %3596 = vst [vmem:[%s6561_s1 + $0x1f0] sm:$0xff] %v3516_v45  ;;  %v3517_v56 = vmul.f32 0.020408163, %v3437_v12  ;;  %v2509_v57 = vadd.f32 %v2247_v62, %v2060_v51  ;;  %v453_v2 = vrot.slane %v6260_v4, 1  ;;  %v1163_v15 = vadd.f32 %v899_v42, %v714_v9 }
 0x22d   :  { %v3198_v47 = vadd.f32 %v3118_v16, %v6088_v60  ;;  %v3119_v27 = vadd.f32 %v3039_v50, %v6191_v21  ;;  %v901_v19 = vrot.slane %v138_v7, 2  ;;  %v902_v33 = vrot.slane %v6260_v4, 2 }
 0x22e   :  { %3597 = vst [vmem:[%s6561_s1 + $0x1f8] sm:$0x3] %v3517_v56  ;;  %v6278_v22 = vadd.f32 %v2696_v63, %v2509_v57  ;;  %v454_v28 = vsel %vm280_vm0, %v452_v55, %v453_v2  ;;  %v1350_v30 = vrot.slane %v138_v7, 3  ;;  %v1612_v35 = vadd.f32 %v1348_v29, %v1163_v15 }
 0x22f   :  { %v3278_v11 = vadd.f32 %v3198_v47, %v6094_v59  ;;  %v3199_v17 = vadd.f32 %v3119_v27, %v6193_v13  ;;  %v715_v42 = vadd.f32 %v454_v28, %v138_v7  ;;  %v903_v26 = vsel %vm729_vm1, %v901_v19, %v902_v33 }
 0x230   :  { %v1351_v1 = vrot.slane %v6260_v4, 3  ;;  %v1799_v44 = vrot.slane %v138_v7, 4  ;;  %v1800_v34 = vrot.slane %v6260_v4, 4  ;;  %v2061_v49 = vadd.f32 %v1797_v32, %v1612_v35 }
 0x231   :  { %v3358_v5 = vadd.f32 %v3278_v11, %v6240_v10  ;;  %v3279_v20 = vadd.f32 %v3199_v17, %v6195_v39  ;;  %v1164_v46 = vadd.f32 %v903_v26, %v715_v42  ;;  %v2248_v37 = vrot.slane %v138_v7, 5 }
 0x232   :  { %v1352_v41 = vsel %vm1178_vm2, %v1350_v30, %v1351_v1  ;;  %v1801_v52 = vsel %vm1627_vm3, %v1799_v44, %v1800_v34  ;;  %v2249_v18 = vrot.slane %v6260_v4, 5  ;;  %v2510_v29 = vadd.f32 %v2246_v54, %v2061_v49 }
 0x233   :  { %v3438_v40 = vadd.f32 %v3358_v5, %v6278_v22  ;;  %v3359_v48 = vadd.f32 %v3279_v20, %v6252_v24  ;;  %v1613_v14 = vadd.f32 %v1352_v41, %v1164_v46  ;;  %v2697_v58 = vrot.slane %v138_v7, 6  ;;  %v142_v46 = vld [vmem:[#allocation2 + $0x3b0] sm:$0xff] }
 0x234   :  { %v2250_v0 = vsel %vm2076_vm4, %v2248_v37, %v2249_v18  ;;  %v2698_v32 = vrot.slane %v6260_v4, 6  ;;  %v3040_v38 = vadd.f32 %v6085_v3, %v6083_v25  ;;  %v6300_v31 = vadd.f32 %v2695_v8, %v2510_v29 }
 0x235   :  { %v3518_v43 = vmul.f32 0.020408163, %v3438_v40  ;;  %v2062_v23 = vadd.f32 %v1801_v52, %v1613_v14  ;;  %v716_v54 = vadd.f32 %v453_v2, %v6260_v4  ;;  %v3041_v7 = vadd.f32 %v6191_v21, %v6187_v61  ;;  %v6337_v40 = vld [vmem:[#allocation2 + $0x3b8] sm:$0xff] }
 0x236   :  { %v2699_v53 = vsel %vm2525_vm5, %v2697_v58, %v2698_v32  ;;  %v3120_v45 = vadd.f32 %v3040_v38, %v6088_v60  ;;  %v455_v12 = vrot.slane %v140_v36, 1  ;;  %v3439_v25 = vadd.f32 %v3359_v48, %v6300_v31 }
 0x237   :  { %3598 = vst [vmem:[%s6561_s1 + $0x200] sm:$0xff] %v3518_v43  ;;  %v2511_v51 = vadd.f32 %v2250_v0, %v2062_v23  ;;  %v1165_v8 = vadd.f32 %v902_v33, %v716_v54  ;;  %v456_v62 = vrot.slane %v6298_v6, 1  ;;  %v3121_v63 = vadd.f32 %v3041_v7, %v6193_v13 }
 0x238   :  { %v3200_v4 = vadd.f32 %v3120_v45, %v6094_v59  ;;  %v904_v16 = vrot.slane %v140_v36, 2  ;;  %v905_v9 = vrot.slane %v6298_v6, 2  ;;  %v3519_v50 = vmul.f32 0.020408163, %v3439_v25 }
 0x239   :  { %v6315_v61 = vadd.f32 %v2699_v53, %v2511_v51  ;;  %v1614_v56 = vadd.f32 %v1351_v1, %v1165_v8  ;;  %v457_v57 = vsel %vm280_vm0, %v455_v12, %v456_v62  ;;  %v3201_v2 = vadd.f32 %v3121_v63, %v6195_v39 }
 0x23a   :  { %v3280_v55 = vadd.f32 %v3200_v4, %v6240_v10  ;;  %v717_v47 = vadd.f32 %v457_v57, %v140_v36  ;;  %v906_v15 = vsel %vm729_vm1, %v904_v16, %v905_v9  ;;  %3599 = vst [vmem:[%s6561_s1 + $0x208] sm:$0x3] %v3519_v50  ;;  %v1353_v19 = vrot.slane %v140_v36, 3 }
 0x23b   :  { %v2063_v27 = vadd.f32 %v1800_v34, %v1614_v56  ;;  %v1354_v28 = vrot.slane %v6298_v6, 3  ;;  %v1802_v33 = vrot.slane %v140_v36, 4  ;;  %v3281_v11 = vadd.f32 %v3201_v2, %v6252_v24 }
 0x23c   :  { %v3360_v30 = vadd.f32 %v3280_v55, %v6278_v22  ;;  %v1166_v35 = vadd.f32 %v906_v15, %v717_v47  ;;  %v1803_v17 = vrot.slane %v6298_v6, 4  ;;  %v2251_v1 = vrot.slane %v140_v36, 5 }
 0x23d   :  { %v2512_v42 = vadd.f32 %v2249_v18, %v2063_v27  ;;  %v1355_v26 = vsel %vm1178_vm2, %v1353_v19, %v1354_v28  ;;  %v2252_v44 = vrot.slane %v6298_v6, 5  ;;  %v3361_v34 = vadd.f32 %v3281_v11, %v6300_v31 }
 0x23e   :  { %v3440_v5 = vadd.f32 %v3360_v30, %v6315_v61  ;;  %v1615_v49 = vadd.f32 %v1355_v26, %v1166_v35  ;;  %v1804_v20 = vsel %vm1627_vm3, %v1802_v33, %v1803_v17  ;;  %v2700_v37 = vrot.slane %v140_v36, 6 }
 0x23f   :  { %v6333_v41 = vadd.f32 %v2698_v32, %v2512_v42  ;;  %v2253_v52 = vsel %vm2076_vm4, %v2251_v1, %v2252_v44  ;;  %v2701_v18 = vrot.slane %v6298_v6, 6  ;;  %v3042_v14 = vadd.f32 %v6088_v60, %v6085_v3 }
 0x240   :  { %v3520_v29 = vmul.f32 0.020408163, %v3440_v5  ;;  %v2064_v48 = vadd.f32 %v1804_v20, %v1615_v49  ;;  %v718_v0 = vadd.f32 %v456_v62, %v6298_v6  ;;  %v3043_v32 = vadd.f32 %v6193_v13, %v6191_v21 }
 0x241   :  { %v3441_v58 = vadd.f32 %v3361_v34, %v6333_v41  ;;  %v2702_v38 = vsel %vm2525_vm5, %v2700_v37, %v2701_v18  ;;  %v458_v43 = vrot.slane %v142_v46, 1  ;;  %v3122_v23 = vadd.f32 %v3042_v14, %v6094_v59 }
 0x242   :  { %3600 = vst [vmem:[%s6561_s1 + $0x210] sm:$0xff] %v3520_v29  ;;  %v2513_v36 = vadd.f32 %v2253_v52, %v2064_v48  ;;  %v1167_v54 = vadd.f32 %v905_v9, %v718_v0  ;;  %v459_v3 = vrot.slane %v6337_v40, 1  ;;  %v3123_v6 = vadd.f32 %v3043_v32, %v6195_v39  ;;  %v6381_v52 = vld [vmem:[#allocation2 + $0x3c8] sm:$0xff] }
 0x243   :  { %v3521_v53 = vmul.f32 0.020408163, %v3441_v58  ;;  %v907_v45 = vrot.slane %v142_v46, 2  ;;  %v908_v7 = vrot.slane %v6337_v40, 2  ;;  %v3202_v21 = vadd.f32 %v3122_v23, %v6240_v10 }
 0x244   :  { %v6353_v12 = vadd.f32 %v2702_v38, %v2513_v36  ;;  %v1616_v25 = vadd.f32 %v1354_v28, %v1167_v54  ;;  %v460_v51 = vsel %vm280_vm0, %v458_v43, %v459_v3  ;;  %v3203_v8 = vadd.f32 %v3123_v6, %v6252_v24 }
 0x245   :  { %3601 = vst [vmem:[%s6561_s1 + $0x218] sm:$0x3] %v3521_v53  ;;  %v719_v62 = vadd.f32 %v460_v51, %v142_v46  ;;  %v909_v4 = vsel %vm729_vm1, %v907_v45, %v908_v7  ;;  %v1356_v63 = vrot.slane %v142_v46, 3  ;;  %v3282_v16 = vadd.f32 %v3202_v21, %v6278_v22 }
 0x246   :  { %v2065_v9 = vadd.f32 %v1803_v17, %v1616_v25  ;;  %v1357_v50 = vrot.slane %v6337_v40, 3  ;;  %v1805_v56 = vrot.slane %v142_v46, 4  ;;  %v3283_v57 = vadd.f32 %v3203_v8, %v6300_v31  ;;  %v144_v17 = vld [vmem:[#allocation2 + $0x3c0] sm:$0xff] }
 0x247   :  { %v1168_v55 = vadd.f32 %v909_v4, %v719_v62  ;;  %v1806_v2 = vrot.slane %v6337_v40, 4  ;;  %v2254_v47 = vrot.slane %v142_v46, 5  ;;  %v3362_v15 = vadd.f32 %v3282_v16, %v6315_v61 }
 0x248   :  { %v2514_v27 = vadd.f32 %v2252_v44, %v2065_v9  ;;  %v1358_v19 = vsel %vm1178_vm2, %v1356_v63, %v1357_v50  ;;  %v2255_v28 = vrot.slane %v6337_v40, 5  ;;  %v3363_v33 = vadd.f32 %v3283_v57, %v6333_v41 }
 0x249   :  { %v1617_v30 = vadd.f32 %v1358_v19, %v1168_v55  ;;  %v1807_v11 = vsel %vm1627_vm3, %v1805_v56, %v1806_v2  ;;  %v2703_v35 = vrot.slane %v142_v46, 6  ;;  %v3442_v42 = vadd.f32 %v3362_v15, %v6353_v12 }
 0x24a   :  { %v6372_v26 = vadd.f32 %v2701_v18, %v2514_v27  ;;  %v2256_v1 = vsel %vm2076_vm4, %v2254_v47, %v2255_v28  ;;  %v2704_v5 = vrot.slane %v6337_v40, 6  ;;  %v3044_v34 = vadd.f32 %v6094_v59, %v6088_v60 }
 0x24b   :  { %v2066_v44 = vadd.f32 %v1807_v11, %v1617_v30  ;;  %v720_v49 = vadd.f32 %v459_v3, %v6337_v40  ;;  %v3045_v20 = vadd.f32 %v6195_v39, %v6193_v13  ;;  %v3522_v46 = vmul.f32 0.020408163, %v3442_v42 }
 0x24c   :  { %v3443_v37 = vadd.f32 %v3363_v33, %v6372_v26  ;;  %v2705_v18 = vsel %vm2525_vm5, %v2703_v35, %v2704_v5  ;;  %v461_v29 = vrot.slane %v144_v17, 1  ;;  %v3124_v14 = vadd.f32 %v3044_v34, %v6240_v10  ;;  %v146_v33 = vld [vmem:[#allocation2 + $0x3d0] sm:$0xff] }
 0x24d   :  { %v2515_v48 = vadd.f32 %v2256_v1, %v2066_v44  ;;  %v1169_v0 = vadd.f32 %v908_v7, %v720_v49  ;;  %v3125_v58 = vadd.f32 %v3045_v20, %v6252_v24  ;;  %3602 = vst [vmem:[%s6561_s1 + $0x220] sm:$0xff] %v3522_v46  ;;  %v462_v13 = vrot.slane %v6381_v52, 1 }
 0x24e   :  { %v3523_v60 = vmul.f32 0.020408163, %v3443_v37  ;;  %v910_v40 = vrot.slane %v144_v17, 2  ;;  %v911_v38 = vrot.slane %v6381_v52, 2  ;;  %v3204_v43 = vadd.f32 %v3124_v14, %v6278_v22 }
 0x24f   :  { %v6392_v32 = vadd.f32 %v2705_v18, %v2515_v48  ;;  %v1618_v36 = vadd.f32 %v1357_v50, %v1169_v0  ;;  %v3205_v23 = vadd.f32 %v3125_v58, %v6300_v31  ;;  %v463_v54 = vsel %vm280_vm0, %v461_v29, %v462_v13 }
 0x250   :  { %3603 = vst [vmem:[%s6561_s1 + $0x228] sm:$0x3] %v3523_v60  ;;  %v912_v3 = vsel %vm729_vm1, %v910_v40, %v911_v38  ;;  %v1359_v53 = vrot.slane %v144_v17, 3  ;;  %v1360_v6 = vrot.slane %v6381_v52, 3  ;;  %v3284_v45 = vadd.f32 %v3204_v43, %v6315_v61 }
 0x251   :  { %v2067_v7 = vadd.f32 %v1806_v2, %v1618_v36  ;;  %v3285_v21 = vadd.f32 %v3205_v23, %v6333_v41  ;;  %v721_v25 = vadd.f32 %v463_v54, %v144_v17  ;;  %v1808_v8 = vrot.slane %v144_v17, 4 }
 0x252   :  { %v1361_v51 = vsel %vm1178_vm2, %v1359_v53, %v1360_v6  ;;  %v1809_v62 = vrot.slane %v6381_v52, 4  ;;  %v2257_v4 = vrot.slane %v144_v17, 5  ;;  %v3364_v63 = vadd.f32 %v3284_v45, %v6353_v12 }
 0x253   :  { %v2516_v16 = vadd.f32 %v2255_v28, %v2067_v7  ;;  %v3365_v9 = vadd.f32 %v3285_v21, %v6372_v26  ;;  %v1170_v50 = vadd.f32 %v912_v3, %v721_v25  ;;  %v2258_v57 = vrot.slane %v6381_v52, 5  ;;  %v6416_v28 = vld [vmem:[#allocation2 + $0x3d8] sm:$0xff] }
 0x254   :  { %v1810_v56 = vsel %vm1627_vm3, %v1808_v8, %v1809_v62  ;;  %v2706_v55 = vrot.slane %v144_v17, 6  ;;  %v2707_v2 = vrot.slane %v6381_v52, 6  ;;  %v3444_v47 = vadd.f32 %v3364_v63, %v6392_v32 }
 0x255   :  { %v6412_v15 = vadd.f32 %v2704_v5, %v2516_v16  ;;  %v1619_v27 = vadd.f32 %v1361_v51, %v1170_v50  ;;  %v3046_v19 = vadd.f32 %v6240_v10, %v6094_v59  ;;  %v2259_v30 = vsel %vm2076_vm4, %v2257_v4, %v2258_v57  ;;  %v148_v50 = vld [vmem:[#allocation2 + $0x3e0] sm:$0xff] }
 0x256   :  { %v2708_v11 = vsel %vm2525_vm5, %v2706_v55, %v2707_v2  ;;  %v722_v35 = vadd.f32 %v462_v13, %v6381_v52  ;;  %v3047_v17 = vadd.f32 %v6252_v24, %v6195_v39  ;;  %v3524_v42 = vmul.f32 0.020408163, %v3444_v47 }
 0x257   :  { %v3445_v1 = vadd.f32 %v3365_v9, %v6412_v15  ;;  %v2068_v5 = vadd.f32 %v1810_v56, %v1619_v27  ;;  %v3126_v44 = vadd.f32 %v3046_v19, %v6278_v22  ;;  %v464_v49 = vrot.slane %v146_v33, 1  ;;  %v6455_v56 = vld [vmem:[#allocation2 + $0x3e8] sm:$0xff] }
 0x258   :  { %v1171_v34 = vadd.f32 %v911_v38, %v722_v35  ;;  %v3127_v59 = vadd.f32 %v3047_v17, %v6300_v31  ;;  %v465_v20 = vrot.slane %v6416_v28, 1  ;;  %3604 = vst [vmem:[%s6561_s1 + $0x230] sm:$0xff] %v3524_v42  ;;  %v913_v37 = vrot.slane %v146_v33, 2 }
 0x259   :  { %v3525_v52 = vmul.f32 0.020408163, %v3445_v1  ;;  %v2517_v46 = vadd.f32 %v2259_v30, %v2068_v5  ;;  %v3206_v39 = vadd.f32 %v3126_v44, %v6315_v61  ;;  %v914_v14 = vrot.slane %v6416_v28, 2 }
 0x25a   :  { %v1620_v18 = vadd.f32 %v1360_v6, %v1171_v34  ;;  %v3207_v29 = vadd.f32 %v3127_v59, %v6333_v41  ;;  %v466_v48 = vsel %vm280_vm0, %v464_v49, %v465_v20  ;;  %v1362_v13 = vrot.slane %v146_v33, 3 }
 0x25b   :  { %3605 = vst [vmem:[%s6561_s1 + $0x238] sm:$0x3] %v3525_v52  ;;  %v6437_v0 = vadd.f32 %v2708_v11, %v2517_v46  ;;  %v3286_v58 = vadd.f32 %v3206_v39, %v6353_v12  ;;  %v723_v60 = vadd.f32 %v466_v48, %v146_v33  ;;  %v915_v43 = vsel %vm729_vm1, %v913_v37, %v914_v14 }
 0x25c   :  { %v2069_v40 = vadd.f32 %v1809_v62, %v1620_v18  ;;  %v3287_v38 = vadd.f32 %v3207_v29, %v6372_v26  ;;  %v1363_v36 = vrot.slane %v6416_v28, 3  ;;  %v1811_v3 = vrot.slane %v146_v33, 4 }
 0x25d   :  { %v3366_v23 = vadd.f32 %v3286_v58, %v6392_v32  ;;  %v1172_v54 = vadd.f32 %v915_v43, %v723_v60  ;;  %v1812_v53 = vrot.slane %v6416_v28, 4  ;;  %v2260_v21 = vrot.slane %v146_v33, 5 }
 0x25e   :  { %v2518_v6 = vadd.f32 %v2258_v57, %v2069_v40  ;;  %v3367_v45 = vadd.f32 %v3287_v38, %v6412_v15  ;;  %v1364_v7 = vsel %vm1178_vm2, %v1362_v13, %v1363_v36  ;;  %v2261_v62 = vrot.slane %v6416_v28, 5 }
 0x25f   :  { %v3446_v25 = vadd.f32 %v3366_v23, %v6437_v0  ;;  %v1621_v51 = vadd.f32 %v1364_v7, %v1172_v54  ;;  %v1813_v8 = vsel %vm1627_vm3, %v1811_v3, %v1812_v53  ;;  %v2709_v63 = vrot.slane %v146_v33, 6 }
 0x260   :  { %v6450_v4 = vadd.f32 %v2707_v2, %v2518_v6  ;;  %v2710_v16 = vrot.slane %v6416_v28, 6  ;;  %v3048_v9 = vadd.f32 %v6278_v22, %v6240_v10  ;;  %v2262_v47 = vsel %vm2076_vm4, %v2260_v21, %v2261_v62 }
 0x261   :  { %v3526_v57 = vmul.f32 0.020408163, %v3446_v25  ;;  %v2070_v55 = vadd.f32 %v1813_v8, %v1621_v51  ;;  %v724_v27 = vadd.f32 %v465_v20, %v6416_v28  ;;  %v3049_v30 = vadd.f32 %v6300_v31, %v6252_v24  ;;  %v6495_v25 = vld [vmem:[#allocation2 + $0x3f8] sm:$0xff] }
 0x262   :  { %v3447_v19 = vadd.f32 %v3367_v45, %v6450_v4  ;;  %v2711_v2 = vsel %vm2525_vm5, %v2709_v63, %v2710_v16  ;;  %v3128_v33 = vadd.f32 %v3048_v9, %v6315_v61  ;;  %v467_v35 = vrot.slane %v148_v50, 1 }
 0x263   :  { %3606 = vst [vmem:[%s6561_s1 + $0x240] sm:$0xff] %v3526_v57  ;;  %v2519_v10 = vadd.f32 %v2262_v47, %v2070_v55  ;;  %v1173_v11 = vadd.f32 %v914_v14, %v724_v27  ;;  %v468_v17 = vrot.slane %v6455_v56, 1  ;;  %v3129_v1 = vadd.f32 %v3049_v30, %v6333_v41 }
 0x264   :  { %v3527_v42 = vmul.f32 0.020408163, %v3447_v19  ;;  %v3208_v28 = vadd.f32 %v3128_v33, %v6353_v12  ;;  %v916_v5 = vrot.slane %v148_v50, 2  ;;  %v917_v59 = vrot.slane %v6455_v56, 2 }
 0x265   :  { %v6470_v44 = vadd.f32 %v2711_v2, %v2519_v10  ;;  %v1622_v34 = vadd.f32 %v1363_v36, %v1173_v11  ;;  %v469_v24 = vsel %vm280_vm0, %v467_v35, %v468_v17  ;;  %v3209_v20 = vadd.f32 %v3129_v1, %v6372_v26 }
 0x266   :  { %3607 = vst [vmem:[%s6561_s1 + $0x248] sm:$0x3] %v3527_v42  ;;  %v3288_v49 = vadd.f32 %v3208_v28, %v6392_v32  ;;  %v725_v52 = vadd.f32 %v469_v24, %v148_v50  ;;  %v1365_v46 = vrot.slane %v148_v50, 3  ;;  %v918_v37 = vsel %vm729_vm1, %v916_v5, %v917_v59 }
 0x267   :  { %v2071_v39 = vadd.f32 %v1812_v53, %v1622_v34  ;;  %v1366_v18 = vrot.slane %v6455_v56, 3  ;;  %v1814_v29 = vrot.slane %v148_v50, 4  ;;  %v3289_v14 = vadd.f32 %v3209_v20, %v6412_v15  ;;  %v6489_v53 = vld [vmem:[#allocation2 + $0x3f0] sm:$0xff] }
 0x268   :  { %v3368_v48 = vadd.f32 %v3288_v49, %v6437_v0  ;;  %v1174_v58 = vadd.f32 %v918_v37, %v725_v52  ;;  %v1815_v60 = vrot.slane %v6455_v56, 4  ;;  %v2263_v38 = vrot.slane %v148_v50, 5 }
 0x269   :  { %v2520_v13 = vadd.f32 %v2261_v62, %v2071_v39  ;;  %v1367_v40 = vsel %vm1178_vm2, %v1365_v46, %v1366_v18  ;;  %v2264_v43 = vrot.slane %v6455_v56, 5  ;;  %v3369_v23 = vadd.f32 %v3289_v14, %v6450_v4 }
 0x26a   :  { %v3448_v36 = vadd.f32 %v3368_v48, %v6470_v44  ;;  %v1623_v54 = vadd.f32 %v1367_v40, %v1174_v58  ;;  %v1816_v3 = vsel %vm1627_vm3, %v1814_v29, %v1815_v60  ;;  %v2712_v7 = vrot.slane %v148_v50, 6 }
 0x26b   :  { %v6491_v6 = vadd.f32 %v2710_v16, %v2520_v13  ;;  %v2265_v45 = vsel %vm2076_vm4, %v2263_v38, %v2264_v43  ;;  %v2713_v21 = vrot.slane %v6455_v56, 6  ;;  %v3050_v62 = vadd.f32 %v6315_v61, %v6278_v22 }
 0x26c   :  { %v3528_v51 = vmul.f32 0.020408163, %v3448_v36  ;;  %v2072_v8 = vadd.f32 %v1816_v3, %v1623_v54  ;;  %v726_v63 = vadd.f32 %v468_v17, %v6455_v56  ;;  %v3051_v16 = vadd.f32 %v6333_v41, %v6300_v31 }
 0x26d   :  { %v3449_v9 = vadd.f32 %v3369_v23, %v6491_v6  ;;  %v2714_v57 = vsel %vm2525_vm5, %v2712_v7, %v2713_v21  ;;  %v470_v50 = vrot.slane %v6489_v53, 1  ;;  %v3130_v47 = vadd.f32 %v3050_v62, %v6353_v12 }
 0x26e   :  { %3608 = vst [vmem:[%s6561_s1 + $0x250] sm:$0xff] %v3528_v51  ;;  %v2521_v55 = vadd.f32 %v2265_v45, %v2072_v8  ;;  %v1175_v27 = vadd.f32 %v917_v59, %v726_v63  ;;  %v471_v22 = vrot.slane %v6495_v25, 1  ;;  %v3131_v19 = vadd.f32 %v3051_v16, %v6372_v26 }
 0x26f   :  { %v3529_v56 = vmul.f32 0.020408163, %v3449_v9  ;;  %v919_v2 = vrot.slane %v6489_v53, 2  ;;  %v920_v33 = vrot.slane %v6495_v25, 2  ;;  %v3210_v30 = vadd.f32 %v3130_v47, %v6392_v32 }
 0x270   :  { %v2970_v31 = vadd.f32 %v2714_v57, %v2521_v55  ;;  %v1624_v10 = vadd.f32 %v1366_v18, %v1175_v27  ;;  %v472_v11 = vsel %vm280_vm0, %v470_v50, %v471_v22  ;;  %v3211_v35 = vadd.f32 %v3131_v19, %v6412_v15 }
 0x271   :  { %3609 = vst [vmem:[%s6561_s1 + $0x258] sm:$0x3] %v3529_v56  ;;  %v727_v17 = vadd.f32 %v472_v11, %v6489_v53  ;;  %v921_v42 = vsel %vm729_vm1, %v919_v2, %v920_v33  ;;  %v1368_v28 = vrot.slane %v6489_v53, 3  ;;  %v3290_v1 = vadd.f32 %v3210_v30, %v6437_v0 }
 0x272   :  { %v2073_v5 = vadd.f32 %v1815_v60, %v1624_v10  ;;  %v1369_v34 = vrot.slane %v6495_v25, 3  ;;  %v1817_v24 = vrot.slane %v6489_v53, 4  ;;  %v3291_v59 = vadd.f32 %v3211_v35, %v6450_v4 }
 0x273   :  { %v1176_v49 = vadd.f32 %v921_v42, %v727_v17  ;;  %v1818_v20 = vrot.slane %v6495_v25, 4  ;;  %v2266_v52 = vrot.slane %v6489_v53, 5  ;;  %v3370_v46 = vadd.f32 %v3290_v1, %v6470_v44 }
 0x274   :  { %v2522_v39 = vadd.f32 %v2264_v43, %v2073_v5  ;;  %v1370_v37 = vsel %vm1178_vm2, %v1368_v28, %v1369_v34  ;;  %v2267_v18 = vrot.slane %v6495_v25, 5  ;;  %v3371_v29 = vadd.f32 %v3291_v59, %v6491_v6 }
 0x275   :  { %v1625_v48 = vadd.f32 %v1370_v37, %v1176_v49  ;;  %v1819_v14 = vsel %vm1627_vm3, %v1817_v24, %v1818_v20  ;;  %v2715_v58 = vrot.slane %v6489_v53, 6  ;;  %v3450_v60 = vadd.f32 %v3370_v46, %v2970_v31 }
 0x276   :  { %v2971_v13 = vadd.f32 %v2713_v21, %v2522_v39  ;;  %v2268_v40 = vsel %vm2076_vm4, %v2266_v52, %v2267_v18  ;;  %v2716_v38 = vrot.slane %v6495_v25, 6  ;;  %v3052_v43 = vadd.f32 %v6353_v12, %v6315_v61 }
 0x277   :  { %v2074_v36 = vadd.f32 %v1819_v14, %v1625_v48  ;;  %v728_v23 = vadd.f32 %v471_v22, %v6495_v25  ;;  %v3053_v54 = vadd.f32 %v6372_v26, %v6333_v41  ;;  %v3530_v3 = vmul.f32 0.020408163, %v3450_v60 }
 0x278   :  { %v3451_v45 = vadd.f32 %v3371_v29, %v2971_v13  ;;  %v3132_v53 = vadd.f32 %v3052_v43, %v6392_v32  ;;  %v2717_v61 = vsel %vm2525_vm5, %v2715_v58, %v2716_v38 }
 0x279   :  { %v2523_v7 = vadd.f32 %v2268_v40, %v2074_v36  ;;  %v1177_v51 = vadd.f32 %v920_v33, %v728_v23  ;;  %v3133_v21 = vadd.f32 %v3053_v54, %v6412_v15  ;;  %3610 = vst [vmem:[%s6561_s1 + $0x260] sm:$0xff] %v3530_v3 }
 0x27a   :  { %v3531_v8 = vmul.f32 0.020408163, %v3451_v45  ;;  %v3212_v12 = vadd.f32 %v3132_v53, %v6437_v0 }
 0x27b   :  { %v1626_v25 = vadd.f32 %v1369_v34, %v1177_v51  ;;  %v3213_v41 = vadd.f32 %v3133_v21, %v6450_v4  ;;  %v2972_v26 = vadd.f32 %v2717_v61, %v2523_v7 }
 0x27c   :  { %3611 = vst [vmem:[%s6561_s1 + $0x268] sm:$0x3] %v3531_v8  ;;  %v3292_v32 = vadd.f32 %v3212_v12, %v6470_v44 }
 0x27d   :  { %v2075_v15 = vadd.f32 %v1818_v20, %v1626_v25  ;;  %v3293_v62 = vadd.f32 %v3213_v41, %v6491_v6 }
 0x27e   :  { %v3372_v63 = vadd.f32 %v3292_v32, %v2970_v31 }
 0x27f   :  { %v2524_v9 = vadd.f32 %v2267_v18, %v2075_v15  ;;  %v3373_v57 = vadd.f32 %v3293_v62, %v2971_v13 }
 0x280   :  { %v3452_v16 = vadd.f32 %v3372_v63, %v2972_v26 }
 0x281   :  { %v2973_v50 = vadd.f32 %v2716_v38, %v2524_v9 }
 0x282   :  { %v3532_v55 = vmul.f32 0.020408163, %v3452_v16 }
 0x283   :  { %v3453_v0 = vadd.f32 %v3373_v57, %v2973_v50 }
 0x284   :  { %3612 = vst [vmem:[%s6561_s1 + $0x270] sm:$0xff] %v3532_v55 }
 0x285   :  { %v3533_v4 = vmul.f32 0.020408163, %v3453_v0 }
 0x287   :  { %3613 = vst [vmem:[%s6561_s1 + $0x278] sm:$0x3] %v3533_v4 }
 0x288   :  { %3618 = vsyncpa [#allocation3], 1 }

</bundles_post_ra>
